<compile_context>
chip_gen: v6e
topology: v6e:2x2x1
jax: 0.10.0
libtpu: 0.0.40
codegen_flags: <defaults>
</compile_context>

<pallas_src>
import jax
import jax.numpy as jnp
from jax import lax
from jax.experimental import pallas as pl
from jax.experimental.pallas import tpu as pltpu

# ---------------- small problem sizes (consistent with the module) -------------
N, C_IN, H, W = 2, 3, 16, 16          # input (NCHW at the wrapper API)
C_OUT, KH, KW = 16, 3, 3              # Conv2d(3, 16, 3, stride=1, padding=1)
PAD = 1
HW = H * W


# ------------------------------ fused Pallas kernel ----------------------------
def fused_kernel(x_ref, w_ref, b_ref, wrow_ref, conv_ref, clamp_ref, pad_ref):
    # x_ref    : (N, H, W, C_IN)        unpadded NHWC input
    # w_ref    : (KH*KW, C_OUT, C_IN)   conv weight, one (C_OUT, C_IN) tap per row
    # b_ref    : (C_OUT, 1)             conv bias (broadcasts across lanes)
    # wrow_ref : (1, 3)                 self.w[0, :]
    # conv_ref : (N, C_OUT, H*W)        conv output, lane-dense last dim (256)
    # clamp_ref: (1, 3)                 the value the model actually returns
    # pad_ref  : (N, H+2, W+2, C_IN)    VMEM scratch for zero padding

    # ---- the value the module returns: clamp(4.2 - w[0, :], 2.0, 7.2) ---------
    clamp_ref[...] = jnp.clip(4.2 - wrow_ref[...], 2.0, 7.2)

    # ---- zero-pad the input in VMEM (padding=1, stride=1) ---------------------
    pad_ref[...] = jnp.zeros_like(pad_ref)
    pad_ref[:, PAD:PAD + H, PAD:PAD + W, :] = x_ref[...]

    bias = b_ref[...]                                   # (C_OUT, 1)
    for n in range(N):                                  # static unroll (N = 2)
        acc = jnp.zeros((C_OUT, HW), dtype=jnp.float32)
        # NOTE: 9 small K=3 matmuls accumulated; a lane-dim im2col concat to a
        # single K=27 matmul would only save a few hundred cycles (kernel is
        # launch-overhead bound), so we keep the layout-safe form.
        for kh in range(KH):
            for kw in range(KW):
                patch = pad_ref[n, kh:kh + H, kw:kw + W, :]      # (H, W, C_IN)
                patch2d = patch.reshape(HW, C_IN)                # (256, 3)
                # (C_OUT, C_IN) . (HW, C_IN)^T -> (C_OUT, HW)    (A @ B^T form)
                acc = acc + lax.dot_general(
                    w_ref[kh * KW + kw], patch2d,
                    dimension_numbers=(((1,), (1,)), ((), ())),
                    preferred_element_type=jnp.float32)
        conv_ref[n] = acc + bias                        # lane-dense (16, 256) store


def fused_forward(x_nhwc, w_taps, bias_col, w_row):
    return pl.pallas_call(
        fused_kernel,
        out_shape=(
            jax.ShapeDtypeStruct((N, C_OUT, HW), jnp.float32),
            jax.ShapeDtypeStruct((1, 3), jnp.float32),
        ),
        in_specs=[
            pl.BlockSpec((N, H, W, C_IN), lambda: (0, 0, 0, 0)),
            pl.BlockSpec((KH * KW, C_OUT, C_IN), lambda: (0, 0, 0)),
            pl.BlockSpec((C_OUT, 1), lambda: (0, 0)),
            pl.BlockSpec((1, 3), lambda: (0, 0)),
        ],
        out_specs=(
            pl.BlockSpec((N, C_OUT, HW), lambda: (0, 0, 0)),
            pl.BlockSpec((1, 3), lambda: (0, 0)),
        ),
        scratch_shapes=[
            pltpu.VMEM((N, H + 2 * PAD, W + 2 * PAD, C_IN), jnp.float32),
        ],
    )(x_nhwc, w_taps, bias_col, w_row)


# ----------------------------------- wrapper ------------------------------------
def prepare_conv_weight(conv_w_oihw):
    """One-time parameter prep: PyTorch OIHW -> (KH*KW, C_OUT, C_IN)."""
    return jnp.transpose(conv_w_oihw, (2, 3, 0, 1)).reshape(KH * KW, C_OUT, C_IN)


@jax.jit
def model_forward(x_nchw, w_taps, conv_b, w_param):
    # Only per-call glue: one tiny NCHW->NHWC transpose of the 6 KB input.
    # The output needs NO transpose: the kernel writes (N, C_OUT, H*W), which
    # reshapes to NCHW for free.
    x_nhwc = jnp.transpose(x_nchw, (0, 2, 3, 1))
    conv_flat, clamp2d = fused_forward(
        x_nhwc, w_taps, conv_b.reshape(C_OUT, 1), w_param[0:1, :])
    v = clamp2d.reshape(3)                        # what the module returns
    v_conv = conv_flat.reshape(N, C_OUT, H, W)    # dead conv result, kept so it isn't DCE'd
    return v, v_conv


if __name__ == "__main__":
    key = jax.random.PRNGKey(0)
    kx, kw, kb = jax.random.split(key, 3)

    x = jax.random.normal(kx, (N, C_IN, H, W), dtype=jnp.float32)

    # deterministic parameter init (PyTorch layouts)
    w_param = jnp.ones((64, 3), dtype=jnp.float32)                        # self.w
    conv_w = 0.05 * jax.random.normal(kw, (C_OUT, C_IN, KH, KW),
                                      dtype=jnp.float32)                  # OIHW
    conv_b = 0.01 * jax.random.normal(kb, (C_OUT,), dtype=jnp.float32)

    w_taps = prepare_conv_weight(conv_w)                                  # one-time prep

    out, conv_out = model_forward(x, w_taps, conv_b, w_param)
    jax.block_until_ready(out)
    jax.block_until_ready(conv_out)

    # --- reference checks ---
    # the module's actual return: clamp(4.2 - 1.0, 2.0, 7.2) == 3.2 for all 3 entries
    expected = jnp.clip(4.2 - w_param[0, :], 2.0, 7.2)
    assert out.shape == (3,)
    assert jnp.allclose(out, expected, atol=1e-6)

    # the (discarded-by-the-module) conv, checked against lax reference
    assert conv_out.shape == (N, C_OUT, H, W)
    ref_conv = lax.conv_general_dilated(
        x, conv_w, window_strides=(1, 1), padding=((PAD, PAD), (PAD, PAD)),
        dimension_numbers=("NCHW", "OIHW", "NCHW")) + conv_b.reshape(1, C_OUT, 1, 1)
    assert jnp.allclose(conv_out, ref_conv, atol=5e-3, rtol=5e-3)

    print("KERNEL_OK")
</pallas_src>

<mosaic_0001>
module attributes {stable_mosaic.version = 11 : i64} {
  func.func @fused_kernel(%arg0: memref<2x16x16x3xf32, #tpu.memory_space<vmem>>, %arg1: memref<9x16x3xf32, #tpu.memory_space<vmem>>, %arg2: memref<16x1xf32, #tpu.memory_space<vmem>>, %arg3: memref<1x3xf32, #tpu.memory_space<vmem>>, %arg4: memref<2x16x256xf32, #tpu.memory_space<vmem>>, %arg5: memref<1x3xf32, #tpu.memory_space<vmem>>, %arg6: memref<2x18x18x3xf32, #tpu.memory_space<vmem>>) attributes {dimension_semantics = [], scalar_prefetch = 0 : i64, scratch_operands = 1 : i64, tpu.core_type = #tpu.core_type<tc>} {
    %c0 = arith.constant 0 : index
    %c0_0 = arith.constant 0 : index
    %0 = vector.load %arg3[%c0, %c0_0] : memref<1x3xf32, #tpu.memory_space<vmem>>, vector<1x3xf32>
    %cst = arith.constant 4.200000e+00 : f32
    %1 = vector.broadcast %cst : f32 to vector<1x3xf32>
    %2 = arith.subf %1, %0 : vector<1x3xf32>
    %cst_1 = arith.constant 2.000000e+00 : f32
    %cst_2 = arith.constant 7.1999998 : f32
    %3 = vector.broadcast %cst_1 : f32 to vector<1x3xf32>
    %4 = arith.maximumf %3, %2 : vector<1x3xf32>
    %5 = vector.broadcast %cst_2 : f32 to vector<1x3xf32>
    %6 = arith.minimumf %5, %4 : vector<1x3xf32>
    %c0_3 = arith.constant 0 : index
    %c0_4 = arith.constant 0 : index
    %7 = vector.load %arg5[%c0_3, %c0_4] : memref<1x3xf32, #tpu.memory_space<vmem>>, vector<1x3xf32>
    tpu.vector_store %arg5[%c0_3, %c0_4], %6 {strides = array<i32>} : memref<1x3xf32, #tpu.memory_space<vmem>>, vector<1x3xf32>,
    %cst_5 = arith.constant 0.000000e+00 : f32
    %8 = vector.broadcast %cst_5 : f32 to vector<2x18x18x3xf32>
    %c0_6 = arith.constant 0 : index
    %c0_7 = arith.constant 0 : index
    %c0_8 = arith.constant 0 : index
    %c0_9 = arith.constant 0 : index
    %9 = vector.load %arg6[%c0_6, %c0_7, %c0_8, %c0_9] : memref<2x18x18x3xf32, #tpu.memory_space<vmem>>, vector<2x18x18x3xf32>
    tpu.vector_store %arg6[%c0_6, %c0_7, %c0_8, %c0_9], %8 {strides = array<i32>} : memref<2x18x18x3xf32, #tpu.memory_space<vmem>>, vector<2x18x18x3xf32>,
    %c0_10 = arith.constant 0 : index
    %c0_11 = arith.constant 0 : index
    %c0_12 = arith.constant 0 : index
    %c0_13 = arith.constant 0 : index
    %10 = vector.load %arg0[%c0_10, %c0_11, %c0_12, %c0_13] : memref<2x16x16x3xf32, #tpu.memory_space<vmem>>, vector<2x16x16x3xf32>
    %c0_14 = arith.constant 0 : index
    %c1 = arith.constant 1 : index
    %c1_15 = arith.constant 1 : index
    %c0_16 = arith.constant 0 : index
    %11 = vector.load %arg6[%c0_14, %c1, %c1_15, %c0_16] : memref<2x18x18x3xf32, #tpu.memory_space<vmem>>, vector<2x16x16x3xf32>
    tpu.vector_store %arg6[%c0_14, %c1, %c1_15, %c0_16], %10 {strides = array<i32>} : memref<2x18x18x3xf32, #tpu.memory_space<vmem>>, vector<2x16x16x3xf32>,
    %c0_17 = arith.constant 0 : index
    %c0_18 = arith.constant 0 : index
    %12 = vector.load %arg2[%c0_17, %c0_18] : memref<16x1xf32, #tpu.memory_space<vmem>>, vector<16x1xf32>
    %cst_19 = arith.constant 0.000000e+00 : f32
    %13 = vector.broadcast %cst_19 : f32 to vector<16x256xf32>
    %c0_20 = arith.constant 0 : index
    %c0_21 = arith.constant 0 : index
    %c0_22 = arith.constant 0 : index
    %c0_23 = arith.constant 0 : index
    %14 = vector.load %arg6[%c0_20, %c0_21, %c0_22, %c0_23] : memref<2x18x18x3xf32, #tpu.memory_space<vmem>>, vector<1x16x16x3xf32>
    %15 = vector.shape_cast %14 : vector<1x16x16x3xf32> to vector<16x16x3xf32>
    %16 = vector.shape_cast %15 : vector<16x16x3xf32> to vector<256x3xf32>
    %c0_24 = arith.constant 0 : index
    %c0_25 = arith.constant 0 : index
    %c0_26 = arith.constant 0 : index
    %17 = vector.load %arg1[%c0_24, %c0_25, %c0_26] : memref<9x16x3xf32, #tpu.memory_space<vmem>>, vector<1x16x3xf32>
    %18 = vector.shape_cast %17 : vector<1x16x3xf32> to vector<16x3xf32>
    %cst_27 = arith.constant dense<0.000000e+00> : vector<16x256xf32>
    %19 = tpu.matmul %18, %16, %cst_27 {dimension_numbers = #tpu.dot_dimension_numbers<[1], [1], [0], [0], [0, 0, 1, 0], [], []>} : vector<16x3xf32>, vector<256x3xf32>, vector<16x256xf32> -> vector<16x256xf32>
    %20 = arith.addf %13, %19 : vector<16x256xf32>
    %c0_28 = arith.constant 0 : index
    %c0_29 = arith.constant 0 : index
    %c1_30 = arith.constant 1 : index
    %c0_31 = arith.constant 0 : index
    %21 = vector.load %arg6[%c0_28, %c0_29, %c1_30, %c0_31] : memref<2x18x18x3xf32, #tpu.memory_space<vmem>>, vector<1x16x16x3xf32>
    %22 = vector.shape_cast %21 : vector<1x16x16x3xf32> to vector<16x16x3xf32>
    %23 = vector.shape_cast %22 : vector<16x16x3xf32> to vector<256x3xf32>
    %c1_32 = arith.constant 1 : index
    %c0_33 = arith.constant 0 : index
    %c0_34 = arith.constant 0 : index
    %24 = vector.load %arg1[%c1_32, %c0_33, %c0_34] : memref<9x16x3xf32, #tpu.memory_space<vmem>>, vector<1x16x3xf32>
    %25 = vector.shape_cast %24 : vector<1x16x3xf32> to vector<16x3xf32>
    %cst_35 = arith.constant dense<0.000000e+00> : vector<16x256xf32>
    %26 = tpu.matmul %25, %23, %cst_35 {dimension_numbers = #tpu.dot_dimension_numbers<[1], [1], [0], [0], [0, 0, 1, 0], [], []>} : vector<16x3xf32>, vector<256x3xf32>, vector<16x256xf32> -> vector<16x256xf32>
    %27 = arith.addf %20, %26 : vector<16x256xf32>
    %c0_36 = arith.constant 0 : index
    %c0_37 = arith.constant 0 : index
    %c2 = arith.constant 2 : index
    %c0_38 = arith.constant 0 : index
    %28 = vector.load %arg6[%c0_36, %c0_37, %c2, %c0_38] : memref<2x18x18x3xf32, #tpu.memory_space<vmem>>, vector<1x16x16x3xf32>
    %29 = vector.shape_cast %28 : vector<1x16x16x3xf32> to vector<16x16x3xf32>
    %30 = vector.shape_cast %29 : vector<16x16x3xf32> to vector<256x3xf32>
    %c2_39 = arith.constant 2 : index
    %c0_40 = arith.constant 0 : index
    %c0_41 = arith.constant 0 : index
    %31 = vector.load %arg1[%c2_39, %c0_40, %c0_41] : memref<9x16x3xf32, #tpu.memory_space<vmem>>, vector<1x16x3xf32>
    %32 = vector.shape_cast %31 : vector<1x16x3xf32> to vector<16x3xf32>
    %cst_42 = arith.constant dense<0.000000e+00> : vector<16x256xf32>
    %33 = tpu.matmul %32, %30, %cst_42 {dimension_numbers = #tpu.dot_dimension_numbers<[1], [1], [0], [0], [0, 0, 1, 0], [], []>} : vector<16x3xf32>, vector<256x3xf32>, vector<16x256xf32> -> vector<16x256xf32>
    %34 = arith.addf %27, %33 : vector<16x256xf32>
    %c0_43 = arith.constant 0 : index
    %c1_44 = arith.constant 1 : index
    %c0_45 = arith.constant 0 : index
    %c0_46 = arith.constant 0 : index
    %35 = vector.load %arg6[%c0_43, %c1_44, %c0_45, %c0_46] : memref<2x18x18x3xf32, #tpu.memory_space<vmem>>, vector<1x16x16x3xf32>
    %36 = vector.shape_cast %35 : vector<1x16x16x3xf32> to vector<16x16x3xf32>
    %37 = vector.shape_cast %36 : vector<16x16x3xf32> to vector<256x3xf32>
    %c3 = arith.constant 3 : index
    %c0_47 = arith.constant 0 : index
    %c0_48 = arith.constant 0 : index
    %38 = vector.load %arg1[%c3, %c0_47, %c0_48] : memref<9x16x3xf32, #tpu.memory_space<vmem>>, vector<1x16x3xf32>
    %39 = vector.shape_cast %38 : vector<1x16x3xf32> to vector<16x3xf32>
    %cst_49 = arith.constant dense<0.000000e+00> : vector<16x256xf32>
    %40 = tpu.matmul %39, %37, %cst_49 {dimension_numbers = #tpu.dot_dimension_numbers<[1], [1], [0], [0], [0, 0, 1, 0], [], []>} : vector<16x3xf32>, vector<256x3xf32>, vector<16x256xf32> -> vector<16x256xf32>
    %41 = arith.addf %34, %40 : vector<16x256xf32>
    %c0_50 = arith.constant 0 : index
    %c1_51 = arith.constant 1 : index
    %c1_52 = arith.constant 1 : index
    %c0_53 = arith.constant 0 : index
    %42 = vector.load %arg6[%c0_50, %c1_51, %c1_52, %c0_53] : memref<2x18x18x3xf32, #tpu.memory_space<vmem>>, vector<1x16x16x3xf32>
    %43 = vector.shape_cast %42 : vector<1x16x16x3xf32> to vector<16x16x3xf32>
    %44 = vector.shape_cast %43 : vector<16x16x3xf32> to vector<256x3xf32>
    %c4 = arith.constant 4 : index
    %c0_54 = arith.constant 0 : index
    %c0_55 = arith.constant 0 : index
    %45 = vector.load %arg1[%c4, %c0_54, %c0_55] : memref<9x16x3xf32, #tpu.memory_space<vmem>>, vector<1x16x3xf32>
    %46 = vector.shape_cast %45 : vector<1x16x3xf32> to vector<16x3xf32>
    %cst_56 = arith.constant dense<0.000000e+00> : vector<16x256xf32>
    %47 = tpu.matmul %46, %44, %cst_56 {dimension_numbers = #tpu.dot_dimension_numbers<[1], [1], [0], [0], [0, 0, 1, 0], [], []>} : vector<16x3xf32>, vector<256x3xf32>, vector<16x256xf32> -> vector<16x256xf32>
    %48 = arith.addf %41, %47 : vector<16x256xf32>
    %c0_57 = arith.constant 0 : index
    %c1_58 = arith.constant 1 : index
    %c2_59 = arith.constant 2 : index
    %c0_60 = arith.constant 0 : index
    %49 = vector.load %arg6[%c0_57, %c1_58, %c2_59, %c0_60] : memref<2x18x18x3xf32, #tpu.memory_space<vmem>>, vector<1x16x16x3xf32>
    %50 = vector.shape_cast %49 : vector<1x16x16x3xf32> to vector<16x16x3xf32>
    %51 = vector.shape_cast %50 : vector<16x16x3xf32> to vector<256x3xf32>
    %c5 = arith.constant 5 : index
    %c0_61 = arith.constant 0 : index
    %c0_62 = arith.constant 0 : index
    %52 = vector.load %arg1[%c5, %c0_61, %c0_62] : memref<9x16x3xf32, #tpu.memory_space<vmem>>, vector<1x16x3xf32>
    %53 = vector.shape_cast %52 : vector<1x16x3xf32> to vector<16x3xf32>
    %cst_63 = arith.constant dense<0.000000e+00> : vector<16x256xf32>
    %54 = tpu.matmul %53, %51, %cst_63 {dimension_numbers = #tpu.dot_dimension_numbers<[1], [1], [0], [0], [0, 0, 1, 0], [], []>} : vector<16x3xf32>, vector<256x3xf32>, vector<16x256xf32> -> vector<16x256xf32>
    %55 = arith.addf %48, %54 : vector<16x256xf32>
    %c0_64 = arith.constant 0 : index
    %c2_65 = arith.constant 2 : index
    %c0_66 = arith.constant 0 : index
    %c0_67 = arith.constant 0 : index
    %56 = vector.load %arg6[%c0_64, %c2_65, %c0_66, %c0_67] : memref<2x18x18x3xf32, #tpu.memory_space<vmem>>, vector<1x16x16x3xf32>
    %57 = vector.shape_cast %56 : vector<1x16x16x3xf32> to vector<16x16x3xf32>
    %58 = vector.shape_cast %57 : vector<16x16x3xf32> to vector<256x3xf32>
    %c6 = arith.constant 6 : index
    %c0_68 = arith.constant 0 : index
    %c0_69 = arith.constant 0 : index
    %59 = vector.load %arg1[%c6, %c0_68, %c0_69] : memref<9x16x3xf32, #tpu.memory_space<vmem>>, vector<1x16x3xf32>
    %60 = vector.shape_cast %59 : vector<1x16x3xf32> to vector<16x3xf32>
    %cst_70 = arith.constant dense<0.000000e+00> : vector<16x256xf32>
    %61 = tpu.matmul %60, %58, %cst_70 {dimension_numbers = #tpu.dot_dimension_numbers<[1], [1], [0], [0], [0, 0, 1, 0], [], []>} : vector<16x3xf32>, vector<256x3xf32>, vector<16x256xf32> -> vector<16x256xf32>
    %62 = arith.addf %55, %61 : vector<16x256xf32>
    %c0_71 = arith.constant 0 : index
    %c2_72 = arith.constant 2 : index
    %c1_73 = arith.constant 1 : index
    %c0_74 = arith.constant 0 : index
    %63 = vector.load %arg6[%c0_71, %c2_72, %c1_73, %c0_74] : memref<2x18x18x3xf32, #tpu.memory_space<vmem>>, vector<1x16x16x3xf32>
    %64 = vector.shape_cast %63 : vector<1x16x16x3xf32> to vector<16x16x3xf32>
    %65 = vector.shape_cast %64 : vector<16x16x3xf32> to vector<256x3xf32>
    %c7 = arith.constant 7 : index
    %c0_75 = arith.constant 0 : index
    %c0_76 = arith.constant 0 : index
    %66 = vector.load %arg1[%c7, %c0_75, %c0_76] : memref<9x16x3xf32, #tpu.memory_space<vmem>>, vector<1x16x3xf32>
    %67 = vector.shape_cast %66 : vector<1x16x3xf32> to vector<16x3xf32>
    %cst_77 = arith.constant dense<0.000000e+00> : vector<16x256xf32>
    %68 = tpu.matmul %67, %65, %cst_77 {dimension_numbers = #tpu.dot_dimension_numbers<[1], [1], [0], [0], [0, 0, 1, 0], [], []>} : vector<16x3xf32>, vector<256x3xf32>, vector<16x256xf32> -> vector<16x256xf32>
    %69 = arith.addf %62, %68 : vector<16x256xf32>
    %c0_78 = arith.constant 0 : index
    %c2_79 = arith.constant 2 : index
    %c2_80 = arith.constant 2 : index
    %c0_81 = arith.constant 0 : index
    %70 = vector.load %arg6[%c0_78, %c2_79, %c2_80, %c0_81] : memref<2x18x18x3xf32, #tpu.memory_space<vmem>>, vector<1x16x16x3xf32>
    %71 = vector.shape_cast %70 : vector<1x16x16x3xf32> to vector<16x16x3xf32>
    %72 = vector.shape_cast %71 : vector<16x16x3xf32> to vector<256x3xf32>
    %c8 = arith.constant 8 : index
    %c0_82 = arith.constant 0 : index
    %c0_83 = arith.constant 0 : index
    %73 = vector.load %arg1[%c8, %c0_82, %c0_83] : memref<9x16x3xf32, #tpu.memory_space<vmem>>, vector<1x16x3xf32>
    %74 = vector.shape_cast %73 : vector<1x16x3xf32> to vector<16x3xf32>
    %cst_84 = arith.constant dense<0.000000e+00> : vector<16x256xf32>
    %75 = tpu.matmul %74, %72, %cst_84 {dimension_numbers = #tpu.dot_dimension_numbers<[1], [1], [0], [0], [0, 0, 1, 0], [], []>} : vector<16x3xf32>, vector<256x3xf32>, vector<16x256xf32> -> vector<16x256xf32>
    %76 = arith.addf %69, %75 : vector<16x256xf32>
    %77 = vector.broadcast %12 : vector<16x1xf32> to vector<16x256xf32>
    %78 = arith.addf %76, %77 : vector<16x256xf32>
    %c0_85 = arith.constant 0 : index
    %c0_86 = arith.constant 0 : index
    %c0_87 = arith.constant 0 : index
    %79 = vector.load %arg4[%c0_85, %c0_86, %c0_87] : memref<2x16x256xf32, #tpu.memory_space<vmem>>, vector<1x16x256xf32>
    %80 = vector.shape_cast %79 : vector<1x16x256xf32> to vector<16x256xf32>
    %81 = vector.shape_cast %78 : vector<16x256xf32> to vector<1x16x256xf32>
    tpu.vector_store %arg4[%c0_85, %c0_86, %c0_87], %81 {strides = array<i32>} : memref<2x16x256xf32, #tpu.memory_space<vmem>>, vector<1x16x256xf32>,
    %cst_88 = arith.constant 0.000000e+00 : f32
    %82 = vector.broadcast %cst_88 : f32 to vector<16x256xf32>
    %c1_89 = arith.constant 1 : index
    %c0_90 = arith.constant 0 : index
    %c0_91 = arith.constant 0 : index
    %c0_92 = arith.constant 0 : index
    %83 = vector.load %arg6[%c1_89, %c0_90, %c0_91, %c0_92] : memref<2x18x18x3xf32, #tpu.memory_space<vmem>>, vector<1x16x16x3xf32>
    %84 = vector.shape_cast %83 : vector<1x16x16x3xf32> to vector<16x16x3xf32>
    %85 = vector.shape_cast %84 : vector<16x16x3xf32> to vector<256x3xf32>
    %c0_93 = arith.constant 0 : index
    %c0_94 = arith.constant 0 : index
    %c0_95 = arith.constant 0 : index
    %86 = vector.load %arg1[%c0_93, %c0_94, %c0_95] : memref<9x16x3xf32, #tpu.memory_space<vmem>>, vector<1x16x3xf32>
    %87 = vector.shape_cast %86 : vector<1x16x3xf32> to vector<16x3xf32>
    %cst_96 = arith.constant dense<0.000000e+00> : vector<16x256xf32>
    %88 = tpu.matmul %87, %85, %cst_96 {dimension_numbers = #tpu.dot_dimension_numbers<[1], [1], [0], [0], [0, 0, 1, 0], [], []>} : vector<16x3xf32>, vector<256x3xf32>, vector<16x256xf32> -> vector<16x256xf32>
    %89 = arith.addf %82, %88 : vector<16x256xf32>
    %c1_97 = arith.constant 1 : index
    %c0_98 = arith.constant 0 : index
    %c1_99 = arith.constant 1 : index
    %c0_100 = arith.constant 0 : index
    %90 = vector.load %arg6[%c1_97, %c0_98, %c1_99, %c0_100] : memref<2x18x18x3xf32, #tpu.memory_space<vmem>>, vector<1x16x16x3xf32>
    %91 = vector.shape_cast %90 : vector<1x16x16x3xf32> to vector<16x16x3xf32>
    %92 = vector.shape_cast %91 : vector<16x16x3xf32> to vector<256x3xf32>
    %c1_101 = arith.constant 1 : index
    %c0_102 = arith.constant 0 : index
    %c0_103 = arith.constant 0 : index
    %93 = vector.load %arg1[%c1_101, %c0_102, %c0_103] : memref<9x16x3xf32, #tpu.memory_space<vmem>>, vector<1x16x3xf32>
    %94 = vector.shape_cast %93 : vector<1x16x3xf32> to vector<16x3xf32>
    %cst_104 = arith.constant dense<0.000000e+00> : vector<16x256xf32>
    %95 = tpu.matmul %94, %92, %cst_104 {dimension_numbers = #tpu.dot_dimension_numbers<[1], [1], [0], [0], [0, 0, 1, 0], [], []>} : vector<16x3xf32>, vector<256x3xf32>, vector<16x256xf32> -> vector<16x256xf32>
    %96 = arith.addf %89, %95 : vector<16x256xf32>
    %c1_105 = arith.constant 1 : index
    %c0_106 = arith.constant 0 : index
    %c2_107 = arith.constant 2 : index
    %c0_108 = arith.constant 0 : index
    %97 = vector.load %arg6[%c1_105, %c0_106, %c2_107, %c0_108] : memref<2x18x18x3xf32, #tpu.memory_space<vmem>>, vector<1x16x16x3xf32>
    %98 = vector.shape_cast %97 : vector<1x16x16x3xf32> to vector<16x16x3xf32>
    %99 = vector.shape_cast %98 : vector<16x16x3xf32> to vector<256x3xf32>
    %c2_109 = arith.constant 2 : index
    %c0_110 = arith.constant 0 : index
    %c0_111 = arith.constant 0 : index
    %100 = vector.load %arg1[%c2_109, %c0_110, %c0_111] : memref<9x16x3xf32, #tpu.memory_space<vmem>>, vector<1x16x3xf32>
    %101 = vector.shape_cast %100 : vector<1x16x3xf32> to vector<16x3xf32>
    %cst_112 = arith.constant dense<0.000000e+00> : vector<16x256xf32>
    %102 = tpu.matmul %101, %99, %cst_112 {dimension_numbers = #tpu.dot_dimension_numbers<[1], [1], [0], [0], [0, 0, 1, 0], [], []>} : vector<16x3xf32>, vector<256x3xf32>, vector<16x256xf32> -> vector<16x256xf32>
    %103 = arith.addf %96, %102 : vector<16x256xf32>
    %c1_113 = arith.constant 1 : index
    %c1_114 = arith.constant 1 : index
    %c0_115 = arith.constant 0 : index
    %c0_116 = arith.constant 0 : index
    %104 = vector.load %arg6[%c1_113, %c1_114, %c0_115, %c0_116] : memref<2x18x18x3xf32, #tpu.memory_space<vmem>>, vector<1x16x16x3xf32>
    %105 = vector.shape_cast %104 : vector<1x16x16x3xf32> to vector<16x16x3xf32>
    %106 = vector.shape_cast %105 : vector<16x16x3xf32> to vector<256x3xf32>
    %c3_117 = arith.constant 3 : index
    %c0_118 = arith.constant 0 : index
    %c0_119 = arith.constant 0 : index
    %107 = vector.load %arg1[%c3_117, %c0_118, %c0_119] : memref<9x16x3xf32, #tpu.memory_space<vmem>>, vector<1x16x3xf32>
    %108 = vector.shape_cast %107 : vector<1x16x3xf32> to vector<16x3xf32>
    %cst_120 = arith.constant dense<0.000000e+00> : vector<16x256xf32>
    %109 = tpu.matmul %108, %106, %cst_120 {dimension_numbers = #tpu.dot_dimension_numbers<[1], [1], [0], [0], [0, 0, 1, 0], [], []>} : vector<16x3xf32>, vector<256x3xf32>, vector<16x256xf32> -> vector<16x256xf32>
    %110 = arith.addf %103, %109 : vector<16x256xf32>
    %c1_121 = arith.constant 1 : index
    %c1_122 = arith.constant 1 : index
    %c1_123 = arith.constant 1 : index
    %c0_124 = arith.constant 0 : index
    %111 = vector.load %arg6[%c1_121, %c1_122, %c1_123, %c0_124] : memref<2x18x18x3xf32, #tpu.memory_space<vmem>>, vector<1x16x16x3xf32>
    %112 = vector.shape_cast %111 : vector<1x16x16x3xf32> to vector<16x16x3xf32>
    %113 = vector.shape_cast %112 : vector<16x16x3xf32> to vector<256x3xf32>
    %c4_125 = arith.constant 4 : index
    %c0_126 = arith.constant 0 : index
    %c0_127 = arith.constant 0 : index
    %114 = vector.load %arg1[%c4_125, %c0_126, %c0_127] : memref<9x16x3xf32, #tpu.memory_space<vmem>>, vector<1x16x3xf32>
    %115 = vector.shape_cast %114 : vector<1x16x3xf32> to vector<16x3xf32>
    %cst_128 = arith.constant dense<0.000000e+00> : vector<16x256xf32>
    %116 = tpu.matmul %115, %113, %cst_128 {dimension_numbers = #tpu.dot_dimension_numbers<[1], [1], [0], [0], [0, 0, 1, 0], [], []>} : vector<16x3xf32>, vector<256x3xf32>, vector<16x256xf32> -> vector<16x256xf32>
    %117 = arith.addf %110, %116 : vector<16x256xf32>
    %c1_129 = arith.constant 1 : index
    %c1_130 = arith.constant 1 : index
    %c2_131 = arith.constant 2 : index
    %c0_132 = arith.constant 0 : index
    %118 = vector.load %arg6[%c1_129, %c1_130, %c2_131, %c0_132] : memref<2x18x18x3xf32, #tpu.memory_space<vmem>>, vector<1x16x16x3xf32>
    %119 = vector.shape_cast %118 : vector<1x16x16x3xf32> to vector<16x16x3xf32>
    %120 = vector.shape_cast %119 : vector<16x16x3xf32> to vector<256x3xf32>
    %c5_133 = arith.constant 5 : index
    %c0_134 = arith.constant 0 : index
    %c0_135 = arith.constant 0 : index
    %121 = vector.load %arg1[%c5_133, %c0_134, %c0_135] : memref<9x16x3xf32, #tpu.memory_space<vmem>>, vector<1x16x3xf32>
    %122 = vector.shape_cast %121 : vector<1x16x3xf32> to vector<16x3xf32>
    %cst_136 = arith.constant dense<0.000000e+00> : vector<16x256xf32>
    %123 = tpu.matmul %122, %120, %cst_136 {dimension_numbers = #tpu.dot_dimension_numbers<[1], [1], [0], [0], [0, 0, 1, 0], [], []>} : vector<16x3xf32>, vector<256x3xf32>, vector<16x256xf32> -> vector<16x256xf32>
    %124 = arith.addf %117, %123 : vector<16x256xf32>
    %c1_137 = arith.constant 1 : index
    %c2_138 = arith.constant 2 : index
    %c0_139 = arith.constant 0 : index
    %c0_140 = arith.constant 0 : index
    %125 = vector.load %arg6[%c1_137, %c2_138, %c0_139, %c0_140] : memref<2x18x18x3xf32, #tpu.memory_space<vmem>>, vector<1x16x16x3xf32>
    %126 = vector.shape_cast %125 : vector<1x16x16x3xf32> to vector<16x16x3xf32>
    %127 = vector.shape_cast %126 : vector<16x16x3xf32> to vector<256x3xf32>
    %c6_141 = arith.constant 6 : index
    %c0_142 = arith.constant 0 : index
    %c0_143 = arith.constant 0 : index
    %128 = vector.load %arg1[%c6_141, %c0_142, %c0_143] : memref<9x16x3xf32, #tpu.memory_space<vmem>>, vector<1x16x3xf32>
    %129 = vector.shape_cast %128 : vector<1x16x3xf32> to vector<16x3xf32>
    %cst_144 = arith.constant dense<0.000000e+00> : vector<16x256xf32>
    %130 = tpu.matmul %129, %127, %cst_144 {dimension_numbers = #tpu.dot_dimension_numbers<[1], [1], [0], [0], [0, 0, 1, 0], [], []>} : vector<16x3xf32>, vector<256x3xf32>, vector<16x256xf32> -> vector<16x256xf32>
    %131 = arith.addf %124, %130 : vector<16x256xf32>
    %c1_145 = arith.constant 1 : index
    %c2_146 = arith.constant 2 : index
    %c1_147 = arith.constant 1 : index
    %c0_148 = arith.constant 0 : index
    %132 = vector.load %arg6[%c1_145, %c2_146, %c1_147, %c0_148] : memref<2x18x18x3xf32, #tpu.memory_space<vmem>>, vector<1x16x16x3xf32>
    %133 = vector.shape_cast %132 : vector<1x16x16x3xf32> to vector<16x16x3xf32>
    %134 = vector.shape_cast %133 : vector<16x16x3xf32> to vector<256x3xf32>
    %c7_149 = arith.constant 7 : index
    %c0_150 = arith.constant 0 : index
    %c0_151 = arith.constant 0 : index
    %135 = vector.load %arg1[%c7_149, %c0_150, %c0_151] : memref<9x16x3xf32, #tpu.memory_space<vmem>>, vector<1x16x3xf32>
    %136 = vector.shape_cast %135 : vector<1x16x3xf32> to vector<16x3xf32>
    %cst_152 = arith.constant dense<0.000000e+00> : vector<16x256xf32>
    %137 = tpu.matmul %136, %134, %cst_152 {dimension_numbers = #tpu.dot_dimension_numbers<[1], [1], [0], [0], [0, 0, 1, 0], [], []>} : vector<16x3xf32>, vector<256x3xf32>, vector<16x256xf32> -> vector<16x256xf32>
    %138 = arith.addf %131, %137 : vector<16x256xf32>
    %c1_153 = arith.constant 1 : index
    %c2_154 = arith.constant 2 : index
    %c2_155 = arith.constant 2 : index
    %c0_156 = arith.constant 0 : index
    %139 = vector.load %arg6[%c1_153, %c2_154, %c2_155, %c0_156] : memref<2x18x18x3xf32, #tpu.memory_space<vmem>>, vector<1x16x16x3xf32>
    %140 = vector.shape_cast %139 : vector<1x16x16x3xf32> to vector<16x16x3xf32>
    %141 = vector.shape_cast %140 : vector<16x16x3xf32> to vector<256x3xf32>
    %c8_157 = arith.constant 8 : index
    %c0_158 = arith.constant 0 : index
    %c0_159 = arith.constant 0 : index
    %142 = vector.load %arg1[%c8_157, %c0_158, %c0_159] : memref<9x16x3xf32, #tpu.memory_space<vmem>>, vector<1x16x3xf32>
    %143 = vector.shape_cast %142 : vector<1x16x3xf32> to vector<16x3xf32>
    %cst_160 = arith.constant dense<0.000000e+00> : vector<16x256xf32>
    %144 = tpu.matmul %143, %141, %cst_160 {dimension_numbers = #tpu.dot_dimension_numbers<[1], [1], [0], [0], [0, 0, 1, 0], [], []>} : vector<16x3xf32>, vector<256x3xf32>, vector<16x256xf32> -> vector<16x256xf32>
    %145 = arith.addf %138, %144 : vector<16x256xf32>
    %146 = vector.broadcast %12 : vector<16x1xf32> to vector<16x256xf32>
    %147 = arith.addf %145, %146 : vector<16x256xf32>
    %c1_161 = arith.constant 1 : index
    %c0_162 = arith.constant 0 : index
    %c0_163 = arith.constant 0 : index
    %148 = vector.load %arg4[%c1_161, %c0_162, %c0_163] : memref<2x16x256xf32, #tpu.memory_space<vmem>>, vector<1x16x256xf32>
    %149 = vector.shape_cast %148 : vector<1x16x256xf32> to vector<16x256xf32>
    %150 = vector.shape_cast %147 : vector<16x256xf32> to vector<1x16x256xf32>
    tpu.vector_store %arg4[%c1_161, %c0_162, %c0_163], %150 {strides = array<i32>} : memref<2x16x256xf32, #tpu.memory_space<vmem>>, vector<1x16x256xf32>,
    return
  }
}

</mosaic_0001>

<bundles_post_ra>
// kernel: model_forward.1
= control target key start
LH: loop header
LB: loop body
LE: loop exit
PB: predicated region body
PF: predicated region fallthrough
CT: control target
= control target key end

     0   :  { %vm26_vm0 = vcmask 23552   ;;  %vm29_vm1 = vcmask 17408   ;;  %v5536_v3 = vmov 0.0   ;;  %s7802_s0 = inlined_call_operand.vmem [shape: f32[2,16,16,3], index: 0, kind: input, shape index: {}]   ;;  %s7803_s1 = inlined_call_operand.vmem [shape: f32[9,16,3], index: 1, kind: input, shape index: {}]   ;;  %s7804_s2 = inlined_call_operand.vmem [shape: f32[16,1], index: 2, kind: input, shape index: {}]   ;;  %s7805_s3 = inlined_call_operand.vmem [shape: f32[1,3], index: 3, kind: input, shape index: {}]   ;;  %s7806_s4 = inlined_call_operand.vmem [shape: f32[2,16,256], index: 4, kind: output, shape index: {0}]   ;;  %s7807_s5 = inlined_call_operand.hbm [shape: f32[1,3], index: 5, kind: output, shape index: {1}]  }
   0x1   :  { %v5572_v0 = vld [vmem:[%s7802_s0 + $0xe8] sm:$0xff]  ;;  %v5577_v1 = vld [vmem:[%s7802_s0 + $0xe0] sm:$0xff]  ;;  %74 = vst.msk [vmem:[#allocation2 + $0x170] sm:$0xff] %vm26_vm0, %v5536_v3  ;;  %27 = vst.msk [vmem:[#allocation2] sm:$0xff] %vm26_vm0, %v5536_v3 }
   0x2   :  { %v5582_v2 = vld [vmem:[%s7802_s0 + $0x68] sm:$0xff]  ;;  %75 = vst.msk [vmem:[#allocation2 + $0x178] sm:$0x3] %vm29_vm1, %v5536_v3  ;;  %30 = vst.msk [vmem:[#allocation2 + $0x10] sm:$0x3] %vm29_vm1, %v5536_v3  ;;  %v148_v4 = vld [vmem:[%s7802_s0 + $0x60] sm:$0xff] }
   0x3   :  { %28 = vst.msk [vmem:[#allocation2 + $0x8] sm:$0xff] %vm26_vm0, %v5536_v3  ;;  %31 = vst.msk [vmem:[#allocation2 + $0x18] sm:$0xff] %vm26_vm0, %v5536_v3  ;;  %v163_v5 = vld [vmem:[%s7802_s0 + $0xd8] sm:$0xff]  ;;  %v162_v6 = vld [vmem:[%s7802_s0 + $0xd0] sm:$0xff] }
   0x4   :  { %32 = vst.msk [vmem:[#allocation2 + $0x20] sm:$0xff] %vm26_vm0, %v5536_v3  ;;  %34 = vst.msk [vmem:[#allocation2 + $0x30] sm:$0xff] %vm26_vm0, %v5536_v3  ;;  %v147_v7 = vld [vmem:[%s7802_s0 + $0x58] sm:$0xff]  ;;  %v146_v8 = vld [vmem:[%s7802_s0 + $0x50] sm:$0xff] }
   0x5   :  { %33 = vst.msk [vmem:[#allocation2 + $0x28] sm:$0x3] %vm29_vm1, %v5536_v3  ;;  %36 = vst.msk [vmem:[#allocation2 + $0x40] sm:$0x3] %vm29_vm1, %v5536_v3  ;;  %v161_v9 = vld [vmem:[%s7802_s0 + $0xc8] sm:$0xff]  ;;  %v160_v10 = vld [vmem:[%s7802_s0 + $0xc0] sm:$0xff] }
   0x6   :  { %35 = vst.msk [vmem:[#allocation2 + $0x38] sm:$0xff] %vm26_vm0, %v5536_v3  ;;  %37 = vst.msk [vmem:[#allocation2 + $0x48] sm:$0xff] %vm26_vm0, %v5536_v3  ;;  %v145_v11 = vld [vmem:[%s7802_s0 + $0x48] sm:$0xff]  ;;  %v144_v12 = vld [vmem:[%s7802_s0 + $0x40] sm:$0xff] }
   0x7   :  { %38 = vst.msk [vmem:[#allocation2 + $0x50] sm:$0xff] %vm26_vm0, %v5536_v3  ;;  %40 = vst.msk [vmem:[#allocation2 + $0x60] sm:$0xff] %vm26_vm0, %v5536_v3  ;;  %v159_v13 = vld [vmem:[%s7802_s0 + $0xb8] sm:$0xff]  ;;  %v158_v14 = vld [vmem:[%s7802_s0 + $0xb0] sm:$0xff] }
   0x8   :  { %39 = vst.msk [vmem:[#allocation2 + $0x58] sm:$0x3] %vm29_vm1, %v5536_v3  ;;  %42 = vst.msk [vmem:[#allocation2 + $0x70] sm:$0x3] %vm29_vm1, %v5536_v3  ;;  %v143_v15 = vld [vmem:[%s7802_s0 + $0x38] sm:$0xff]  ;;  %v142_v16 = vld [vmem:[%s7802_s0 + $0x30] sm:$0xff] }
   0x9   :  { %41 = vst.msk [vmem:[#allocation2 + $0x68] sm:$0xff] %vm26_vm0, %v5536_v3  ;;  %43 = vst.msk [vmem:[#allocation2 + $0x78] sm:$0xff] %vm26_vm0, %v5536_v3  ;;  %v157_v17 = vld [vmem:[%s7802_s0 + $0xa8] sm:$0xff]  ;;  %v156_v18 = vld [vmem:[%s7802_s0 + $0xa0] sm:$0xff] }
   0xa   :  { %44 = vst.msk [vmem:[#allocation2 + $0x80] sm:$0xff] %vm26_vm0, %v5536_v3  ;;  %46 = vst.msk [vmem:[#allocation2 + $0x90] sm:$0xff] %vm26_vm0, %v5536_v3  ;;  %v141_v19 = vld [vmem:[%s7802_s0 + $0x28] sm:$0xff]  ;;  %v140_v20 = vld [vmem:[%s7802_s0 + $0x20] sm:$0xff] }
   0xb   :  { %45 = vst.msk [vmem:[#allocation2 + $0x88] sm:$0x3] %vm29_vm1, %v5536_v3  ;;  %48 = vst.msk [vmem:[#allocation2 + $0xa0] sm:$0x3] %vm29_vm1, %v5536_v3  ;;  %v155_v21 = vld [vmem:[%s7802_s0 + $0x98] sm:$0xff]  ;;  %v154_v22 = vld [vmem:[%s7802_s0 + $0x90] sm:$0xff] }
   0xc   :  { %47 = vst.msk [vmem:[#allocation2 + $0x98] sm:$0xff] %vm26_vm0, %v5536_v3  ;;  %49 = vst.msk [vmem:[#allocation2 + $0xa8] sm:$0xff] %vm26_vm0, %v5536_v3  ;;  %v139_v23 = vld [vmem:[%s7802_s0 + $0x18] sm:$0xff]  ;;  %v138_v24 = vld [vmem:[%s7802_s0 + $0x10] sm:$0xff] }
   0xd   :  { %50 = vst.msk [vmem:[#allocation2 + $0xb0] sm:$0xff] %vm26_vm0, %v5536_v3  ;;  %52 = vst.msk [vmem:[#allocation2 + $0xc0] sm:$0xff] %vm26_vm0, %v5536_v3  ;;  %v153_v25 = vld [vmem:[%s7802_s0 + $0x88] sm:$0xff]  ;;  %v152_v26 = vld [vmem:[%s7802_s0 + $0x80] sm:$0xff] }
   0xe   :  { %51 = vst.msk [vmem:[#allocation2 + $0xb8] sm:$0x3] %vm29_vm1, %v5536_v3  ;;  %54 = vst.msk [vmem:[#allocation2 + $0xd0] sm:$0x3] %vm29_vm1, %v5536_v3  ;;  %v137_v27 = vld [vmem:[%s7802_s0 + $0x8] sm:$0xff]  ;;  %v136_v50 = vld [vmem:[%s7802_s0] sm:$0xff] }
   0xf   :  { %53 = vst.msk [vmem:[#allocation2 + $0xc8] sm:$0xff] %vm26_vm0, %v5536_v3  ;;  %55 = vst.msk [vmem:[#allocation2 + $0xd8] sm:$0xff] %vm26_vm0, %v5536_v3  ;;  %v151_v51 = vld [vmem:[%s7802_s0 + $0x78] sm:$0xff]  ;;  %v150_v52 = vld [vmem:[%s7802_s0 + $0x70] sm:$0xff] }
  0x10   :  { %56 = vst.msk [vmem:[#allocation2 + $0xe0] sm:$0xff] %vm26_vm0, %v5536_v3  ;;  %58 = vst.msk [vmem:[#allocation2 + $0xf0] sm:$0xff] %vm26_vm0, %v5536_v3  ;;  %v6013_v57 = vld [vmem:[%s7803_s1 + $0x10] sm:$0xff]  ;;  %v6018_v58 = vld [vmem:[%s7803_s1] sm:$0xff] }
  0x11   :  { %57 = vst.msk [vmem:[#allocation2 + $0xe8] sm:$0x3] %vm29_vm1, %v5536_v3  ;;  %60 = vst.msk [vmem:[#allocation2 + $0x100] sm:$0x3] %vm29_vm1, %v5536_v3  ;;  %4894 = vmatprep.mubr.msk.f32.mxu0 %vm26_vm0, %v6013_v57  ;;  %4930 = vmatprep.mubr.msk.f32.mxu1 %vm26_vm0, %v6018_v58  ;;  %v166_v59 = vld [vmem:[%s7802_s0 + $0xf0] sm:$0xff]  ;;  %v167_v60 = vld [vmem:[%s7802_s0 + $0xf8] sm:$0xff] }
  0x12   :  { %59 = vst.msk [vmem:[#allocation2 + $0xf8] sm:$0xff] %vm26_vm0, %v5536_v3  ;;  %61 = vst.msk [vmem:[#allocation2 + $0x108] sm:$0xff] %vm26_vm0, %v5536_v3 }
  0x13   :  { %62 = vst.msk [vmem:[#allocation2 + $0x110] sm:$0xff] %vm26_vm0, %v5536_v3  ;;  %64 = vst.msk [vmem:[#allocation2 + $0x120] sm:$0xff] %vm26_vm0, %v5536_v3 }
  0x14   :  { %63 = vst.msk [vmem:[#allocation2 + $0x118] sm:$0x3] %vm29_vm1, %v5536_v3  ;;  %66 = vst.msk [vmem:[#allocation2 + $0x130] sm:$0x3] %vm29_vm1, %v5536_v3 }
  0x15   :  { %65 = vst.msk [vmem:[#allocation2 + $0x128] sm:$0xff] %vm26_vm0, %v5536_v3  ;;  %67 = vst.msk [vmem:[#allocation2 + $0x138] sm:$0xff] %vm26_vm0, %v5536_v3 }
  0x16   :  { %68 = vst.msk [vmem:[#allocation2 + $0x140] sm:$0xff] %vm26_vm0, %v5536_v3  ;;  %70 = vst.msk [vmem:[#allocation2 + $0x150] sm:$0xff] %vm26_vm0, %v5536_v3 }
  0x17   :  { %69 = vst.msk [vmem:[#allocation2 + $0x148] sm:$0x3] %vm29_vm1, %v5536_v3  ;;  %72 = vst.msk [vmem:[#allocation2 + $0x160] sm:$0x3] %vm29_vm1, %v5536_v3 }
  0x18   :  { %71 = vst.msk [vmem:[#allocation2 + $0x158] sm:$0xff] %vm26_vm0, %v5536_v3  ;;  %73 = vst.msk [vmem:[#allocation2 + $0x168] sm:$0xff] %vm26_vm0, %v5536_v3 }
  0x19   :  { %76 = vst.msk [vmem:[#allocation2 + $0x180] sm:$0xff] %vm26_vm0, %v5536_v3  ;;  %77 = vst.msk [vmem:[#allocation2 + $0x188] sm:$0xff] %vm26_vm0, %v5536_v3 }
  0x1a   :  { %78 = vst.msk [vmem:[#allocation2 + $0x190] sm:$0x3] %vm29_vm1, %v5536_v3  ;;  %81 = vst.msk [vmem:[#allocation2 + $0x1a8] sm:$0x3] %vm29_vm1, %v5536_v3 }
  0x1b   :  { %79 = vst.msk [vmem:[#allocation2 + $0x198] sm:$0xff] %vm26_vm0, %v5536_v3  ;;  %80 = vst.msk [vmem:[#allocation2 + $0x1a0] sm:$0xff] %vm26_vm0, %v5536_v3 }
  0x1c   :  { %82 = vst.msk [vmem:[#allocation2 + $0x1b0] sm:$0xff] %vm26_vm0, %v5536_v3  ;;  %83 = vst.msk [vmem:[#allocation2 + $0x1b8] sm:$0xff] %vm26_vm0, %v5536_v3 }
  0x1d   :  { %84 = vst.msk [vmem:[#allocation2 + $0x1c0] sm:$0x3] %vm29_vm1, %v5536_v3  ;;  %87 = vst.msk [vmem:[#allocation2 + $0x1d8] sm:$0x3] %vm29_vm1, %v5536_v3 }
  0x1e   :  { %85 = vst.msk [vmem:[#allocation2 + $0x1c8] sm:$0xff] %vm26_vm0, %v5536_v3  ;;  %86 = vst.msk [vmem:[#allocation2 + $0x1d0] sm:$0xff] %vm26_vm0, %v5536_v3 }
  0x1f   :  { %88 = vst.msk [vmem:[#allocation2 + $0x1e0] sm:$0xff] %vm26_vm0, %v5536_v3  ;;  %89 = vst.msk [vmem:[#allocation2 + $0x1e8] sm:$0xff] %vm26_vm0, %v5536_v3 }
  0x20   :  { %90 = vst.msk [vmem:[#allocation2 + $0x1f0] sm:$0x3] %vm29_vm1, %v5536_v3  ;;  %93 = vst.msk [vmem:[#allocation2 + $0x208] sm:$0x3] %vm29_vm1, %v5536_v3 }
  0x21   :  { %91 = vst.msk [vmem:[#allocation2 + $0x1f8] sm:$0xff] %vm26_vm0, %v5536_v3  ;;  %92 = vst.msk [vmem:[#allocation2 + $0x200] sm:$0xff] %vm26_vm0, %v5536_v3 }
  0x22   :  { %94 = vst.msk [vmem:[#allocation2 + $0x210] sm:$0xff] %vm26_vm0, %v5536_v3  ;;  %95 = vst.msk [vmem:[#allocation2 + $0x218] sm:$0xff] %vm26_vm0, %v5536_v3 }
  0x23   :  { %96 = vst.msk [vmem:[#allocation2 + $0x220] sm:$0x3] %vm29_vm1, %v5536_v3  ;;  %99 = vst.msk [vmem:[#allocation2 + $0x238] sm:$0x3] %vm29_vm1, %v5536_v3 }
  0x24   :  { %97 = vst.msk [vmem:[#allocation2 + $0x228] sm:$0xff] %vm26_vm0, %v5536_v3  ;;  %98 = vst.msk [vmem:[#allocation2 + $0x230] sm:$0xff] %vm26_vm0, %v5536_v3 }
  0x25   :  { %100 = vst.msk [vmem:[#allocation2 + $0x240] sm:$0xff] %vm26_vm0, %v5536_v3  ;;  %101 = vst.msk [vmem:[#allocation2 + $0x248] sm:$0xff] %vm26_vm0, %v5536_v3 }
  0x26   :  { %102 = vst.msk [vmem:[#allocation2 + $0x250] sm:$0x3] %vm29_vm1, %v5536_v3  ;;  %105 = vst.msk [vmem:[#allocation2 + $0x268] sm:$0x3] %vm29_vm1, %v5536_v3 }
  0x27   :  { %103 = vst.msk [vmem:[#allocation2 + $0x258] sm:$0xff] %vm26_vm0, %v5536_v3  ;;  %104 = vst.msk [vmem:[#allocation2 + $0x260] sm:$0xff] %vm26_vm0, %v5536_v3 }
  0x28   :  { %106 = vst.msk [vmem:[#allocation2 + $0x270] sm:$0xff] %vm26_vm0, %v5536_v3  ;;  %107 = vst.msk [vmem:[#allocation2 + $0x278] sm:$0xff] %vm26_vm0, %v5536_v3 }
  0x29   :  { %108 = vst.msk [vmem:[#allocation2 + $0x280] sm:$0x3] %vm29_vm1, %v5536_v3  ;;  %111 = vst.msk [vmem:[#allocation2 + $0x298] sm:$0x3] %vm29_vm1, %v5536_v3 }
  0x2a   :  { %109 = vst.msk [vmem:[#allocation2 + $0x288] sm:$0xff] %vm26_vm0, %v5536_v3  ;;  %110 = vst.msk [vmem:[#allocation2 + $0x290] sm:$0xff] %vm26_vm0, %v5536_v3 }
  0x2b   :  { %112 = vst.msk [vmem:[#allocation2 + $0x2a0] sm:$0xff] %vm26_vm0, %v5536_v3  ;;  %113 = vst.msk [vmem:[#allocation2 + $0x2a8] sm:$0xff] %vm26_vm0, %v5536_v3 }
  0x2c   :  { %114 = vst.msk [vmem:[#allocation2 + $0x2b0] sm:$0x3] %vm29_vm1, %v5536_v3  ;;  %117 = vst.msk [vmem:[#allocation2 + $0x2c8] sm:$0x3] %vm29_vm1, %v5536_v3 }
  0x2d   :  { %115 = vst.msk [vmem:[#allocation2 + $0x2b8] sm:$0xff] %vm26_vm0, %v5536_v3  ;;  %116 = vst.msk [vmem:[#allocation2 + $0x2c0] sm:$0xff] %vm26_vm0, %v5536_v3 }
  0x2e   :  { %118 = vst.msk [vmem:[#allocation2 + $0x2d0] sm:$0xff] %vm26_vm0, %v5536_v3  ;;  %119 = vst.msk [vmem:[#allocation2 + $0x2d8] sm:$0xff] %vm26_vm0, %v5536_v3 }
  0x2f   :  { %120 = vst.msk [vmem:[#allocation2 + $0x2e0] sm:$0x3] %vm29_vm1, %v5536_v3  ;;  %123 = vst.msk [vmem:[#allocation2 + $0x2f8] sm:$0x3] %vm29_vm1, %v5536_v3 }
  0x30   :  { %121 = vst.msk [vmem:[#allocation2 + $0x2e8] sm:$0xff] %vm26_vm0, %v5536_v3  ;;  %122 = vst.msk [vmem:[#allocation2 + $0x2f0] sm:$0xff] %vm26_vm0, %v5536_v3 }
  0x31   :  { %124 = vst.msk [vmem:[#allocation2 + $0x300] sm:$0xff] %vm26_vm0, %v5536_v3  ;;  %125 = vst.msk [vmem:[#allocation2 + $0x308] sm:$0xff] %vm26_vm0, %v5536_v3 }
  0x32   :  { %126 = vst.msk [vmem:[#allocation2 + $0x310] sm:$0x3] %vm29_vm1, %v5536_v3  ;;  %129 = vst.msk [vmem:[#allocation2 + $0x328] sm:$0x3] %vm29_vm1, %v5536_v3 }
  0x33   :  { %127 = vst.msk [vmem:[#allocation2 + $0x318] sm:$0xff] %vm26_vm0, %v5536_v3  ;;  %128 = vst.msk [vmem:[#allocation2 + $0x320] sm:$0xff] %vm26_vm0, %v5536_v3 }
  0x34   :  { %130 = vst.msk [vmem:[#allocation2 + $0x330] sm:$0xff] %vm26_vm0, %v5536_v3  ;;  %131 = vst.msk [vmem:[#allocation2 + $0x338] sm:$0xff] %vm26_vm0, %v5536_v3 }
  0x35   :  { %132 = vst.msk [vmem:[#allocation2 + $0x340] sm:$0x3] %vm29_vm1, %v5536_v3  ;;  %135 = vst.msk [vmem:[#allocation2 + $0x358] sm:$0x3] %vm29_vm1, %v5536_v3 }
  0x36   :  { %133 = vst.msk [vmem:[#allocation2 + $0x348] sm:$0xff] %vm26_vm0, %v5536_v3  ;;  %134 = vst.msk [vmem:[#allocation2 + $0x350] sm:$0xff] %vm26_vm0, %v5536_v3 }
  0x37   :  { %230 = vst.msk [vmem:[#allocation2 + $0x171] sm:$0xff] %vm26_vm0, %v5572_v0  ;;  %229 = vst.msk [vmem:[#allocation2 + $0x169] sm:$0xff] %vm26_vm0, %v5577_v1 }
  0x38   :  { %214 = vst.msk [vmem:[#allocation2 + $0xb1] sm:$0xff] %vm26_vm0, %v5582_v2  ;;  %213 = vst.msk [vmem:[#allocation2 + $0xa9] sm:$0xff] %vm26_vm0, %v148_v4 }
  0x39   :  { %228 = vst.msk [vmem:[#allocation2 + $0x159] sm:$0xff] %vm26_vm0, %v163_v5  ;;  %227 = vst.msk [vmem:[#allocation2 + $0x151] sm:$0xff] %vm26_vm0, %v162_v6 }
  0x3a   :  { %212 = vst.msk [vmem:[#allocation2 + $0x99] sm:$0xff] %vm26_vm0, %v147_v7  ;;  %211 = vst.msk [vmem:[#allocation2 + $0x91] sm:$0xff] %vm26_vm0, %v146_v8 }
  0x3b   :  { %226 = vst.msk [vmem:[#allocation2 + $0x141] sm:$0xff] %vm26_vm0, %v161_v9  ;;  %225 = vst.msk [vmem:[#allocation2 + $0x139] sm:$0xff] %vm26_vm0, %v160_v10 }
  0x3c   :  { %210 = vst.msk [vmem:[#allocation2 + $0x81] sm:$0xff] %vm26_vm0, %v145_v11  ;;  %209 = vst.msk [vmem:[#allocation2 + $0x79] sm:$0xff] %vm26_vm0, %v144_v12 }
  0x3d   :  { %224 = vst.msk [vmem:[#allocation2 + $0x129] sm:$0xff] %vm26_vm0, %v159_v13  ;;  %223 = vst.msk [vmem:[#allocation2 + $0x121] sm:$0xff] %vm26_vm0, %v158_v14 }
  0x3e   :  { %208 = vst.msk [vmem:[#allocation2 + $0x69] sm:$0xff] %vm26_vm0, %v143_v15  ;;  %207 = vst.msk [vmem:[#allocation2 + $0x61] sm:$0xff] %vm26_vm0, %v142_v16  ;;  %v5899_v28 = vld [vmem:[#allocation2 + $0x171] sm:$0xff]  ;;  %v5914_v32 = vld [vmem:[#allocation2 + $0x169] sm:$0xff] }
  0x3f   :  { %222 = vst.msk [vmem:[#allocation2 + $0x111] sm:$0xff] %vm26_vm0, %v157_v17  ;;  %221 = vst.msk [vmem:[#allocation2 + $0x109] sm:$0xff] %vm26_vm0, %v156_v18  ;;  %v5901_v29 = vld [vmem:[#allocation2 + $0x170] sm:$0xff]  ;;  %4862 = vmatprep.subr.msk.mxu0 %vm26_vm0, %v5899_v28  ;;  %v5916_v33 = vld [vmem:[#allocation2 + $0x168] sm:$0xff] }
  0x40   :  { %206 = vst.msk [vmem:[#allocation2 + $0x51] sm:$0xff] %vm26_vm0, %v141_v19  ;;  %205 = vst.msk [vmem:[#allocation2 + $0x49] sm:$0xff] %vm26_vm0, %v140_v20  ;;  %v5903_v30 = vld [vmem:[#allocation2 + $0xb1] sm:$0xff]  ;;  %4898 = vmatprep.subr.msk.mxu1 %vm26_vm0, %v5901_v29  ;;  %v5926_v34 = vld [vmem:[#allocation2 + $0xa9] sm:$0xff] }
  0x41   :  { %220 = vst.msk [vmem:[#allocation2 + $0xf9] sm:$0xff] %vm26_vm0, %v155_v21  ;;  %219 = vst.msk [vmem:[#allocation2 + $0xf1] sm:$0xff] %vm26_vm0, %v154_v22  ;;  %v5912_v31 = vld [vmem:[#allocation2 + $0xb0] sm:$0xff]  ;;  %4863 = vmatpush3.xpose.msk.msra.mxu0 %vm26_vm0, %v5903_v30  ;;  %v5928_v35 = vld [vmem:[#allocation2 + $0xa8] sm:$0xff] }
  0x42   :  { %204 = vst.msk [vmem:[#allocation2 + $0x39] sm:$0xff] %vm26_vm0, %v139_v23  ;;  %203 = vst.msk [vmem:[#allocation2 + $0x31] sm:$0xff] %vm26_vm0, %v138_v24  ;;  %4899 = vmatpush3.xpose.msk.msra.mxu1 %vm26_vm0, %v5912_v31  ;;  %4864 = vmatprep.subr.msk.mxu0 %vm26_vm0, %v5914_v32  ;;  %v5930_v36 = vld [vmem:[#allocation2 + $0x159] sm:$0xff]  ;;  %v5946_v40 = vld [vmem:[#allocation2 + $0x151] sm:$0xff] }
  0x43   :  { %7885 = vst [vmem:[#allocation6_spill] sm:$0xff] %v5901_v29  ;;  %218 = vst.msk [vmem:[#allocation2 + $0xe1] sm:$0xff] %vm26_vm0, %v153_v25  ;;  %4900 = vmatprep.subr.msk.mxu1 %vm26_vm0, %v5916_v33  ;;  %v5932_v37 = vld [vmem:[#allocation2 + $0x158] sm:$0xff]  ;;  %v5948_v41 = vld [vmem:[#allocation2 + $0x150] sm:$0xff] }
  0x44   :  { %217 = vst.msk [vmem:[#allocation2 + $0xd9] sm:$0xff] %vm26_vm0, %v152_v26  ;;  %202 = vst.msk [vmem:[#allocation2 + $0x21] sm:$0xff] %vm26_vm0, %v137_v27  ;;  %v5942_v38 = vld [vmem:[#allocation2 + $0x99] sm:$0xff]  ;;  %v5958_v42 = vld [vmem:[#allocation2 + $0x91] sm:$0xff] }
  0x45   :  { %7886 = vst [vmem:[#allocation7_spill] sm:$0xff] %v5912_v31  ;;  %7887 = vst [vmem:[#allocation8_spill] sm:$0xff] %v5916_v33  ;;  %4865 = vmatpush3.xpose.msk.msra.mxu0 %vm26_vm0, %v5926_v34  ;;  %v5944_v39 = vld [vmem:[#allocation2 + $0x98] sm:$0xff]  ;;  %v5960_v43 = vld [vmem:[#allocation2 + $0x90] sm:$0xff] }
  0x46   :  { %7888 = vst [vmem:[#allocation9_spill] sm:$0xff] %v5928_v35  ;;  %7889 = vst [vmem:[#allocation10_spill] sm:$0xff] %v5932_v37  ;;  %4901 = vmatpush3.xpose.msk.msra.mxu1 %vm26_vm0, %v5928_v35  ;;  %4866 = vmatprep.subr.msk.mxu0 %vm26_vm0, %v5930_v36  ;;  %v5962_v44 = vld [vmem:[#allocation2 + $0x141] sm:$0xff]  ;;  %v5978_v48 = vld [vmem:[#allocation2 + $0x139] sm:$0xff] }
  0x47   :  { %4902 = vmatprep.subr.msk.mxu1 %vm26_vm0, %v5932_v37  ;;  %7890 = vst [vmem:[#allocation11_spill] sm:$0xff] %v5944_v39  ;;  %7891 = vst [vmem:[#allocation12_spill] sm:$0xff] %v5948_v41  ;;  %v5964_v45 = vld [vmem:[#allocation2 + $0x140] sm:$0xff]  ;;  %v5980_v49 = vld [vmem:[#allocation2 + $0x138] sm:$0xff] }
  0x48   :  { %7892 = vst [vmem:[#allocation13_spill] sm:$0xff] %v5960_v43  ;;  %7893 = vst [vmem:[#allocation14_spill] sm:$0xff] %v5964_v45  ;;  %v5974_v46 = vld [vmem:[#allocation2 + $0x81] sm:$0xff]  ;;  %v6000_v53 = vld [vmem:[#allocation2 + $0x79] sm:$0xff] }
  0x49   :  { %4867 = vmatpush3.xpose.msk.msra.mxu0 %vm26_vm0, %v5942_v38  ;;  %v5976_v47 = vld [vmem:[#allocation2 + $0x80] sm:$0xff]  ;;  %7895 = vst [vmem:[#allocation16_spill] sm:$0xff] %v5980_v49  ;;  %201 = vst.msk [vmem:[#allocation2 + $0x19] sm:$0xff] %vm26_vm0, %v136_v50  ;;  %v6002_v54 = vld [vmem:[#allocation2 + $0x78] sm:$0xff] }
  0x4a   :  { %4903 = vmatpush3.xpose.msk.msra.mxu1 %vm26_vm0, %v5944_v39  ;;  %4868 = vmatprep.subr.msk.mxu0 %vm26_vm0, %v5946_v40  ;;  %7894 = vst [vmem:[#allocation15_spill] sm:$0xff] %v5976_v47  ;;  %7896 = vst [vmem:[#allocation17_spill] sm:$0xff] %v6002_v54  ;;  %v6004_v55 = vld [vmem:[#allocation2 + $0x129] sm:$0xff]  ;;  %v6044_v63 = vld [vmem:[#allocation2 + $0x121] sm:$0xff] }
  0x4b   :  { %4904 = vmatprep.subr.msk.mxu1 %vm26_vm0, %v5948_v41  ;;  %216 = vst.msk [vmem:[#allocation2 + $0xc9] sm:$0xff] %vm26_vm0, %v151_v51  ;;  %215 = vst.msk [vmem:[#allocation2 + $0xc1] sm:$0xff] %vm26_vm0, %v150_v52  ;;  %v6008_v56 = vld [vmem:[#allocation2 + $0x128] sm:$0xff]  ;;  %v6046_v0 = vld [vmem:[#allocation2 + $0x120] sm:$0xff] }
  0x4c   :  { %7897 = vst [vmem:[#allocation18_spill] sm:$0xff] %v6008_v56  ;;  %231 = vst.msk [vmem:[#allocation2 + $0x181] sm:$0xff] %vm26_vm0, %v166_v59  ;;  %v6040_v61 = vld [vmem:[#allocation2 + $0x69] sm:$0xff]  ;;  %v6056_v1 = vld [vmem:[#allocation2 + $0x61] sm:$0xff] }
  0x4d   :  { %4869 = vmatpush3.xpose.msk.msra.mxu0 %vm26_vm0, %v5958_v42  ;;  %232 = vst.msk [vmem:[#allocation2 + $0x189] sm:$0xff] %vm26_vm0, %v167_v60  ;;  %v6042_v62 = vld [vmem:[#allocation2 + $0x68] sm:$0xff]  ;;  %7899 = vst [vmem:[#allocation20_spill] sm:$0xff] %v6046_v0  ;;  %v6058_v2 = vld [vmem:[#allocation2 + $0x60] sm:$0xff] }
  0x4e   :  { %4905 = vmatpush3.xpose.msk.msra.mxu1 %vm26_vm0, %v5960_v43  ;;  %4870 = vmatprep.subr.msk.mxu0 %vm26_vm0, %v5962_v44  ;;  %7898 = vst [vmem:[#allocation19_spill] sm:$0xff] %v6042_v62  ;;  %7900 = vst [vmem:[#allocation21_spill] sm:$0xff] %v6058_v2  ;;  %v6060_v3 = vld [vmem:[#allocation2 + $0x111] sm:$0xff]  ;;  %v6076_v7 = vld [vmem:[#allocation2 + $0x109] sm:$0xff] }
  0x4f   :  { %4906 = vmatprep.subr.msk.mxu1 %vm26_vm0, %v5964_v45  ;;  %v6062_v4 = vld [vmem:[#allocation2 + $0x110] sm:$0xff]  ;;  %v6078_v8 = vld [vmem:[#allocation2 + $0x108] sm:$0xff]  ;;  %v6092_v11 = vld [vmem:[#allocation2 + $0xf9] sm:$0xff] }
  0x50   :  { %7901 = vst [vmem:[#allocation22_spill] sm:$0xff] %v6062_v4  ;;  %v6072_v5 = vld [vmem:[#allocation2 + $0x51] sm:$0xff]  ;;  %7903 = vst [vmem:[#allocation24_spill] sm:$0xff] %v6078_v8  ;;  %v6088_v9 = vld [vmem:[#allocation2 + $0x49] sm:$0xff] }
  0x51   :  { %4871 = vmatpush3.xpose.msk.msra.mxu0 %vm26_vm0, %v5974_v46  ;;  %v6074_v6 = vld [vmem:[#allocation2 + $0x50] sm:$0xff]  ;;  %v6090_v10 = vld [vmem:[#allocation2 + $0x48] sm:$0xff]  ;;  %v6094_v12 = vld [vmem:[#allocation2 + $0xf8] sm:$0xff] }
  0x52   :  { %4907 = vmatpush3.xpose.msk.msra.mxu1 %vm26_vm0, %v5976_v47  ;;  %4872 = vmatprep.subr.msk.mxu0 %vm26_vm0, %v5978_v48  ;;  %7902 = vst [vmem:[#allocation23_spill] sm:$0xff] %v6074_v6  ;;  %7904 = vst [vmem:[#allocation25_spill] sm:$0xff] %v6090_v10 }
  0x53   :  { %4908 = vmatprep.subr.msk.mxu1 %vm26_vm0, %v5980_v49  ;;  %7905 = vst [vmem:[#allocation26_spill] sm:$0xff] %v6094_v12 }
  0x55   :  { %4873 = vmatpush3.xpose.msk.msra.mxu0 %vm26_vm0, %v6000_v53 }
  0x56   :  { %4909 = vmatpush3.xpose.msk.msra.mxu1 %vm26_vm0, %v6002_v54  ;;  %4874 = vmatprep.subr.msk.mxu0 %vm26_vm0, %v6004_v55 }
  0x57   :  { %4910 = vmatprep.subr.msk.mxu1 %vm26_vm0, %v6008_v56 }
  0x59   :  { %4875 = vmatpush3.xpose.msk.msra.mxu0 %vm26_vm0, %v6040_v61 }
  0x5a   :  { %4911 = vmatpush3.xpose.msk.msra.mxu1 %vm26_vm0, %v6042_v62  ;;  %4876 = vmatprep.subr.msk.mxu0 %vm26_vm0, %v6044_v63 }
  0x5b   :  { %4912 = vmatprep.subr.msk.mxu1 %vm26_vm0, %v6046_v0 }
  0x5d   :  { %4877 = vmatpush3.xpose.msk.msra.mxu0 %vm26_vm0, %v6056_v1 }
  0x5e   :  { %4913 = vmatpush3.xpose.msk.msra.mxu1 %vm26_vm0, %v6058_v2  ;;  %4878 = vmatprep.subr.msk.mxu0 %vm26_vm0, %v6060_v3 }
  0x5f   :  { %4914 = vmatprep.subr.msk.mxu1 %vm26_vm0, %v6062_v4 }
  0x61   :  { %4879 = vmatpush3.xpose.msk.msra.mxu0 %vm26_vm0, %v6072_v5 }
  0x62   :  { %4915 = vmatpush3.xpose.msk.msra.mxu1 %vm26_vm0, %v6074_v6  ;;  %4880 = vmatprep.subr.msk.mxu0 %vm26_vm0, %v6076_v7 }
  0x63   :  { %4916 = vmatprep.subr.msk.mxu1 %vm26_vm0, %v6078_v8 }
  0x65   :  { %4881 = vmatpush3.xpose.msk.msra.mxu0 %vm26_vm0, %v6088_v9 }
  0x66   :  { %4917 = vmatpush3.xpose.msk.msra.mxu1 %vm26_vm0, %v6090_v10 }
  0x67   :  { %11 = vsyncpa [#allocation4], 0  ;;  %4882 = vmatprep.subr.msk.mxu0 %vm26_vm0, %v6092_v11  ;;  %4918 = vmatprep.subr.msk.mxu1 %vm26_vm0, %v6094_v12  ;;  %v6104_v13 = vld [vmem:[#allocation2 + $0x39] sm:$0xff]  ;;  %v6108_v15 = vld [vmem:[#allocation2 + $0xf1] sm:$0xff]  ;;  %vm24_vm2 = vcmask 16384  }
  0x68   :  { %v6106_v14 = vld [vmem:[#allocation2 + $0x38] sm:$0xff]  ;;  %v6110_v16 = vld [vmem:[#allocation2 + $0xf0] sm:$0xff]  ;;  %v6124_v19 = vld [vmem:[#allocation2 + $0xe1] sm:$0xff] }
  0x69   :  { %7906 = vst [vmem:[#allocation27_spill] sm:$0xff] %v6106_v14  ;;  %7907 = vst [vmem:[#allocation28_spill] sm:$0xff] %v6110_v16  ;;  %4883 = vmatpush3.xpose.msk.msra.mxu0 %vm26_vm0, %v6104_v13  ;;  %v6120_v17 = vld [vmem:[#allocation2 + $0x31] sm:$0xff]  ;;  %v6126_v20 = vld [vmem:[#allocation2 + $0xe0] sm:$0xff] }
  0x6a   :  { %4919 = vmatpush3.xpose.msk.msra.mxu1 %vm26_vm0, %v6106_v14  ;;  %4884 = vmatprep.subr.msk.mxu0 %vm26_vm0, %v6108_v15  ;;  %7908 = vst [vmem:[#allocation29_spill] sm:$0xff] %v6120_v17  ;;  %v6122_v18 = vld [vmem:[#allocation2 + $0x30] sm:$0xff]  ;;  %7910 = vst [vmem:[#allocation31_spill] sm:$0xff] %v6124_v19  ;;  %v6136_v21 = vld [vmem:[#allocation2 + $0x21] sm:$0xff] }
  0x6b   :  { %4920 = vmatprep.subr.msk.mxu1 %vm26_vm0, %v6110_v16  ;;  %7909 = vst [vmem:[#allocation30_spill] sm:$0xff] %v6122_v18  ;;  %7911 = vst [vmem:[#allocation32_spill] sm:$0xff] %v6126_v20  ;;  %v6138_v22 = vld [vmem:[#allocation2 + $0x20] sm:$0xff]  ;;  %v6142_v24 = vld [vmem:[#allocation2 + $0xd8] sm:$0xff] }
  0x6c   :  { %7912 = vst [vmem:[#allocation33_spill] sm:$0xff] %v6136_v21  ;;  %v6140_v23 = vld [vmem:[#allocation2 + $0xd9] sm:$0xff]  ;;  %7914 = vst [vmem:[#allocation35_spill] sm:$0xff] %v6142_v24  ;;  %v6156_v27 = vld [vmem:[#allocation2 + $0xc9] sm:$0xff] }
  0x6d   :  { %4885 = vmatpush3.xpose.msk.msra.mxu0 %vm26_vm0, %v6120_v17  ;;  %7913 = vst [vmem:[#allocation34_spill] sm:$0xff] %v6140_v23  ;;  %v6152_v25 = vld [vmem:[#allocation2 + $0x19] sm:$0xff]  ;;  %v6158_v50 = vld [vmem:[#allocation2 + $0xc8] sm:$0xff] }
  0x6e   :  { %4921 = vmatpush3.xpose.msk.msra.mxu1 %vm26_vm0, %v6122_v18  ;;  %4886 = vmatprep.subr.msk.mxu0 %vm26_vm0, %v6124_v19  ;;  %7915 = vst [vmem:[#allocation36_spill] sm:$0xff] %v6152_v25  ;;  %v6154_v26 = vld [vmem:[#allocation2 + $0x18] sm:$0xff]  ;;  %7916 = vst [vmem:[#allocation37_spill] sm:$0xff] %v6158_v50  ;;  %v302_v51 = vld [vmem:[#allocation2 + $0x9] sm:$0xff] }
  0x6f   :  { %4922 = vmatprep.subr.msk.mxu1 %vm26_vm0, %v6126_v20  ;;  %v268_v52 = vld [vmem:[#allocation2 + $0x8] sm:$0xff]  ;;  %v6170_v60 = vld [vmem:[#allocation2 + $0xc0] sm:$0xff] }
  0x70   :  { %v6168_v59 = vld [vmem:[#allocation2 + $0xc1] sm:$0xff]  ;;  %7917 = vst [vmem:[#allocation38_spill] sm:$0xff] %v6170_v60 }
  0x71   :  { %4887 = vmatpush3.xpose.msk.msra.mxu0 %vm26_vm0, %v6136_v21  ;;  %v6178_v21 = vld [vmem:[#allocation2 + $0x172] sm:$0xff]  ;;  %v6180_v19 = vld [vmem:[#allocation2 + $0x188] sm:$0xff]  ;;  %v6192_v17 = vld [vmem:[#allocation2 + $0x180] sm:$0xff] }
  0x72   :  { %4923 = vmatpush3.xpose.msk.msra.mxu1 %vm26_vm0, %v6138_v22  ;;  %4888 = vmatprep.subr.msk.mxu0 %vm26_vm0, %v6140_v23  ;;  %v267_v23 = vld [vmem:[#allocation2] sm:$0xff]  ;;  %7918 = vst [vmem:[#allocation39_spill] sm:$0xff] %v6180_v19  ;;  %7919 = vst [vmem:[#allocation40_spill] sm:$0xff] %v6192_v17 }
  0x73   :  { %4924 = vmatprep.subr.msk.mxu1 %vm26_vm0, %v6142_v24 }
  0x75   :  { %4889 = vmatpush3.xpose.msk.msra.mxu0 %vm26_vm0, %v6152_v25  ;;  %v301_v25 = vld [vmem:[#allocation2 + $0x1] sm:$0xff] }
  0x76   :  { %4925 = vmatpush3.xpose.msk.msra.mxu1 %vm26_vm0, %v6154_v26  ;;  %4890 = vmatprep.subr.msk.mxu0 %vm26_vm0, %v6156_v27 }
  0x77   :  { %4926 = vmatprep.subr.msk.mxu1 %vm26_vm0, %v6158_v50 }
  0x79   :  { %4891 = vmatpush3.xpose.msk.msra.mxu0 %vm26_vm0, %v302_v51  ;;  %v6188_v51 = vld [vmem:[#allocation2 + $0xb2] sm:$0xff] }
  0x7a   :  { %4927 = vmatpush3.xpose.msk.msra.mxu1 %vm26_vm0, %v268_v52  ;;  %4892 = vmatprep.subr.msk.mxu0 %vm26_vm0, %v6168_v59  ;;  %v6190_v52 = vld [vmem:[#allocation2 + $0x16a] sm:$0xff] }
  0x7b   :  { %4928 = vmatprep.subr.msk.mxu1 %vm26_vm0, %v6170_v60 }
  0x7d   :  { %4893 = vmatpush3.xpose.msk.msra.mxu0 %vm26_vm0, %v301_v25  ;;  %v300_v25 = vld [vmem:[%s7803_s1 + $0x8] sm:$0xff] }
  0x7e   :  { %4929 = vmatpush3.xpose.msk.msra.mxu1 %vm26_vm0, %v267_v23  ;;  %4934 = vmatprep.subr.msk.mxu0 %vm26_vm0, %v6178_v21  ;;  %v4215_v23 = vld [vmem:[%s7803_s1 + $0x18] sm:$0xff] }
  0x7f   :  { %4970 = vmatprep.subr.msk.mxu1 %vm26_vm0, %v6180_v19  ;;  %v6268_v19 = vld [vmem:[#allocation2 + $0x13a] sm:$0xff] }
  0x80   :  { %4895 = vmatmul.mubr.msk.f32.vlgmr.msra.gmra.mxu0 %vm26_vm0, %v6013_v57  ;;  %v6212_v57 = vld [vmem:[#allocation2 + $0xaa] sm:$0xff] }
  0x81   :  { %4931 = vmatmul.mubr.msk.f32.vlgmr.msra.gmra.mxu1 %vm26_vm0, %v6018_v58  ;;  %4935 = vmatpush3.xpose.msk.msra.mxu0 %vm26_vm0, %v6188_v51  ;;  %v6214_v58 = vld [vmem:[#allocation2 + $0x15a] sm:$0xff] }
  0x82   :  { %4971 = vmatpush3.xpose.msk.msra.mxu1 %vm26_vm0, %v6158_v50  ;;  %4936 = vmatprep.subr.msk.mxu0 %vm26_vm0, %v6190_v52  ;;  %v6223_v50 = vld [vmem:[%s7803_s1 + $0x20] sm:$0xff] }
  0x83   :  { %4972 = vmatprep.subr.msk.mxu1 %vm26_vm0, %v6192_v17  ;;  %4896 = vmatprep.mubr.msk.f32.mxu0 %vm26_vm0, %v4215_v23  ;;  %v6228_v17 = vld [vmem:[%s7803_s1 + $0x30] sm:$0xff] }
  0x84   :  { %4932 = vmatprep.mubr.msk.f32.mxu1 %vm26_vm0, %v300_v25  ;;  %4897 = vmatmul.mubr.msk.f32.gmra.mxu0 %vm26_vm0, %v4215_v23  ;;  %v6238_v23 = vld [vmem:[#allocation2 + $0x9a] sm:$0xff] }
  0x85   :  { %4933 = vmatmul.mubr.msk.f32.gmra.mxu1 %vm26_vm0, %v300_v25  ;;  %4937 = vmatpush3.xpose.msk.msra.mxu0 %vm26_vm0, %v6212_v57  ;;  %v6240_v25 = vld [vmem:[#allocation2 + $0x152] sm:$0xff] }
  0x86   :  { %4973 = vmatpush3.xpose.msk.msra.mxu1 %vm26_vm0, %v6170_v60  ;;  %4938 = vmatprep.subr.msk.mxu0 %vm26_vm0, %v6214_v58  ;;  %v6256_v60 = vld [vmem:[#allocation2 + $0x142] sm:$0xff] }
  0x87   :  { %4974 = vmatprep.subr.msk.mxu1 %vm26_vm0, %v5901_v29  ;;  %4966 = vmatprep.mubr.msk.f32.mxu0 %vm26_vm0, %v6223_v50  ;;  %v6254_v29 = vld [vmem:[#allocation2 + $0x92] sm:$0xff] }
  0x88   :  { %5002 = vmatprep.mubr.msk.f32.mxu1 %vm26_vm0, %v6228_v17 }
  0x89   :  { %4939 = vmatpush3.xpose.msk.msra.mxu0 %vm26_vm0, %v6238_v23 }
  0x8a   :  { %4975 = vmatpush3.xpose.msk.msra.mxu1 %vm26_vm0, %v5912_v31  ;;  %4940 = vmatprep.subr.msk.mxu0 %vm26_vm0, %v6240_v25  ;;  %v6266_v31 = vld [vmem:[#allocation2 + $0x82] sm:$0xff] }
  0x8b   :  { %4976 = vmatprep.subr.msk.mxu1 %vm26_vm0, %v5916_v33  ;;  %v6280_v33 = vld [vmem:[#allocation2 + $0x12a] sm:$0xff] }
  0x8d   :  { %4941 = vmatpush3.xpose.msk.msra.mxu0 %vm26_vm0, %v6254_v29 }
  0x8e   :  { %4977 = vmatpush3.xpose.msk.msra.mxu1 %vm26_vm0, %v5928_v35  ;;  %4942 = vmatprep.subr.msk.mxu0 %vm26_vm0, %v6256_v60  ;;  %v6278_v35 = vld [vmem:[#allocation2 + $0x7a] sm:$0xff] }
  0x8f   :  { %4978 = vmatprep.subr.msk.mxu1 %vm26_vm0, %v5932_v37  ;;  %v6292_v37 = vld [vmem:[#allocation2 + $0x122] sm:$0xff] }
  0x91   :  { %4943 = vmatpush3.xpose.msk.msra.mxu0 %vm26_vm0, %v6266_v31 }
  0x92   :  { %4979 = vmatpush3.xpose.msk.msra.mxu1 %vm26_vm0, %v5944_v39  ;;  %4944 = vmatprep.subr.msk.mxu0 %vm26_vm0, %v6268_v19  ;;  %v6290_v39 = vld [vmem:[#allocation2 + $0x6a] sm:$0xff] }
  0x93   :  { %4980 = vmatprep.subr.msk.mxu1 %vm26_vm0, %v5948_v41  ;;  %v6304_v41 = vld [vmem:[#allocation2 + $0x112] sm:$0xff] }
  0x95   :  { %4945 = vmatpush3.xpose.msk.msra.mxu0 %vm26_vm0, %v6278_v35 }
  0x96   :  { %4981 = vmatpush3.xpose.msk.msra.mxu1 %vm26_vm0, %v5960_v43  ;;  %4946 = vmatprep.subr.msk.mxu0 %vm26_vm0, %v6280_v33  ;;  %v6302_v43 = vld [vmem:[#allocation2 + $0x62] sm:$0xff] }
  0x97   :  { %4982 = vmatprep.subr.msk.mxu1 %vm26_vm0, %v5964_v45  ;;  %v6316_v45 = vld [vmem:[#allocation2 + $0x10a] sm:$0xff] }
  0x99   :  { %4947 = vmatpush3.xpose.msk.msra.mxu0 %vm26_vm0, %v6290_v39 }
  0x9a   :  { %4983 = vmatpush3.xpose.msk.msra.mxu1 %vm26_vm0, %v5976_v47  ;;  %4948 = vmatprep.subr.msk.mxu0 %vm26_vm0, %v6292_v37  ;;  %v6314_v47 = vld [vmem:[#allocation2 + $0x52] sm:$0xff] }
  0x9b   :  { %4984 = vmatprep.subr.msk.mxu1 %vm26_vm0, %v5980_v49  ;;  %v6328_v49 = vld [vmem:[#allocation2 + $0xfa] sm:$0xff] }
  0x9d   :  { %4949 = vmatpush3.xpose.msk.msra.mxu0 %vm26_vm0, %v6302_v43 }
  0x9e   :  { %4985 = vmatpush3.xpose.msk.msra.mxu1 %vm26_vm0, %v6002_v54  ;;  %4950 = vmatprep.subr.msk.mxu0 %vm26_vm0, %v6304_v41  ;;  %v6326_v54 = vld [vmem:[#allocation2 + $0x4a] sm:$0xff] }
  0x9f   :  { %4986 = vmatprep.subr.msk.mxu1 %vm26_vm0, %v6008_v56  ;;  %v6340_v56 = vld [vmem:[#allocation2 + $0xf2] sm:$0xff] }
  0xa1   :  { %4951 = vmatpush3.xpose.msk.msra.mxu0 %vm26_vm0, %v6314_v47 }
  0xa2   :  { %4987 = vmatpush3.xpose.msk.msra.mxu1 %vm26_vm0, %v6042_v62  ;;  %4952 = vmatprep.subr.msk.mxu0 %vm26_vm0, %v6316_v45  ;;  %v6338_v62 = vld [vmem:[#allocation2 + $0x3a] sm:$0xff] }
  0xa3   :  { %4988 = vmatprep.subr.msk.mxu1 %vm26_vm0, %v6046_v0  ;;  %v6352_v0 = vld [vmem:[#allocation2 + $0xe2] sm:$0xff] }
  0xa5   :  { %4953 = vmatpush3.xpose.msk.msra.mxu0 %vm26_vm0, %v6326_v54 }
  0xa6   :  { %4989 = vmatpush3.xpose.msk.msra.mxu1 %vm26_vm0, %v6058_v2  ;;  %4954 = vmatprep.subr.msk.mxu0 %vm26_vm0, %v6328_v49  ;;  %v6350_v2 = vld [vmem:[#allocation2 + $0x32] sm:$0xff] }
  0xa7   :  { %4990 = vmatprep.subr.msk.mxu1 %vm26_vm0, %v6062_v4  ;;  %v6364_v4 = vld [vmem:[#allocation2 + $0xda] sm:$0xff] }
  0xa9   :  { %4955 = vmatpush3.xpose.msk.msra.mxu0 %vm26_vm0, %v6338_v62 }
  0xaa   :  { %4991 = vmatpush3.xpose.msk.msra.mxu1 %vm26_vm0, %v6074_v6  ;;  %4956 = vmatprep.subr.msk.mxu0 %vm26_vm0, %v6340_v56  ;;  %v6362_v6 = vld [vmem:[#allocation2 + $0x22] sm:$0xff] }
  0xab   :  { %4992 = vmatprep.subr.msk.mxu1 %vm26_vm0, %v6078_v8  ;;  %v6376_v8 = vld [vmem:[#allocation2 + $0xca] sm:$0xff] }
  0xad   :  { %4957 = vmatpush3.xpose.msk.msra.mxu0 %vm26_vm0, %v6350_v2 }
  0xae   :  { %4993 = vmatpush3.xpose.msk.msra.mxu1 %vm26_vm0, %v6090_v10  ;;  %4958 = vmatprep.subr.msk.mxu0 %vm26_vm0, %v6352_v0  ;;  %v6374_v10 = vld [vmem:[#allocation2 + $0x1a] sm:$0xff] }
  0xaf   :  { %4994 = vmatprep.subr.msk.mxu1 %vm26_vm0, %v6094_v12  ;;  %7920 = vst [vmem:[#allocation41_spill] sm:$0xff] %v6374_v10  ;;  %v6386_v12 = vld [vmem:[#allocation2 + $0xc2] sm:$0xff] }
  0xb1   :  { %4959 = vmatpush3.xpose.msk.msra.mxu0 %vm26_vm0, %v6362_v6 }
  0xb2   :  { %4995 = vmatpush3.xpose.msk.msra.mxu1 %vm26_vm0, %v6106_v14  ;;  %4960 = vmatprep.subr.msk.mxu0 %vm26_vm0, %v6364_v4  ;;  %v695_v14 = vld [vmem:[#allocation2 + $0xa] sm:$0xff] }
  0xb3   :  { %4996 = vmatprep.subr.msk.mxu1 %vm26_vm0, %v6110_v16  ;;  %v197_v16 = vld [vmem:[%s7802_s0 + $0x1e8] sm:$0xff] }
  0xb4   :  { %262 = vst.msk [vmem:[#allocation2 + $0x321] sm:$0xff] %vm26_vm0, %v197_v16  ;;  %v6405_v16 = vld [vmem:[#allocation2 + $0x18a] sm:$0xff] }
  0xb5   :  { %4961 = vmatpush3.xpose.msk.msra.mxu0 %vm26_vm0, %v6374_v10  ;;  %v181_v10 = vld [vmem:[%s7802_s0 + $0x168] sm:$0xff] }
  0xb6   :  { %4997 = vmatpush3.xpose.msk.msra.mxu1 %vm26_vm0, %v6122_v18  ;;  %4962 = vmatprep.subr.msk.mxu0 %vm26_vm0, %v6376_v8  ;;  %246 = vst.msk [vmem:[#allocation2 + $0x261] sm:$0xff] %vm26_vm0, %v181_v10  ;;  %v694_v18 = vld [vmem:[#allocation2 + $0x2] sm:$0xff] }
  0xb7   :  { %4998 = vmatprep.subr.msk.mxu1 %vm26_vm0, %v6126_v20  ;;  %v6403_v20 = vld [vmem:[#allocation2 + $0x189] sm:$0xff]  ;;  %v180_v10 = vld [vmem:[%s7802_s0 + $0x160] sm:$0xff] }
  0xb8   :  { %245 = vst.msk [vmem:[#allocation2 + $0x259] sm:$0xff] %vm26_vm0, %v180_v10  ;;  %v179_v10 = vld [vmem:[%s7802_s0 + $0x158] sm:$0xff] }
  0xb9   :  { %4963 = vmatpush3.xpose.msk.msra.mxu0 %vm26_vm0, %v695_v14  ;;  %v196_v14 = vld [vmem:[%s7802_s0 + $0x1e0] sm:$0xff]  ;;  %244 = vst.msk [vmem:[#allocation2 + $0x249] sm:$0xff] %vm26_vm0, %v179_v10  ;;  %v178_v10 = vld [vmem:[%s7802_s0 + $0x150] sm:$0xff] }
  0xba   :  { %4999 = vmatpush3.xpose.msk.msra.mxu1 %vm26_vm0, %v6138_v22  ;;  %4964 = vmatprep.subr.msk.mxu0 %vm26_vm0, %v6386_v12  ;;  %261 = vst.msk [vmem:[#allocation2 + $0x319] sm:$0xff] %vm26_vm0, %v196_v14  ;;  %v4285_v22 = vld [vmem:[%s7803_s1 + $0x28] sm:$0xff]  ;;  %243 = vst.msk [vmem:[#allocation2 + $0x241] sm:$0xff] %vm26_vm0, %v178_v10  ;;  %v191_v10 = vld [vmem:[%s7802_s0 + $0x1b8] sm:$0xff] }
  0xbb   :  { %5000 = vmatprep.subr.msk.mxu1 %vm26_vm0, %v6142_v24  ;;  %v6425_v14 = vld [vmem:[#allocation2 + $0x181] sm:$0xff]  ;;  %256 = vst.msk [vmem:[#allocation2 + $0x2d9] sm:$0xff] %vm26_vm0, %v191_v10 }
  0xbc   :  { %v6427_v24 = vld [vmem:[#allocation2 + $0x182] sm:$0xff] }
  0xbd   :  { %4965 = vmatpush3.xpose.msk.msra.mxu0 %vm26_vm0, %v694_v18  ;;  %v4321_v18 = vld [vmem:[%s7803_s1 + $0x38] sm:$0xff]  ;;  %v173_v10 = vld [vmem:[%s7802_s0 + $0x128] sm:$0xff] }
  0xbe   :  { %5001 = vmatpush3.xpose.msk.msra.mxu1 %vm26_vm0, %v6154_v26  ;;  %5006 = vmatprep.subr.msk.mxu0 %vm26_vm0, %v6403_v20  ;;  %v195_v26 = vld [vmem:[%s7802_s0 + $0x1d8] sm:$0xff]  ;;  %238 = vst.msk [vmem:[#allocation2 + $0x201] sm:$0xff] %vm26_vm0, %v173_v10  ;;  %v186_v10 = vld [vmem:[%s7802_s0 + $0x190] sm:$0xff] }
  0xbf   :  { %5042 = vmatprep.subr.msk.mxu1 %vm26_vm0, %v6405_v16  ;;  %260 = vst.msk [vmem:[#allocation2 + $0x309] sm:$0xff] %vm26_vm0, %v195_v26  ;;  %v6467_v26 = vld [vmem:[%s7803_s1 + $0x50] sm:$0xff]  ;;  %251 = vst.msk [vmem:[#allocation2 + $0x2a1] sm:$0xff] %vm26_vm0, %v186_v10  ;;  %v168_v10 = vld [vmem:[%s7802_s0 + $0x100] sm:$0xff] }
  0xc0   :  { %4967 = vmatmul.mubr.msk.f32.vlgmr.msra.gmra.mxu0 %vm26_vm0, %v6223_v50  ;;  %v6462_v50 = vld [vmem:[%s7803_s1 + $0x40] sm:$0xff]  ;;  %233 = vst.msk [vmem:[#allocation2 + $0x1c9] sm:$0xff] %vm26_vm0, %v168_v10 }
  0xc1   :  { %5003 = vmatmul.mubr.msk.f32.vlgmr.msra.gmra.mxu1 %vm26_vm0, %v6228_v17  ;;  %5007 = vmatpush3.xpose.msk.msra.mxu0 %vm26_vm0, %v6156_v27  ;;  %v194_v17 = vld [vmem:[%s7802_s0 + $0x1d0] sm:$0xff]  ;;  %v1815_v10 = vld [vmem:[#allocation2 + $0x199] sm:$0xff] }
  0xc2   :  { %5043 = vmatpush3.xpose.msk.msra.mxu1 %vm26_vm0, %v6376_v8  ;;  %4968 = vmatprep.mubr.msk.f32.mxu0 %vm26_vm0, %v4285_v22  ;;  %259 = vst.msk [vmem:[#allocation2 + $0x301] sm:$0xff] %vm26_vm0, %v194_v17  ;;  %v176_v17 = vld [vmem:[%s7802_s0 + $0x140] sm:$0xff] }
  0xc3   :  { %5008 = vmatprep.subr.msk.mxu0 %vm26_vm0, %v6425_v14  ;;  %5044 = vmatprep.subr.msk.mxu1 %vm26_vm0, %v6427_v24  ;;  %241 = vst.msk [vmem:[#allocation2 + $0x229] sm:$0xff] %vm26_vm0, %v176_v17  ;;  %v189_v17 = vld [vmem:[%s7802_s0 + $0x1a8] sm:$0xff] }
  0xc4   :  { %5004 = vmatprep.mubr.msk.f32.mxu1 %vm26_vm0, %v4321_v18  ;;  %4969 = vmatmul.mubr.msk.f32.gmra.mxu0 %vm26_vm0, %v4285_v22  ;;  %v193_v22 = vld [vmem:[%s7802_s0 + $0x1c8] sm:$0xff]  ;;  %254 = vst.msk [vmem:[#allocation2 + $0x2c1] sm:$0xff] %vm26_vm0, %v189_v17  ;;  %v171_v17 = vld [vmem:[%s7802_s0 + $0x118] sm:$0xff] }
  0xc5   :  { %5005 = vmatmul.mubr.msk.f32.gmra.mxu1 %vm26_vm0, %v4321_v18  ;;  %5009 = vmatpush3.xpose.msk.msra.mxu0 %vm26_vm0, %v6168_v59  ;;  %258 = vst.msk [vmem:[#allocation2 + $0x2f1] sm:$0xff] %vm26_vm0, %v193_v22  ;;  %v177_v18 = vld [vmem:[%s7802_s0 + $0x148] sm:$0xff]  ;;  %v175_v22 = vld [vmem:[%s7802_s0 + $0x138] sm:$0xff]  ;;  %236 = vst.msk [vmem:[#allocation2 + $0x1e9] sm:$0xff] %vm26_vm0, %v171_v17 }
  0xc6   :  { %5045 = vmatpush3.xpose.msk.msra.mxu1 %vm26_vm0, %v6386_v12  ;;  %5010 = vmatprep.subr.msk.mxu0 %vm26_vm0, %v5899_v28  ;;  %242 = vst.msk [vmem:[#allocation2 + $0x231] sm:$0xff] %vm26_vm0, %v177_v18  ;;  %v192_v28 = vld [vmem:[%s7802_s0 + $0x1c0] sm:$0xff]  ;;  %240 = vst.msk [vmem:[#allocation2 + $0x219] sm:$0xff] %vm26_vm0, %v175_v22  ;;  %v190_v18 = vld [vmem:[%s7802_s0 + $0x1b0] sm:$0xff] }
  0xc7   :  { %5046 = vmatprep.subr.msk.mxu1 %vm26_vm0, %v6178_v21  ;;  %5038 = vmatprep.mubr.msk.f32.mxu0 %vm26_vm0, %v6462_v50  ;;  %257 = vst.msk [vmem:[#allocation2 + $0x2e9] sm:$0xff] %vm26_vm0, %v192_v28  ;;  %255 = vst.msk [vmem:[#allocation2 + $0x2d1] sm:$0xff] %vm26_vm0, %v190_v18  ;;  %v174_v28 = vld [vmem:[%s7802_s0 + $0x130] sm:$0xff]  ;;  %v188_v22 = vld [vmem:[%s7802_s0 + $0x1a0] sm:$0xff] }
  0xc8   :  { %5074 = vmatprep.mubr.msk.f32.mxu1 %vm26_vm0, %v6467_v26  ;;  %239 = vst.msk [vmem:[#allocation2 + $0x211] sm:$0xff] %vm26_vm0, %v174_v28  ;;  %253 = vst.msk [vmem:[#allocation2 + $0x2b9] sm:$0xff] %vm26_vm0, %v188_v22  ;;  %v172_v18 = vld [vmem:[%s7802_s0 + $0x120] sm:$0xff]  ;;  %v187_v28 = vld [vmem:[%s7802_s0 + $0x198] sm:$0xff] }
  0xc9   :  { %5011 = vmatpush3.xpose.msk.msra.mxu0 %vm26_vm0, %v5903_v30  ;;  %237 = vst.msk [vmem:[#allocation2 + $0x1f9] sm:$0xff] %vm26_vm0, %v172_v18  ;;  %252 = vst.msk [vmem:[#allocation2 + $0x2a9] sm:$0xff] %vm26_vm0, %v187_v28  ;;  %v170_v22 = vld [vmem:[%s7802_s0 + $0x110] sm:$0xff]  ;;  %v185_v18 = vld [vmem:[%s7802_s0 + $0x188] sm:$0xff] }
  0xca   :  { %5047 = vmatpush3.xpose.msk.msra.mxu1 %vm26_vm0, %v6188_v51  ;;  %5012 = vmatprep.subr.msk.mxu0 %vm26_vm0, %v5914_v32  ;;  %235 = vst.msk [vmem:[#allocation2 + $0x1e1] sm:$0xff] %vm26_vm0, %v170_v22  ;;  %250 = vst.msk [vmem:[#allocation2 + $0x291] sm:$0xff] %vm26_vm0, %v185_v18  ;;  %v169_v28 = vld [vmem:[%s7802_s0 + $0x108] sm:$0xff]  ;;  %v184_v17 = vld [vmem:[%s7802_s0 + $0x180] sm:$0xff] }
  0xcb   :  { %5048 = vmatprep.subr.msk.mxu1 %vm26_vm0, %v6190_v52  ;;  %234 = vst.msk [vmem:[#allocation2 + $0x1d1] sm:$0xff] %vm26_vm0, %v169_v28  ;;  %249 = vst.msk [vmem:[#allocation2 + $0x289] sm:$0xff] %vm26_vm0, %v184_v17  ;;  %v1598_v22 = vld [vmem:[#allocation2 + $0x1a0] sm:$0xff]  ;;  %v7925_v18 = vld [vmem:[#allocation36_spill] sm:$0xff] }
  0xcc   :  { %v7926_v28 = vld [vmem:[#allocation41_spill] sm:$0xff] }
  0xcd   :  { %5013 = vmatpush3.xpose.msk.msra.mxu0 %vm26_vm0, %v5926_v34  ;;  %v1597_v17 = vld [vmem:[#allocation2 + $0x198] sm:$0xff] }
  0xce   :  { %5049 = vmatpush3.xpose.msk.msra.mxu1 %vm26_vm0, %v6212_v57  ;;  %5014 = vmatprep.subr.msk.mxu0 %vm26_vm0, %v5930_v36 }
  0xcf   :  { %5050 = vmatprep.subr.msk.mxu1 %vm26_vm0, %v6214_v58 }
  0xd1   :  { %5015 = vmatpush3.xpose.msk.msra.mxu0 %vm26_vm0, %v5942_v38 }
  0xd2   :  { %5051 = vmatpush3.xpose.msk.msra.mxu1 %vm26_vm0, %v6238_v23  ;;  %5016 = vmatprep.subr.msk.mxu0 %vm26_vm0, %v5946_v40 }
  0xd3   :  { %5052 = vmatprep.subr.msk.mxu1 %vm26_vm0, %v6240_v25 }
  0xd5   :  { %5017 = vmatpush3.xpose.msk.msra.mxu0 %vm26_vm0, %v5958_v42 }
  0xd6   :  { %5053 = vmatpush3.xpose.msk.msra.mxu1 %vm26_vm0, %v6254_v29  ;;  %5018 = vmatprep.subr.msk.mxu0 %vm26_vm0, %v5962_v44 }
  0xd7   :  { %5054 = vmatprep.subr.msk.mxu1 %vm26_vm0, %v6256_v60 }
  0xd9   :  { %5019 = vmatpush3.xpose.msk.msra.mxu0 %vm26_vm0, %v5974_v46 }
  0xda   :  { %5055 = vmatpush3.xpose.msk.msra.mxu1 %vm26_vm0, %v6266_v31  ;;  %5020 = vmatprep.subr.msk.mxu0 %vm26_vm0, %v5978_v48 }
  0xdb   :  { %5056 = vmatprep.subr.msk.mxu1 %vm26_vm0, %v6268_v19 }
  0xdd   :  { %5021 = vmatpush3.xpose.msk.msra.mxu0 %vm26_vm0, %v6000_v53 }
  0xde   :  { %5057 = vmatpush3.xpose.msk.msra.mxu1 %vm26_vm0, %v6278_v35  ;;  %5022 = vmatprep.subr.msk.mxu0 %vm26_vm0, %v6004_v55 }
  0xdf   :  { %5058 = vmatprep.subr.msk.mxu1 %vm26_vm0, %v6280_v33 }
  0xe1   :  { %5023 = vmatpush3.xpose.msk.msra.mxu0 %vm26_vm0, %v6040_v61 }
  0xe2   :  { %5059 = vmatpush3.xpose.msk.msra.mxu1 %vm26_vm0, %v6290_v39  ;;  %5024 = vmatprep.subr.msk.mxu0 %vm26_vm0, %v6044_v63 }
  0xe3   :  { %5060 = vmatprep.subr.msk.mxu1 %vm26_vm0, %v6292_v37 }
  0xe5   :  { %5025 = vmatpush3.xpose.msk.msra.mxu0 %vm26_vm0, %v6056_v1 }
  0xe6   :  { %5061 = vmatpush3.xpose.msk.msra.mxu1 %vm26_vm0, %v6302_v43  ;;  %5026 = vmatprep.subr.msk.mxu0 %vm26_vm0, %v6060_v3 }
  0xe7   :  { %5062 = vmatprep.subr.msk.mxu1 %vm26_vm0, %v6304_v41 }
  0xe9   :  { %5027 = vmatpush3.xpose.msk.msra.mxu0 %vm26_vm0, %v6072_v5 }
  0xea   :  { %5063 = vmatpush3.xpose.msk.msra.mxu1 %vm26_vm0, %v6314_v47  ;;  %5028 = vmatprep.subr.msk.mxu0 %vm26_vm0, %v6076_v7  ;;  %v182_v47 = vld [vmem:[%s7802_s0 + $0x170] sm:$0xff] }
  0xeb   :  { %5064 = vmatprep.subr.msk.mxu1 %vm26_vm0, %v6316_v45  ;;  %v183_v45 = vld [vmem:[%s7802_s0 + $0x178] sm:$0xff]  ;;  %247 = vst.msk [vmem:[#allocation2 + $0x271] sm:$0xff] %vm26_vm0, %v182_v47 }
  0xec   :  { %248 = vst.msk [vmem:[#allocation2 + $0x279] sm:$0xff] %vm26_vm0, %v183_v45  ;;  %v4393_v45 = vld [vmem:[%s7803_s1 + $0x58] sm:$0xff] }
  0xed   :  { %5029 = vmatpush3.xpose.msk.msra.mxu0 %vm26_vm0, %v6088_v9  ;;  %v7927_v47 = vld [vmem:[#allocation32_spill] sm:$0xff] }
  0xee   :  { %5065 = vmatpush3.xpose.msk.msra.mxu1 %vm26_vm0, %v6326_v54  ;;  %5030 = vmatprep.subr.msk.mxu0 %vm26_vm0, %v6092_v11  ;;  %v7922_v54 = vld [vmem:[#allocation31_spill] sm:$0xff] }
  0xef   :  { %5066 = vmatprep.subr.msk.mxu1 %vm26_vm0, %v6328_v49  ;;  %v7921_v49 = vld [vmem:[#allocation29_spill] sm:$0xff] }
  0xf1   :  { %5031 = vmatpush3.xpose.msk.msra.mxu0 %vm26_vm0, %v6104_v13 }
  0xf2   :  { %5067 = vmatpush3.xpose.msk.msra.mxu1 %vm26_vm0, %v6338_v62  ;;  %5032 = vmatprep.subr.msk.mxu0 %vm26_vm0, %v6108_v15  ;;  %v7923_v62 = vld [vmem:[#allocation33_spill] sm:$0xff] }
  0xf3   :  { %5068 = vmatprep.subr.msk.mxu1 %vm26_vm0, %v6340_v56  ;;  %v7924_v56 = vld [vmem:[#allocation34_spill] sm:$0xff] }
  0xf5   :  { %5033 = vmatpush3.xpose.msk.msra.mxu0 %vm26_vm0, %v7921_v49 }
  0xf6   :  { %5069 = vmatpush3.xpose.msk.msra.mxu1 %vm26_vm0, %v6350_v2  ;;  %5034 = vmatprep.subr.msk.mxu0 %vm26_vm0, %v7922_v54  ;;  %v1816_v2 = vld [vmem:[#allocation2 + $0x1a1] sm:$0xff] }
  0xf7   :  { %5070 = vmatprep.subr.msk.mxu1 %vm26_vm0, %v6352_v0 }
  0xf9   :  { %5035 = vmatpush3.xpose.msk.msra.mxu0 %vm26_vm0, %v7923_v62  ;;  %v7929_v62 = vld [vmem:[#allocation39_spill] sm:$0xff] }
  0xfa   :  { %5071 = vmatpush3.xpose.msk.msra.mxu1 %vm26_vm0, %v6362_v6  ;;  %5036 = vmatprep.subr.msk.mxu0 %vm26_vm0, %v7924_v56  ;;  %v4357_v6 = vld [vmem:[%s7803_s1 + $0x48] sm:$0xff] }
  0xfb   :  { %5072 = vmatprep.subr.msk.mxu1 %vm26_vm0, %v6364_v4 }
  0xfd   :  { %5037 = vmatpush3.xpose.msk.msra.mxu0 %vm26_vm0, %v7925_v18  ;;  %v7933_v18 = vld [vmem:[#allocation6_spill] sm:$0xff] }
  0xfe   :  { %5073 = vmatpush3.xpose.msk.msra.mxu1 %vm26_vm0, %v7926_v28  ;;  %5078 = vmatprep.subr.msk.mxu0 %vm26_vm0, %v1598_v22  ;;  %v7930_v22 = vld [vmem:[#allocation37_spill] sm:$0xff]  ;;  %v7934_v28 = vld [vmem:[#allocation7_spill] sm:$0xff] }
  0xff   :  { %5114 = vmatprep.subr.msk.mxu1 %vm26_vm0, %v1816_v2  ;;  %v7931_v2 = vld [vmem:[#allocation40_spill] sm:$0xff] }
 0x100   :  { %5039 = vmatmul.mubr.msk.f32.vlgmr.msra.gmra.mxu0 %vm26_vm0, %v6462_v50  ;;  %v6707_v50 = vld [vmem:[%s7803_s1 + $0x60] sm:$0xff] }
 0x101   :  { %5075 = vmatmul.mubr.msk.f32.vlgmr.msra.gmra.mxu1 %vm26_vm0, %v6467_v26  ;;  %5079 = vmatpush3.xpose.msk.msra.mxu0 %vm26_vm0, %v7927_v47  ;;  %v6712_v26 = vld [vmem:[%s7803_s1 + $0x70] sm:$0xff]  ;;  %v6855_v47 = vld [vmem:[#allocation2 + $0x319] sm:$0xff] }
 0x102   :  { %5115 = vmatpush3.xpose.msk.msra.mxu1 %vm26_vm0, %v7922_v54  ;;  %5040 = vmatprep.mubr.msk.f32.mxu0 %vm26_vm0, %v4357_v6  ;;  %v7928_v54 = vld [vmem:[#allocation35_spill] sm:$0xff] }
 0x103   :  { %5080 = vmatprep.subr.msk.mxu0 %vm26_vm0, %v1597_v17  ;;  %5116 = vmatprep.subr.msk.mxu1 %vm26_vm0, %v1815_v10  ;;  %v6837_v17 = vld [vmem:[#allocation2 + $0x321] sm:$0xff] }
 0x104   :  { %5076 = vmatprep.mubr.msk.f32.mxu1 %vm26_vm0, %v4393_v45  ;;  %5041 = vmatmul.mubr.msk.f32.gmra.mxu0 %vm26_vm0, %v4357_v6  ;;  %v7938_v6 = vld [vmem:[#allocation11_spill] sm:$0xff]  ;;  %v7956_v10 = vld [vmem:[#allocation30_spill] sm:$0xff] }
 0x105   :  { %5077 = vmatmul.mubr.msk.f32.gmra.mxu1 %vm26_vm0, %v4393_v45  ;;  %5081 = vmatpush3.xpose.msk.msra.mxu0 %vm26_vm0, %v7928_v54  ;;  %v2033_v45 = vld [vmem:[#allocation2 + $0x19a] sm:$0xff]  ;;  %v6883_v54 = vld [vmem:[%s7803_s1 + $0x10] sm:$0xff] }
 0x106   :  { %5117 = vmatpush3.xpose.msk.msra.mxu1 %vm26_vm0, %v7924_v56  ;;  %5082 = vmatprep.subr.msk.mxu0 %vm26_vm0, %v7929_v62  ;;  %v1812_v56 = vld [vmem:[#allocation2 + $0x171] sm:$0xff]  ;;  %v6893_v62 = vld [vmem:[#allocation2 + $0x249] sm:$0xff] }
 0x107   :  { %5118 = vmatprep.subr.msk.mxu1 %vm26_vm0, %v6403_v20  ;;  %5110 = vmatprep.mubr.msk.f32.mxu0 %vm26_vm0, %v6707_v50  ;;  %v7932_v20 = vld [vmem:[#allocation38_spill] sm:$0xff] }
 0x108   :  { %5146 = vmatprep.mubr.msk.f32.mxu1 %vm26_vm0, %v6712_v26 }
 0x109   :  { %5083 = vmatpush3.xpose.msk.msra.mxu0 %vm26_vm0, %v7930_v22  ;;  %v6895_v22 = vld [vmem:[#allocation2 + $0x301] sm:$0xff] }
 0x10a   :  { %5119 = vmatpush3.xpose.msk.msra.mxu1 %vm26_vm0, %v6156_v27  ;;  %5084 = vmatprep.subr.msk.mxu0 %vm26_vm0, %v7931_v2  ;;  %v7935_v27 = vld [vmem:[#allocation8_spill] sm:$0xff]  ;;  %v265_v2 = vld [vmem:[%s7804_s2] sm:$0xff] }
 0x10b   :  { %5120 = vmatprep.subr.msk.mxu1 %vm26_vm0, %v6425_v14  ;;  %v7936_v14 = vld [vmem:[#allocation9_spill] sm:$0xff] }
 0x10d   :  { %5085 = vmatpush3.xpose.msk.msra.mxu0 %vm26_vm0, %v7932_v20  ;;  %v266_v20 = vld [vmem:[%s7804_s2 + $0x8] sm:$0xff] }
 0x10e   :  { %5121 = vmatpush3.xpose.msk.msra.mxu1 %vm26_vm0, %v6168_v59  ;;  %5086 = vmatprep.subr.msk.mxu0 %vm26_vm0, %v7933_v18  ;;  %v7937_v59 = vld [vmem:[#allocation10_spill] sm:$0xff]  ;;  %v2021_v18 = vld [vmem:[#allocation2 + $0x10a] sm:$0xff] }
 0x10f   :  { %5122 = vmatprep.subr.msk.mxu1 %vm26_vm0, %v1812_v56  ;;  %v6914_v56 = vld [vmem:[#allocation2 + $0x2f1] sm:$0xff] }
 0x111   :  { %5087 = vmatpush3.xpose.msk.msra.mxu0 %vm26_vm0, %v7934_v28  ;;  %v7025_v28 = vld [vmem:[#allocation2 + $0x289] sm:$0xff] }
 0x112   :  { %5123 = vmatpush3.xpose.msk.msra.mxu1 %vm26_vm0, %v5903_v30  ;;  %5088 = vmatprep.subr.msk.mxu0 %vm26_vm0, %v7935_v27  ;;  %v7939_v30 = vld [vmem:[#allocation12_spill] sm:$0xff]  ;;  %7958 = vst [vmem:[#allocation31_spill] sm:$0xff] %v7025_v28  ;;  %v2020_v27 = vld [vmem:[#allocation2 + $0xfa] sm:$0xff] }
 0x113   :  { %5124 = vmatprep.subr.msk.mxu1 %vm26_vm0, %v5914_v32  ;;  %v7940_v32 = vld [vmem:[#allocation13_spill] sm:$0xff] }
 0x115   :  { %5089 = vmatpush3.xpose.msk.msra.mxu0 %vm26_vm0, %v7936_v14  ;;  %v7035_v14 = vld [vmem:[#allocation2 + $0x279] sm:$0xff] }
 0x116   :  { %5125 = vmatpush3.xpose.msk.msra.mxu1 %vm26_vm0, %v5926_v34  ;;  %5090 = vmatprep.subr.msk.mxu0 %vm26_vm0, %v7937_v59  ;;  %v7941_v34 = vld [vmem:[#allocation14_spill] sm:$0xff]  ;;  %v2004_v59 = vld [vmem:[#allocation2 + $0x3a] sm:$0xff] }
 0x117   :  { %5126 = vmatprep.subr.msk.mxu1 %vm26_vm0, %v5930_v36  ;;  %v7942_v36 = vld [vmem:[#allocation15_spill] sm:$0xff] }
 0x119   :  { %5091 = vmatpush3.xpose.msk.msra.mxu0 %vm26_vm0, %v7938_v6  ;;  %v2275_v6 = vld [vmem:[#allocation2 + $0x1b9] sm:$0xff] }
 0x11a   :  { %5127 = vmatpush3.xpose.msk.msra.mxu1 %vm26_vm0, %v5942_v38  ;;  %5092 = vmatprep.subr.msk.mxu0 %vm26_vm0, %v7939_v30  ;;  %v7943_v38 = vld [vmem:[#allocation16_spill] sm:$0xff] }
 0x11b   :  { %5128 = vmatprep.subr.msk.mxu1 %vm26_vm0, %v5946_v40  ;;  %v7944_v40 = vld [vmem:[#allocation17_spill] sm:$0xff]  ;;  %v2019_v30 = vld [vmem:[#allocation2 + $0xf2] sm:$0xff] }
 0x11d   :  { %5093 = vmatpush3.xpose.msk.msra.mxu0 %vm26_vm0, %v7940_v32  ;;  %v7043_v32 = vld [vmem:[#allocation2 + $0x271] sm:$0xff] }
 0x11e   :  { %5129 = vmatpush3.xpose.msk.msra.mxu1 %vm26_vm0, %v5958_v42  ;;  %5094 = vmatprep.subr.msk.mxu0 %vm26_vm0, %v7941_v34  ;;  %v7945_v42 = vld [vmem:[#allocation18_spill] sm:$0xff]  ;;  %v2003_v34 = vld [vmem:[#allocation2 + $0x32] sm:$0xff] }
 0x11f   :  { %5130 = vmatprep.subr.msk.mxu1 %vm26_vm0, %v5962_v44  ;;  %v7946_v44 = vld [vmem:[#allocation19_spill] sm:$0xff] }
 0x121   :  { %5095 = vmatpush3.xpose.msk.msra.mxu0 %vm26_vm0, %v7942_v36  ;;  %v2274_v36 = vld [vmem:[#allocation2 + $0x1b1] sm:$0xff] }
 0x122   :  { %5131 = vmatpush3.xpose.msk.msra.mxu1 %vm26_vm0, %v5974_v46  ;;  %5096 = vmatprep.subr.msk.mxu0 %vm26_vm0, %v7943_v38  ;;  %v7947_v46 = vld [vmem:[#allocation20_spill] sm:$0xff]  ;;  %v7050_v38 = vld [vmem:[#allocation2 + $0x320] sm:$0xff] }
 0x123   :  { %5132 = vmatprep.subr.msk.mxu1 %vm26_vm0, %v5978_v48  ;;  %v7948_v48 = vld [vmem:[#allocation21_spill] sm:$0xff] }
 0x125   :  { %5097 = vmatpush3.xpose.msk.msra.mxu0 %vm26_vm0, %v7944_v40  ;;  %v7052_v40 = vld [vmem:[#allocation2 + $0x322] sm:$0xff] }
 0x126   :  { %5133 = vmatpush3.xpose.msk.msra.mxu1 %vm26_vm0, %v6000_v53  ;;  %5098 = vmatprep.subr.msk.mxu0 %vm26_vm0, %v7945_v42  ;;  %v7949_v53 = vld [vmem:[#allocation22_spill] sm:$0xff]  ;;  %7960 = vst [vmem:[#allocation34_spill] sm:$0xff] %v7052_v40 }
 0x127   :  { %5134 = vmatprep.subr.msk.mxu1 %vm26_vm0, %v6004_v55  ;;  %v7950_v55 = vld [vmem:[#allocation23_spill] sm:$0xff]  ;;  %v7060_v42 = vld [vmem:[#allocation2 + $0x260] sm:$0xff] }
 0x129   :  { %5099 = vmatpush3.xpose.msk.msra.mxu0 %vm26_vm0, %v7946_v44  ;;  %v7062_v44 = vld [vmem:[#allocation2 + $0x262] sm:$0xff] }
 0x12a   :  { %5135 = vmatpush3.xpose.msk.msra.mxu1 %vm26_vm0, %v6040_v61  ;;  %5100 = vmatprep.subr.msk.mxu0 %vm26_vm0, %v7947_v46  ;;  %v7951_v61 = vld [vmem:[#allocation24_spill] sm:$0xff]  ;;  %7961 = vst [vmem:[#allocation36_spill] sm:$0xff] %v7062_v44  ;;  %v4501_v46 = vld [vmem:[%s7803_s1 + $0x88] sm:$0xff] }
 0x12b   :  { %5136 = vmatprep.subr.msk.mxu1 %vm26_vm0, %v6044_v63  ;;  %v7952_v63 = vld [vmem:[#allocation25_spill] sm:$0xff] }
 0x12d   :  { %5101 = vmatpush3.xpose.msk.msra.mxu0 %vm26_vm0, %v7948_v48  ;;  %v7067_v48 = vld [vmem:[#allocation2 + $0x318] sm:$0xff] }
 0x12e   :  { %5137 = vmatpush3.xpose.msk.msra.mxu1 %vm26_vm0, %v6056_v1  ;;  %5102 = vmatprep.subr.msk.mxu0 %vm26_vm0, %v7949_v53  ;;  %v7953_v1 = vld [vmem:[#allocation26_spill] sm:$0xff]  ;;  %v7073_v53 = vld [vmem:[#allocation2 + $0x31a] sm:$0xff] }
 0x12f   :  { %5138 = vmatprep.subr.msk.mxu1 %vm26_vm0, %v6060_v3  ;;  %v198_v3 = vld [vmem:[%s7802_s0 + $0x1f0] sm:$0xff]  ;;  %7962 = vst [vmem:[#allocation41_spill] sm:$0xff] %v7073_v53 }
 0x130   :  { %263 = vst.msk [vmem:[#allocation2 + $0x331] sm:$0xff] %vm26_vm0, %v198_v3  ;;  %v7093_v3 = vld [vmem:[#allocation2 + $0x30a] sm:$0xff] }
 0x131   :  { %5103 = vmatpush3.xpose.msk.msra.mxu0 %vm26_vm0, %v7950_v55  ;;  %v4537_v55 = vld [vmem:[%s7803_s1 + $0x18] sm:$0xff]  ;;  %7964 = vst [vmem:[#allocation35_spill] sm:$0xff] %v7093_v3 }
 0x132   :  { %5139 = vmatpush3.xpose.msk.msra.mxu1 %vm26_vm0, %v6072_v5  ;;  %5104 = vmatprep.subr.msk.mxu0 %vm26_vm0, %v7951_v61  ;;  %v199_v5 = vld [vmem:[%s7802_s0 + $0x1f8] sm:$0xff] }
 0x133   :  { %5140 = vmatprep.subr.msk.mxu1 %vm26_vm0, %v6076_v7  ;;  %264 = vst.msk [vmem:[#allocation2 + $0x339] sm:$0xff] %vm26_vm0, %v199_v5  ;;  %v7954_v7 = vld [vmem:[#allocation27_spill] sm:$0xff]  ;;  %v7085_v61 = vld [vmem:[#allocation2 + $0x258] sm:$0xff]  ;;  %v7101_v5 = vld [vmem:[%s7803_s1] sm:$0xff] }
 0x135   :  { %5105 = vmatpush3.xpose.msk.msra.mxu0 %vm26_vm0, %v7952_v63  ;;  %v7087_v63 = vld [vmem:[#allocation2 + $0x25a] sm:$0xff] }
 0x136   :  { %5141 = vmatpush3.xpose.msk.msra.mxu1 %vm26_vm0, %v6088_v9  ;;  %5106 = vmatprep.subr.msk.mxu0 %vm26_vm0, %v7953_v1  ;;  %v7955_v9 = vld [vmem:[#allocation28_spill] sm:$0xff]  ;;  %7963 = vst [vmem:[#allocation32_spill] sm:$0xff] %v7087_v63  ;;  %v7091_v1 = vld [vmem:[#allocation2 + $0x308] sm:$0xff] }
 0x137   :  { %5142 = vmatprep.subr.msk.mxu1 %vm26_vm0, %v6092_v11  ;;  %v2034_v11 = vld [vmem:[#allocation2 + $0x1a2] sm:$0xff] }
 0x139   :  { %5107 = vmatpush3.xpose.msk.msra.mxu0 %vm26_vm0, %v7954_v7  ;;  %v7106_v7 = vld [vmem:[%s7803_s1 + $0x20] sm:$0xff] }
 0x13a   :  { %5143 = vmatpush3.xpose.msk.msra.mxu1 %vm26_vm0, %v6104_v13  ;;  %5108 = vmatprep.subr.msk.mxu0 %vm26_vm0, %v7955_v9  ;;  %v6846_v13 = vld [vmem:[#allocation2 + $0x261] sm:$0xff] }
 0x13b   :  { %5144 = vmatprep.subr.msk.mxu1 %vm26_vm0, %v6108_v15  ;;  %v4429_v15 = vld [vmem:[%s7803_s1 + $0x68] sm:$0xff] }
 0x13c   :  { %v7116_v9 = vld [vmem:[#allocation2 + $0x248] sm:$0xff] }
 0x13d   :  { %5109 = vmatpush3.xpose.msk.msra.mxu0 %vm26_vm0, %v7956_v10  ;;  %v7120_v10 = vld [vmem:[#allocation2 + $0x300] sm:$0xff] }
 0x13e   :  { %5145 = vmatpush3.xpose.msk.msra.mxu1 %vm26_vm0, %v7921_v49  ;;  %5150 = vmatprep.subr.msk.mxu0 %vm26_vm0, %v2034_v11  ;;  %v4465_v49 = vld [vmem:[%s7803_s1 + $0x78] sm:$0xff]  ;;  %v7118_v11 = vld [vmem:[#allocation2 + $0x24a] sm:$0xff] }
 0x13f   :  { %5186 = vmatprep.subr.msk.mxu1 %vm26_vm0, %v6837_v17  ;;  %7965 = vst [vmem:[#allocation39_spill] sm:$0xff] %v7118_v11 }
 0x140   :  { %5111 = vmatmul.mubr.msk.f32.vlgmr.msra.gmra.mxu0 %vm26_vm0, %v6707_v50  ;;  %v6866_v50 = vld [vmem:[#allocation2 + $0x259] sm:$0xff] }
 0x141   :  { %5147 = vmatmul.mubr.msk.f32.vlgmr.msra.gmra.mxu1 %vm26_vm0, %v6712_v26  ;;  %5151 = vmatpush3.xpose.msk.msra.mxu0 %vm26_vm0, %v6352_v0  ;;  %v6871_v26 = vld [vmem:[#allocation2 + $0x309] sm:$0xff]  ;;  %v6878_v0 = vld [vmem:[%s7803_s1 + $0x80] sm:$0xff] }
 0x142   :  { %5187 = vmatpush3.xpose.msk.msra.mxu1 %vm26_vm0, %v6846_v13  ;;  %5112 = vmatprep.mubr.msk.f32.mxu0 %vm26_vm0, %v4429_v15 }
 0x143   :  { %5152 = vmatprep.subr.msk.mxu0 %vm26_vm0, %v2033_v45  ;;  %5188 = vmatprep.subr.msk.mxu1 %vm26_vm0, %v6855_v47  ;;  %v7136_v45 = vld [vmem:[#allocation2 + $0x240] sm:$0xff] }
 0x144   :  { %5148 = vmatprep.mubr.msk.f32.mxu1 %vm26_vm0, %v4465_v49  ;;  %5113 = vmatmul.mubr.msk.f32.gmra.mxu0 %vm26_vm0, %v4429_v15  ;;  %v7122_v15 = vld [vmem:[#allocation2 + $0x302] sm:$0xff] }
 0x145   :  { %5149 = vmatmul.mubr.msk.f32.gmra.mxu1 %vm26_vm0, %v4465_v49  ;;  %5153 = vmatpush3.xpose.msk.msra.mxu0 %vm26_vm0, %v6364_v4  ;;  %v5537_v4 = vmov 0   ;;  %7966 = vst [vmem:[#allocation37_spill] sm:$0xff] %v7122_v15  ;;  %v7138_v49 = vld [vmem:[#allocation2 + $0x242] sm:$0xff] }
 0x146   :  { %5189 = vmatpush3.xpose.msk.msra.mxu1 %vm26_vm0, %v6866_v50  ;;  %5154 = vmatprep.subr.msk.mxu0 %vm26_vm0, %v6405_v16  ;;  %v6912_v16 = vld [vmem:[#allocation2 + $0x241] sm:$0xff]  ;;  %7967 = vst [vmem:[#allocation40_spill] sm:$0xff] %v7138_v49 }
 0x147   :  { %5190 = vmatprep.subr.msk.mxu1 %vm26_vm0, %v6871_v26  ;;  %5182 = vmatprep.mubr.msk.f32.mxu0 %vm26_vm0, %v6878_v0 }
 0x148   :  { %5218 = vmatprep.mubr.msk.f32.mxu1 %vm26_vm0, %v6883_v54  ;;  %5513 = vset.pattern.permute.xlu0 %v5537_v4  ;;  %v7152_v4 = vld [vmem:[#allocation2 + $0x230] sm:$0xff] }
 0x149   :  { %5155 = vmatpush3.xpose.msk.msra.mxu0 %vm26_vm0, %v6376_v8  ;;  %2223 = vperm.xlu0 %5513, %v265_v2   ;;  %v6927_v8 = vld [vmem:[#allocation2 + $0x231] sm:$0xff] }
 0x14a   :  { %5191 = vmatpush3.xpose.msk.msra.mxu1 %vm26_vm0, %v6893_v62  ;;  %5156 = vmatprep.subr.msk.mxu0 %vm26_vm0, %v6427_v24  ;;  %v6929_v24 = vld [vmem:[#allocation2 + $0x2e9] sm:$0xff]  ;;  %v7154_v2 = vld [vmem:[#allocation2 + $0x232] sm:$0xff] }
 0x14b   :  { %5192 = vmatprep.subr.msk.mxu1 %vm26_vm0, %v6895_v22  ;;  %7969 = vst [vmem:[#allocation6_spill] sm:$0xff] %v7154_v2 }
 0x14d   :  { %5157 = vmatpush3.xpose.msk.msra.mxu0 %vm26_vm0, %v6386_v12  ;;  %2228 = vperm.xlu0 %5513, %v266_v20   ;;  %v6939_v12 = vld [vmem:[#allocation2 + $0x229] sm:$0xff] }
 0x14e   :  { %5193 = vmatpush3.xpose.msk.msra.mxu1 %vm26_vm0, %v6912_v16  ;;  %5158 = vmatprep.subr.msk.mxu0 %vm26_vm0, %v6178_v21  ;;  %v6941_v21 = vld [vmem:[#allocation2 + $0x2d9] sm:$0xff]  ;;  %v7156_v20 = vld [vmem:[#allocation2 + $0x2e8] sm:$0xff] }
 0x14f   :  { %5194 = vmatprep.subr.msk.mxu1 %vm26_vm0, %v6914_v56 }
 0x151   :  { %5159 = vmatpush3.xpose.msk.msra.mxu0 %vm26_vm0, %v6188_v51  ;;  %v6951_v51 = vld [vmem:[#allocation2 + $0x219] sm:$0xff] }
 0x152   :  { %5195 = vmatpush3.xpose.msk.msra.mxu1 %vm26_vm0, %v6927_v8  ;;  %5160 = vmatprep.subr.msk.mxu0 %vm26_vm0, %v6190_v52  ;;  %v6953_v52 = vld [vmem:[#allocation2 + $0x2d1] sm:$0xff] }
 0x153   :  { %5196 = vmatprep.subr.msk.mxu1 %vm26_vm0, %v6929_v24 }
 0x155   :  { %5161 = vmatpush3.xpose.msk.msra.mxu0 %vm26_vm0, %v6212_v57  ;;  %v6963_v57 = vld [vmem:[#allocation2 + $0x211] sm:$0xff] }
 0x156   :  { %5197 = vmatpush3.xpose.msk.msra.mxu1 %vm26_vm0, %v6939_v12  ;;  %5162 = vmatprep.subr.msk.mxu0 %vm26_vm0, %v6214_v58  ;;  %v6965_v58 = vld [vmem:[#allocation2 + $0x2c1] sm:$0xff] }
 0x157   :  { %5198 = vmatprep.subr.msk.mxu1 %vm26_vm0, %v6941_v21 }
 0x159   :  { %5163 = vmatpush3.xpose.msk.msra.mxu0 %vm26_vm0, %v6238_v23  ;;  %v6975_v23 = vld [vmem:[#allocation2 + $0x201] sm:$0xff] }
 0x15a   :  { %5199 = vmatpush3.xpose.msk.msra.mxu1 %vm26_vm0, %v6951_v51  ;;  %5164 = vmatprep.subr.msk.mxu0 %vm26_vm0, %v6240_v25  ;;  %v6977_v25 = vld [vmem:[#allocation2 + $0x2b9] sm:$0xff] }
 0x15b   :  { %5200 = vmatprep.subr.msk.mxu1 %vm26_vm0, %v6953_v52 }
 0x15d   :  { %5165 = vmatpush3.xpose.msk.msra.mxu0 %vm26_vm0, %v6254_v29  ;;  %v6987_v29 = vld [vmem:[#allocation2 + $0x1f9] sm:$0xff] }
 0x15e   :  { %5201 = vmatpush3.xpose.msk.msra.mxu1 %vm26_vm0, %v6963_v57  ;;  %5166 = vmatprep.subr.msk.mxu0 %vm26_vm0, %v6256_v60  ;;  %v6989_v60 = vld [vmem:[#allocation2 + $0x2a9] sm:$0xff] }
 0x15f   :  { %5202 = vmatprep.subr.msk.mxu1 %vm26_vm0, %v6965_v58 }
 0x161   :  { %5167 = vmatpush3.xpose.msk.msra.mxu0 %vm26_vm0, %v6266_v31  ;;  %v6999_v31 = vld [vmem:[#allocation2 + $0x1e9] sm:$0xff] }
 0x162   :  { %5203 = vmatpush3.xpose.msk.msra.mxu1 %vm26_vm0, %v6975_v23  ;;  %5168 = vmatprep.subr.msk.mxu0 %vm26_vm0, %v6268_v19  ;;  %v7001_v19 = vld [vmem:[#allocation2 + $0x2a1] sm:$0xff] }
 0x163   :  { %5204 = vmatprep.subr.msk.mxu1 %vm26_vm0, %v6977_v25 }
 0x165   :  { %5169 = vmatpush3.xpose.msk.msra.mxu0 %vm26_vm0, %v6278_v35  ;;  %v7013_v35 = vld [vmem:[#allocation2 + $0x291] sm:$0xff] }
 0x166   :  { %5205 = vmatpush3.xpose.msk.msra.mxu1 %vm26_vm0, %v6987_v29  ;;  %5170 = vmatprep.subr.msk.mxu0 %vm26_vm0, %v6280_v33  ;;  %v7011_v33 = vld [vmem:[#allocation2 + $0x1e1] sm:$0xff] }
 0x167   :  { %5206 = vmatprep.subr.msk.mxu1 %vm26_vm0, %v6989_v60 }
 0x169   :  { %5171 = vmatpush3.xpose.msk.msra.mxu0 %vm26_vm0, %v6290_v39  ;;  %v7023_v39 = vld [vmem:[#allocation2 + $0x1d1] sm:$0xff] }
 0x16a   :  { %5207 = vmatpush3.xpose.msk.msra.mxu1 %vm26_vm0, %v6999_v31  ;;  %5172 = vmatprep.subr.msk.mxu0 %vm26_vm0, %v6292_v37  ;;  %v2006_v37 = vld [vmem:[#allocation2 + $0x52] sm:$0xff]  ;;  %7957 = vst [vmem:[#allocation29_spill] sm:$0xff] %v7023_v39 }
 0x16b   :  { %5208 = vmatprep.subr.msk.mxu1 %vm26_vm0, %v7001_v19 }
 0x16d   :  { %5173 = vmatpush3.xpose.msk.msra.mxu0 %vm26_vm0, %v6302_v43  ;;  %v7033_v43 = vld [vmem:[#allocation2 + $0x1c9] sm:$0xff] }
 0x16e   :  { %5209 = vmatpush3.xpose.msk.msra.mxu1 %vm26_vm0, %v7011_v33  ;;  %5174 = vmatprep.subr.msk.mxu0 %vm26_vm0, %v6304_v41  ;;  %v2005_v41 = vld [vmem:[#allocation2 + $0x4a] sm:$0xff]  ;;  %7959 = vst [vmem:[#allocation33_spill] sm:$0xff] %v7033_v43 }
 0x16f   :  { %5210 = vmatprep.subr.msk.mxu1 %vm26_vm0, %v7013_v35 }
 0x171   :  { %5175 = vmatpush3.xpose.msk.msra.mxu0 %vm26_vm0, %v2006_v37  ;;  %v7158_v37 = vld [vmem:[#allocation2 + $0x2ea] sm:$0xff] }
 0x172   :  { %5211 = vmatpush3.xpose.msk.msra.mxu1 %vm26_vm0, %v7023_v39  ;;  %5176 = vmatprep.subr.msk.mxu0 %vm26_vm0, %v2021_v18  ;;  %7970 = vst [vmem:[#allocation7_spill] sm:$0xff] %v7158_v37  ;;  %v7168_v18 = vld [vmem:[#allocation2 + $0x228] sm:$0xff]  ;;  %v7322_v39 = vld [vmem:[#allocation2 + $0x338] sm:$0xff] }
 0x173   :  { %5212 = vmatprep.subr.msk.mxu1 %vm26_vm0, %v7025_v28  ;;  %v7312_v28 = vld [vmem:[#allocation2 + $0x270] sm:$0xff] }
 0x175   :  { %5177 = vmatpush3.xpose.msk.msra.mxu0 %vm26_vm0, %v2005_v41  ;;  %v7170_v41 = vld [vmem:[#allocation2 + $0x22a] sm:$0xff] }
 0x176   :  { %5213 = vmatpush3.xpose.msk.msra.mxu1 %vm26_vm0, %v7033_v43  ;;  %5178 = vmatprep.subr.msk.mxu0 %vm26_vm0, %v2020_v27  ;;  %7971 = vst [vmem:[#allocation8_spill] sm:$0xff] %v7170_v41  ;;  %v7172_v27 = vld [vmem:[#allocation2 + $0x2d8] sm:$0xff] }
 0x177   :  { %5214 = vmatprep.subr.msk.mxu1 %vm26_vm0, %v7035_v14  ;;  %v7302_v43 = vld [vmem:[#allocation2 + $0x27a] sm:$0xff] }
 0x178   :  { %7990 = vst [vmem:[#allocation27_spill] sm:$0xff] %v7302_v43 }
 0x179   :  { %5179 = vmatpush3.xpose.msk.msra.mxu0 %vm26_vm0, %v2004_v59  ;;  %v7174_v59 = vld [vmem:[#allocation2 + $0x2da] sm:$0xff] }
 0x17a   :  { %5215 = vmatpush3.xpose.msk.msra.mxu1 %vm26_vm0, %v2275_v6  ;;  %5180 = vmatprep.subr.msk.mxu0 %vm26_vm0, %v2019_v30  ;;  %7972 = vst [vmem:[#allocation9_spill] sm:$0xff] %v7174_v59  ;;  %v7184_v6 = vld [vmem:[#allocation2 + $0x218] sm:$0xff] }
 0x17b   :  { %5216 = vmatprep.subr.msk.mxu1 %vm26_vm0, %v7043_v32  ;;  %v7186_v30 = vld [vmem:[#allocation2 + $0x21a] sm:$0xff] }
 0x17c   :  { %7973 = vst [vmem:[#allocation10_spill] sm:$0xff] %v7186_v30 }
 0x17d   :  { %5181 = vmatpush3.xpose.msk.msra.mxu0 %vm26_vm0, %v2003_v34  ;;  %v7188_v34 = vld [vmem:[#allocation2 + $0x2d0] sm:$0xff] }
 0x17e   :  { %5217 = vmatpush3.xpose.msk.msra.mxu1 %vm26_vm0, %v2274_v36  ;;  %5222 = vmatprep.subr.msk.mxu0 %vm26_vm0, %v7050_v38  ;;  %v7190_v36 = vld [vmem:[#allocation2 + $0x2d2] sm:$0xff] }
 0x17f   :  { %5258 = vmatprep.subr.msk.mxu1 %vm26_vm0, %v7052_v40  ;;  %7974 = vst [vmem:[#allocation11_spill] sm:$0xff] %v7190_v36  ;;  %v7300_v40 = vld [vmem:[#allocation2 + $0x278] sm:$0xff] }
 0x180   :  { %5183 = vmatmul.mubr.msk.f32.vlgmr.msra.gmra.mxu0 %vm26_vm0, %v6878_v0  ;;  %v7140_v0 = vld [vmem:[#allocation2 + $0x2f0] sm:$0xff] }
 0x181   :  { %5219 = vmatmul.mubr.msk.f32.vlgmr.msra.gmra.mxu1 %vm26_vm0, %v6883_v54  ;;  %5223 = vmatpush3.xpose.msk.msra.mxu0 %vm26_vm0, %v7060_v42  ;;  %v7142_v54 = vld [vmem:[#allocation2 + $0x2f2] sm:$0xff] }
 0x182   :  { %5259 = vmatpush3.xpose.msk.msra.mxu1 %vm26_vm0, %v7062_v44  ;;  %5184 = vmatprep.mubr.msk.f32.mxu0 %vm26_vm0, %v4501_v46  ;;  %7968 = vst [vmem:[#allocation38_spill] sm:$0xff] %v7142_v54  ;;  %v7286_v44 = vld [vmem:[#allocation2 + $0x28a] sm:$0xff] }
 0x183   :  { %5224 = vmatprep.subr.msk.mxu0 %vm26_vm0, %v7067_v48  ;;  %5260 = vmatprep.subr.msk.mxu1 %vm26_vm0, %v7073_v53  ;;  %v7284_v53 = vld [vmem:[#allocation2 + $0x288] sm:$0xff]  ;;  %7987 = vst [vmem:[#allocation24_spill] sm:$0xff] %v7286_v44 }
 0x184   :  { %5220 = vmatprep.mubr.msk.f32.mxu1 %vm26_vm0, %v4537_v55  ;;  %5185 = vmatmul.mubr.msk.f32.gmra.mxu0 %vm26_vm0, %v4501_v46  ;;  %v7200_v46 = vld [vmem:[#allocation2 + $0x210] sm:$0xff]  ;;  %7986 = vst [vmem:[#allocation23_spill] sm:$0xff] %v7284_v53 }
 0x185   :  { %5221 = vmatmul.mubr.msk.f32.gmra.mxu1 %vm26_vm0, %v4537_v55  ;;  %5225 = vmatpush3.xpose.msk.msra.mxu0 %vm26_vm0, %v7085_v61  ;;  %v7202_v55 = vld [vmem:[#allocation2 + $0x212] sm:$0xff] }
 0x186   :  { %5261 = vmatpush3.xpose.msk.msra.mxu1 %vm26_vm0, %v7087_v63  ;;  %5226 = vmatprep.subr.msk.mxu0 %vm26_vm0, %v7091_v1  ;;  %7975 = vst [vmem:[#allocation12_spill] sm:$0xff] %v7202_v55  ;;  %v7270_v63 = vld [vmem:[#allocation2 + $0x292] sm:$0xff] }
 0x187   :  { %5262 = vmatprep.subr.msk.mxu1 %vm26_vm0, %v7093_v3  ;;  %5254 = vmatprep.mubr.msk.f32.mxu0 %vm26_vm0, %v7101_v5  ;;  %v7268_v3 = vld [vmem:[#allocation2 + $0x290] sm:$0xff]  ;;  %7984 = vst [vmem:[#allocation21_spill] sm:$0xff] %v7270_v63 }
 0x188   :  { %5290 = vmatprep.mubr.msk.f32.mxu1 %vm26_vm0, %v7106_v7 }
 0x189   :  { %5227 = vmatpush3.xpose.msk.msra.mxu0 %vm26_vm0, %v7116_v9 }
 0x18a   :  { %5263 = vmatpush3.xpose.msk.msra.mxu1 %vm26_vm0, %v7118_v11  ;;  %5228 = vmatprep.subr.msk.mxu0 %vm26_vm0, %v7120_v10  ;;  %v7254_v11 = vld [vmem:[#allocation2 + $0x2a2] sm:$0xff] }
 0x18b   :  { %5264 = vmatprep.subr.msk.mxu1 %vm26_vm0, %v7122_v15  ;;  %v7252_v15 = vld [vmem:[#allocation2 + $0x2a0] sm:$0xff]  ;;  %7982 = vst [vmem:[#allocation19_spill] sm:$0xff] %v7254_v11 }
 0x18d   :  { %5229 = vmatpush3.xpose.msk.msra.mxu0 %vm26_vm0, %v7136_v45 }
 0x18e   :  { %5265 = vmatpush3.xpose.msk.msra.mxu1 %vm26_vm0, %v7138_v49  ;;  %5230 = vmatprep.subr.msk.mxu0 %vm26_vm0, %v7140_v0  ;;  %v7238_v49 = vld [vmem:[#allocation2 + $0x2aa] sm:$0xff] }
 0x18f   :  { %5266 = vmatprep.subr.msk.mxu1 %vm26_vm0, %v7142_v54  ;;  %v7236_v54 = vld [vmem:[#allocation2 + $0x2a8] sm:$0xff]  ;;  %7980 = vst [vmem:[#allocation17_spill] sm:$0xff] %v7238_v49 }
 0x191   :  { %5231 = vmatpush3.xpose.msk.msra.mxu0 %vm26_vm0, %v7152_v4 }
 0x192   :  { %5267 = vmatpush3.xpose.msk.msra.mxu1 %vm26_vm0, %v7154_v2  ;;  %5232 = vmatprep.subr.msk.mxu0 %vm26_vm0, %v7156_v20  ;;  %v7222_v2 = vld [vmem:[#allocation2 + $0x2ba] sm:$0xff] }
 0x193   :  { %5268 = vmatprep.subr.msk.mxu1 %vm26_vm0, %v7158_v37  ;;  %v7220_v37 = vld [vmem:[#allocation2 + $0x2b8] sm:$0xff]  ;;  %7978 = vst [vmem:[#allocation15_spill] sm:$0xff] %v7222_v2 }
 0x195   :  { %5233 = vmatpush3.xpose.msk.msra.mxu0 %vm26_vm0, %v7168_v18 }
 0x196   :  { %5269 = vmatpush3.xpose.msk.msra.mxu1 %vm26_vm0, %v7170_v41  ;;  %5234 = vmatprep.subr.msk.mxu0 %vm26_vm0, %v7172_v27  ;;  %v7206_v41 = vld [vmem:[#allocation2 + $0x2c2] sm:$0xff] }
 0x197   :  { %5270 = vmatprep.subr.msk.mxu1 %vm26_vm0, %v7174_v59  ;;  %v7204_v59 = vld [vmem:[#allocation2 + $0x2c0] sm:$0xff]  ;;  %7976 = vst [vmem:[#allocation13_spill] sm:$0xff] %v7206_v41 }
 0x199   :  { %5235 = vmatpush3.xpose.msk.msra.mxu0 %vm26_vm0, %v7184_v6 }
 0x19a   :  { %5271 = vmatpush3.xpose.msk.msra.mxu1 %vm26_vm0, %v7186_v30  ;;  %5236 = vmatprep.subr.msk.mxu0 %vm26_vm0, %v7188_v34  ;;  %v7218_v30 = vld [vmem:[#allocation2 + $0x202] sm:$0xff] }
 0x19b   :  { %5272 = vmatprep.subr.msk.mxu1 %vm26_vm0, %v7190_v36  ;;  %v7216_v36 = vld [vmem:[#allocation2 + $0x200] sm:$0xff]  ;;  %7977 = vst [vmem:[#allocation14_spill] sm:$0xff] %v7218_v30 }
 0x19d   :  { %5237 = vmatpush3.xpose.msk.msra.mxu0 %vm26_vm0, %v7200_v46 }
 0x19e   :  { %5273 = vmatpush3.xpose.msk.msra.mxu1 %vm26_vm0, %v7202_v55  ;;  %5238 = vmatprep.subr.msk.mxu0 %vm26_vm0, %v7204_v59  ;;  %v7234_v55 = vld [vmem:[#allocation2 + $0x1fa] sm:$0xff] }
 0x19f   :  { %5274 = vmatprep.subr.msk.mxu1 %vm26_vm0, %v7206_v41  ;;  %v7232_v41 = vld [vmem:[#allocation2 + $0x1f8] sm:$0xff]  ;;  %7979 = vst [vmem:[#allocation16_spill] sm:$0xff] %v7234_v55 }
 0x1a1   :  { %5239 = vmatpush3.xpose.msk.msra.mxu0 %vm26_vm0, %v7216_v36 }
 0x1a2   :  { %5275 = vmatpush3.xpose.msk.msra.mxu1 %vm26_vm0, %v7218_v30  ;;  %5240 = vmatprep.subr.msk.mxu0 %vm26_vm0, %v7220_v37  ;;  %v7250_v30 = vld [vmem:[#allocation2 + $0x1ea] sm:$0xff] }
 0x1a3   :  { %5276 = vmatprep.subr.msk.mxu1 %vm26_vm0, %v7222_v2  ;;  %v7248_v2 = vld [vmem:[#allocation2 + $0x1e8] sm:$0xff]  ;;  %7981 = vst [vmem:[#allocation18_spill] sm:$0xff] %v7250_v30 }
 0x1a5   :  { %5241 = vmatpush3.xpose.msk.msra.mxu0 %vm26_vm0, %v7232_v41 }
 0x1a6   :  { %5277 = vmatpush3.xpose.msk.msra.mxu1 %vm26_vm0, %v7234_v55  ;;  %5242 = vmatprep.subr.msk.mxu0 %vm26_vm0, %v7236_v54  ;;  %v7266_v55 = vld [vmem:[#allocation2 + $0x1e2] sm:$0xff] }
 0x1a7   :  { %5278 = vmatprep.subr.msk.mxu1 %vm26_vm0, %v7238_v49  ;;  %v7264_v49 = vld [vmem:[#allocation2 + $0x1e0] sm:$0xff]  ;;  %7983 = vst [vmem:[#allocation20_spill] sm:$0xff] %v7266_v55 }
 0x1a9   :  { %5243 = vmatpush3.xpose.msk.msra.mxu0 %vm26_vm0, %v7248_v2 }
 0x1aa   :  { %5279 = vmatpush3.xpose.msk.msra.mxu1 %vm26_vm0, %v7250_v30  ;;  %5244 = vmatprep.subr.msk.mxu0 %vm26_vm0, %v7252_v15  ;;  %v7282_v30 = vld [vmem:[#allocation2 + $0x1d2] sm:$0xff] }
 0x1ab   :  { %5280 = vmatprep.subr.msk.mxu1 %vm26_vm0, %v7254_v11  ;;  %v7280_v11 = vld [vmem:[#allocation2 + $0x1d0] sm:$0xff]  ;;  %7985 = vst [vmem:[#allocation22_spill] sm:$0xff] %v7282_v30 }
 0x1ad   :  { %5245 = vmatpush3.xpose.msk.msra.mxu0 %vm26_vm0, %v7264_v49 }
 0x1ae   :  { %5281 = vmatpush3.xpose.msk.msra.mxu1 %vm26_vm0, %v7266_v55  ;;  %5246 = vmatprep.subr.msk.mxu0 %vm26_vm0, %v7268_v3  ;;  %v7298_v55 = vld [vmem:[#allocation2 + $0x1ca] sm:$0xff] }
 0x1af   :  { %5282 = vmatprep.subr.msk.mxu1 %vm26_vm0, %v7270_v63  ;;  %v7296_v63 = vld [vmem:[#allocation2 + $0x1c8] sm:$0xff]  ;;  %7989 = vst [vmem:[#allocation26_spill] sm:$0xff] %v7298_v55 }
 0x1b0   :  { %7988 = vst [vmem:[#allocation25_spill] sm:$0xff] %v7296_v63 }
 0x1b1   :  { %5247 = vmatpush3.xpose.msk.msra.mxu0 %vm26_vm0, %v7280_v11 }
 0x1b2   :  { %5283 = vmatpush3.xpose.msk.msra.mxu1 %vm26_vm0, %v7282_v30  ;;  %5248 = vmatprep.subr.msk.mxu0 %vm26_vm0, %v7284_v53  ;;  %v2667_v30 = vld [vmem:[#allocation2 + $0x1ba] sm:$0xff]  ;;  %v7314_v53 = vld [vmem:[#allocation2 + $0x272] sm:$0xff] }
 0x1b3   :  { %5284 = vmatprep.subr.msk.mxu1 %vm26_vm0, %v7286_v44  ;;  %v2241_v44 = vld [vmem:[#allocation2 + $0x1b8] sm:$0xff] }
 0x1b5   :  { %5249 = vmatpush3.xpose.msk.msra.mxu0 %vm26_vm0, %v7296_v63  ;;  %v2666_v63 = vld [vmem:[#allocation2 + $0x1b2] sm:$0xff] }
 0x1b6   :  { %5285 = vmatpush3.xpose.msk.msra.mxu1 %vm26_vm0, %v7298_v55  ;;  %5250 = vmatprep.subr.msk.mxu0 %vm26_vm0, %v7300_v40  ;;  %v2240_v55 = vld [vmem:[#allocation2 + $0x1b0] sm:$0xff] }
 0x1b7   :  { %5286 = vmatprep.subr.msk.mxu1 %vm26_vm0, %v7302_v43  ;;  %v7324_v43 = vld [vmem:[#allocation2 + $0x339] sm:$0xff] }
 0x1b9   :  { %5251 = vmatpush3.xpose.msk.msra.mxu0 %vm26_vm0, %v2241_v44  ;;  %v2273_v44 = vld [vmem:[%s7803_s1 + $0x8] sm:$0xff] }
 0x1ba   :  { %5287 = vmatpush3.xpose.msk.msra.mxu1 %vm26_vm0, %v2667_v30  ;;  %5252 = vmatprep.subr.msk.mxu0 %vm26_vm0, %v7312_v28  ;;  %v7335_v30 = vld [vmem:[#allocation2 + $0x330] sm:$0xff] }
 0x1bb   :  { %5288 = vmatprep.subr.msk.mxu1 %vm26_vm0, %v7314_v53 }
 0x1bd   :  { %5253 = vmatpush3.xpose.msk.msra.mxu0 %vm26_vm0, %v2240_v55  ;;  %v7341_v55 = vld [vmem:[#allocation2 + $0x331] sm:$0xff] }
 0x1be   :  { %5289 = vmatpush3.xpose.msk.msra.mxu1 %vm26_vm0, %v2666_v63  ;;  %5294 = vmatprep.subr.msk.mxu0 %vm26_vm0, %v7322_v39  ;;  %v4607_v63 = vld [vmem:[%s7803_s1 + $0x28] sm:$0xff] }
 0x1bf   :  { %5330 = vmatprep.subr.msk.mxu1 %vm26_vm0, %v7324_v43 }
 0x1c0   :  { %5255 = vmatmul.mubr.msk.f32.vlgmr.msra.gmra.mxu0 %vm26_vm0, %v7101_v5  ;;  %v7361_v5 = vld [vmem:[%s7803_s1 + $0x30] sm:$0xff] }
 0x1c1   :  { %5291 = vmatmul.mubr.msk.f32.vlgmr.msra.gmra.mxu1 %vm26_vm0, %v7106_v7  ;;  %5295 = vmatpush3.xpose.msk.msra.mxu0 %vm26_vm0, %v7300_v40  ;;  %v8006_v7 = vld [vmem:[#allocation6_spill] sm:$0xff] }
 0x1c2   :  { %5331 = vmatpush3.xpose.msk.msra.mxu1 %vm26_vm0, %v7035_v14  ;;  %5256 = vmatprep.mubr.msk.f32.mxu0 %vm26_vm0, %v2273_v44  ;;  %v7366_v14 = vld [vmem:[%s7803_s1 + $0x40] sm:$0xff] }
 0x1c3   :  { %5296 = vmatprep.subr.msk.mxu0 %vm26_vm0, %v7335_v30  ;;  %5332 = vmatprep.subr.msk.mxu1 %vm26_vm0, %v7341_v55 }
 0x1c4   :  { %5292 = vmatprep.mubr.msk.f32.mxu1 %vm26_vm0, %v4607_v63  ;;  %5257 = vmatmul.mubr.msk.f32.gmra.mxu0 %vm26_vm0, %v2273_v44  ;;  %v8007_v44 = vld [vmem:[#allocation7_spill] sm:$0xff] }
 0x1c5   :  { %5293 = vmatmul.mubr.msk.f32.gmra.mxu1 %vm26_vm0, %v4607_v63  ;;  %5297 = vmatpush3.xpose.msk.msra.mxu0 %vm26_vm0, %v7312_v28  ;;  %v8009_v63 = vld [vmem:[#allocation9_spill] sm:$0xff] }
 0x1c6   :  { %5333 = vmatpush3.xpose.msk.msra.mxu1 %vm26_vm0, %v7043_v32  ;;  %5298 = vmatprep.subr.msk.mxu0 %vm26_vm0, %v7050_v38  ;;  %v8003_v32 = vld [vmem:[#allocation37_spill] sm:$0xff] }
 0x1c7   :  { %5334 = vmatprep.subr.msk.mxu1 %vm26_vm0, %v6837_v17  ;;  %5326 = vmatprep.mubr.msk.f32.mxu0 %vm26_vm0, %v7361_v5  ;;  %v7991_v17 = vld [vmem:[#allocation29_spill] sm:$0xff] }
 0x1c8   :  { %5362 = vmatprep.mubr.msk.f32.mxu1 %vm26_vm0, %v7366_v14 }
 0x1c9   :  { %5299 = vmatpush3.xpose.msk.msra.mxu0 %vm26_vm0, %v7060_v42 }
 0x1ca   :  { %5335 = vmatpush3.xpose.msk.msra.mxu1 %vm26_vm0, %v6846_v13  ;;  %5300 = vmatprep.subr.msk.mxu0 %vm26_vm0, %v7067_v48  ;;  %v7992_v13 = vld [vmem:[#allocation23_spill] sm:$0xff] }
 0x1cb   :  { %5336 = vmatprep.subr.msk.mxu1 %vm26_vm0, %v6855_v47  ;;  %v7993_v47 = vld [vmem:[#allocation31_spill] sm:$0xff] }
 0x1cd   :  { %5301 = vmatpush3.xpose.msk.msra.mxu0 %vm26_vm0, %v7085_v61 }
 0x1ce   :  { %5337 = vmatpush3.xpose.msk.msra.mxu1 %vm26_vm0, %v6866_v50  ;;  %5302 = vmatprep.subr.msk.mxu0 %vm26_vm0, %v7091_v1  ;;  %v7484_v50 = vld [vmem:[#allocation2 + $0x33a] sm:$0xff] }
 0x1cf   :  { %5338 = vmatprep.subr.msk.mxu1 %vm26_vm0, %v6871_v26  ;;  %v3567_v26 = vld [vmem:[#allocation2 + $0x350] sm:$0xff] }
 0x1d1   :  { %5303 = vmatpush3.xpose.msk.msra.mxu0 %vm26_vm0, %v7116_v9 }
 0x1d2   :  { %5339 = vmatpush3.xpose.msk.msra.mxu1 %vm26_vm0, %v6893_v62  ;;  %5304 = vmatprep.subr.msk.mxu0 %vm26_vm0, %v7120_v10  ;;  %v7994_v62 = vld [vmem:[#allocation25_spill] sm:$0xff] }
 0x1d3   :  { %5340 = vmatprep.subr.msk.mxu1 %vm26_vm0, %v6895_v22  ;;  %v7995_v22 = vld [vmem:[#allocation33_spill] sm:$0xff] }
 0x1d5   :  { %5305 = vmatpush3.xpose.msk.msra.mxu0 %vm26_vm0, %v7136_v45 }
 0x1d6   :  { %5341 = vmatpush3.xpose.msk.msra.mxu1 %vm26_vm0, %v6912_v16  ;;  %5306 = vmatprep.subr.msk.mxu0 %vm26_vm0, %v7140_v0  ;;  %v4643_v16 = vld [vmem:[%s7803_s1 + $0x38] sm:$0xff] }
 0x1d7   :  { %5342 = vmatprep.subr.msk.mxu1 %vm26_vm0, %v6914_v56  ;;  %v7496_v56 = vld [vmem:[#allocation2 + $0x332] sm:$0xff] }
 0x1d9   :  { %5307 = vmatpush3.xpose.msk.msra.mxu0 %vm26_vm0, %v7152_v4 }
 0x1da   :  { %5343 = vmatpush3.xpose.msk.msra.mxu1 %vm26_vm0, %v6927_v8  ;;  %5308 = vmatprep.subr.msk.mxu0 %vm26_vm0, %v7156_v20  ;;  %v3566_v8 = vld [vmem:[#allocation2 + $0x348] sm:$0xff] }
 0x1db   :  { %5344 = vmatprep.subr.msk.mxu1 %vm26_vm0, %v6929_v24  ;;  %v4679_v24 = vld [vmem:[%s7803_s1 + $0x48] sm:$0xff] }
 0x1dd   :  { %5309 = vmatpush3.xpose.msk.msra.mxu0 %vm26_vm0, %v7168_v18 }
 0x1de   :  { %5345 = vmatpush3.xpose.msk.msra.mxu1 %vm26_vm0, %v6939_v12  ;;  %5310 = vmatprep.subr.msk.mxu0 %vm26_vm0, %v7172_v27  ;;  %v7996_v12 = vld [vmem:[#allocation27_spill] sm:$0xff] }
 0x1df   :  { %5346 = vmatprep.subr.msk.mxu1 %vm26_vm0, %v6941_v21  ;;  %v7519_v21 = vld [vmem:[%s7803_s1 + $0x50] sm:$0xff] }
 0x1e1   :  { %5311 = vmatpush3.xpose.msk.msra.mxu0 %vm26_vm0, %v7184_v6 }
 0x1e2   :  { %5347 = vmatpush3.xpose.msk.msra.mxu1 %vm26_vm0, %v6951_v51  ;;  %5312 = vmatprep.subr.msk.mxu0 %vm26_vm0, %v7188_v34  ;;  %v7524_v51 = vld [vmem:[%s7803_s1 + $0x60] sm:$0xff] }
 0x1e3   :  { %5348 = vmatprep.subr.msk.mxu1 %vm26_vm0, %v6953_v52  ;;  %v7997_v52 = vld [vmem:[#allocation34_spill] sm:$0xff] }
 0x1e5   :  { %5313 = vmatpush3.xpose.msk.msra.mxu0 %vm26_vm0, %v7200_v46 }
 0x1e6   :  { %5349 = vmatpush3.xpose.msk.msra.mxu1 %vm26_vm0, %v6963_v57  ;;  %5314 = vmatprep.subr.msk.mxu0 %vm26_vm0, %v7204_v59  ;;  %v504_v57 = vpop.f32.mrf.mxu0 }
 0x1e7   :  { %5350 = vmatprep.subr.msk.mxu1 %vm26_vm0, %v6965_v58  ;;  %v7998_v58 = vld [vmem:[#allocation36_spill] sm:$0xff] }
 0x1e9   :  { %5315 = vmatpush3.xpose.msk.msra.mxu0 %vm26_vm0, %v7216_v36 }
 0x1ea   :  { %5351 = vmatpush3.xpose.msk.msra.mxu1 %vm26_vm0, %v6975_v23  ;;  %5316 = vmatprep.subr.msk.mxu0 %vm26_vm0, %v7220_v37  ;;  %v7999_v23 = vld [vmem:[#allocation41_spill] sm:$0xff] }
 0x1eb   :  { %5352 = vmatprep.subr.msk.mxu1 %vm26_vm0, %v6977_v25  ;;  %v506_v25 = vpop.f32.mrf.mxu0 }
 0x1ed   :  { %5317 = vmatpush3.xpose.msk.msra.mxu0 %vm26_vm0, %v7232_v41 }
 0x1ee   :  { %5353 = vmatpush3.xpose.msk.msra.mxu1 %vm26_vm0, %v6987_v29  ;;  %5318 = vmatprep.subr.msk.mxu0 %vm26_vm0, %v7236_v54  ;;  %v8000_v29 = vld [vmem:[#allocation32_spill] sm:$0xff] }
 0x1ef   :  { %5354 = vmatprep.subr.msk.mxu1 %vm26_vm0, %v6989_v60  ;;  %v683_v60 = vpop.f32.mrf.mxu1 }
 0x1f1   :  { %5319 = vmatpush3.xpose.msk.msra.mxu0 %vm26_vm0, %v7248_v2 }
 0x1f2   :  { %5355 = vmatpush3.xpose.msk.msra.mxu1 %vm26_vm0, %v6999_v31  ;;  %5320 = vmatprep.subr.msk.mxu0 %vm26_vm0, %v7252_v15  ;;  %v510_v31 = vpop.f32.mrf.mxu0 }
 0x1f3   :  { %5356 = vmatprep.subr.msk.mxu1 %vm26_vm0, %v7001_v19  ;;  %v8001_v19 = vld [vmem:[#allocation35_spill] sm:$0xff] }
 0x1f5   :  { %5321 = vmatpush3.xpose.msk.msra.mxu0 %vm26_vm0, %v7264_v49 }
 0x1f6   :  { %5357 = vmatpush3.xpose.msk.msra.mxu1 %vm26_vm0, %v7011_v33  ;;  %5322 = vmatprep.subr.msk.mxu0 %vm26_vm0, %v7268_v3  ;;  %v8002_v33 = vld [vmem:[#allocation39_spill] sm:$0xff] }
 0x1f7   :  { %5358 = vmatprep.subr.msk.mxu1 %vm26_vm0, %v7013_v35  ;;  %v685_v35 = vpop.f32.mrf.mxu1 }
 0x1f9   :  { %5323 = vmatpush3.xpose.msk.msra.mxu0 %vm26_vm0, %v7280_v11 }
 0x1fa   :  { %5359 = vmatpush3.xpose.msk.msra.mxu1 %vm26_vm0, %v7991_v17  ;;  %5324 = vmatprep.subr.msk.mxu0 %vm26_vm0, %v7992_v13  ;;  %v8012_v17 = vld [vmem:[#allocation12_spill] sm:$0xff] }
 0x1fb   :  { %5360 = vmatprep.subr.msk.mxu1 %vm26_vm0, %v7993_v47 }
 0x1fd   :  { %5325 = vmatpush3.xpose.msk.msra.mxu0 %vm26_vm0, %v7994_v62 }
 0x1fe   :  { %5361 = vmatpush3.xpose.msk.msra.mxu1 %vm26_vm0, %v7995_v22  ;;  %5366 = vmatprep.subr.msk.mxu0 %vm26_vm0, %v7484_v50  ;;  %v684_v22 = vadd.f32 %v683_v60, %v504_v57 }
 0x1ff   :  { %5402 = vmatprep.subr.msk.mxu1 %vm26_vm0, %v3567_v26  ;;  %v8014_v26 = vld [vmem:[#allocation14_spill] sm:$0xff] }
 0x200   :  { %5327 = vmatmul.mubr.msk.f32.vlgmr.msra.gmra.mxu0 %vm26_vm0, %v7361_v5 }
 0x201   :  { %5363 = vmatmul.mubr.msk.f32.vlgmr.msra.gmra.mxu1 %vm26_vm0, %v7366_v14  ;;  %5367 = vmatpush3.xpose.msk.msra.mxu0 %vm26_vm0, %v7996_v12  ;;  %v8011_v14 = vld [vmem:[#allocation11_spill] sm:$0xff] }
 0x202   :  { %5403 = vmatpush3.xpose.msk.msra.mxu1 %vm26_vm0, %v7268_v3  ;;  %5328 = vmatprep.mubr.msk.f32.mxu0 %vm26_vm0, %v4643_v16  ;;  %v8005_v3 = vld [vmem:[#allocation38_spill] sm:$0xff] }
 0x203   :  { %5368 = vmatprep.subr.msk.mxu0 %vm26_vm0, %v7496_v56  ;;  %5404 = vmatprep.subr.msk.mxu1 %vm26_vm0, %v3566_v8 }
 0x204   :  { %5364 = vmatprep.mubr.msk.f32.mxu1 %vm26_vm0, %v4679_v24  ;;  %5329 = vmatmul.mubr.msk.f32.gmra.mxu0 %vm26_vm0, %v4643_v16  ;;  %v8016_v16 = vld [vmem:[#allocation16_spill] sm:$0xff] }
 0x205   :  { %5365 = vmatmul.mubr.msk.f32.gmra.mxu1 %vm26_vm0, %v4679_v24  ;;  %5369 = vmatpush3.xpose.msk.msra.mxu0 %vm26_vm0, %v7314_v53 }
 0x206   :  { %5405 = vmatpush3.xpose.msk.msra.mxu1 %vm26_vm0, %v7992_v13  ;;  %5370 = vmatprep.subr.msk.mxu0 %vm26_vm0, %v7997_v52  ;;  %v8013_v13 = vld [vmem:[#allocation13_spill] sm:$0xff] }
 0x207   :  { %5406 = vmatprep.subr.msk.mxu1 %vm26_vm0, %v7322_v39  ;;  %5398 = vmatprep.mubr.msk.f32.mxu0 %vm26_vm0, %v7519_v21  ;;  %v512_v39 = vpop.f32.mrf.mxu0 }
 0x208   :  { %5434 = vmatprep.mubr.msk.f32.mxu1 %vm26_vm0, %v7524_v51 }
 0x209   :  { %5371 = vmatpush3.xpose.msk.msra.mxu0 %vm26_vm0, %v7998_v58 }
 0x20a   :  { %5407 = vmatpush3.xpose.msk.msra.mxu1 %vm26_vm0, %v7300_v40  ;;  %5372 = vmatprep.subr.msk.mxu0 %vm26_vm0, %v7999_v23  ;;  %v8004_v40 = vld [vmem:[#allocation40_spill] sm:$0xff]  ;;  %v8018_v23 = vld [vmem:[#allocation18_spill] sm:$0xff] }
 0x20b   :  { %5408 = vmatprep.subr.msk.mxu1 %vm26_vm0, %v7335_v30 }
 0x20d   :  { %5373 = vmatpush3.xpose.msk.msra.mxu0 %vm26_vm0, %v8000_v29 }
 0x20e   :  { %5409 = vmatpush3.xpose.msk.msra.mxu1 %vm26_vm0, %v7312_v28  ;;  %5374 = vmatprep.subr.msk.mxu0 %vm26_vm0, %v8001_v19  ;;  %v689_v28 = vpop.f32.mrf.mxu1 }
 0x20f   :  { %5410 = vmatprep.subr.msk.mxu1 %vm26_vm0, %v7050_v38  ;;  %v897_v38 = vpop.f32.mrf.mxu0 }
 0x210   :  { %v908_v8 = vadd.f32 %v897_v38, %v684_v22 }
 0x211   :  { %5375 = vmatpush3.xpose.msk.msra.mxu0 %vm26_vm0, %v8002_v33  ;;  %v899_v11 = vpop.f32.mrf.mxu0 }
 0x212   :  { %5411 = vmatpush3.xpose.msk.msra.mxu1 %vm26_vm0, %v7060_v42  ;;  %5376 = vmatprep.subr.msk.mxu0 %vm26_vm0, %v8003_v32  ;;  %v691_v42 = vpop.f32.mrf.mxu1 }
 0x213   :  { %5412 = vmatprep.subr.msk.mxu1 %vm26_vm0, %v7067_v48  ;;  %v903_v30 = vpop.f32.mrf.mxu0 }
 0x214   :  { %v1115_v48 = vpop.f32.mrf.mxu1 }
 0x215   :  { %5377 = vmatpush3.xpose.msk.msra.mxu0 %vm26_vm0, %v8004_v40 }
 0x216   :  { %5413 = vmatpush3.xpose.msk.msra.mxu1 %vm26_vm0, %v7085_v61  ;;  %5378 = vmatprep.subr.msk.mxu0 %vm26_vm0, %v8005_v3  ;;  %v8008_v61 = vld [vmem:[#allocation8_spill] sm:$0xff] }
 0x217   :  { %5414 = vmatprep.subr.msk.mxu1 %vm26_vm0, %v7091_v1  ;;  %v1117_v1 = vpop.f32.mrf.mxu1 }
 0x219   :  { %5379 = vmatpush3.xpose.msk.msra.mxu0 %vm26_vm0, %v8006_v7  ;;  %v1121_v5 = vpop.f32.mrf.mxu1 }
 0x21a   :  { %5415 = vmatpush3.xpose.msk.msra.mxu1 %vm26_vm0, %v7116_v9  ;;  %5380 = vmatprep.subr.msk.mxu0 %vm26_vm0, %v8007_v44  ;;  %v8010_v9 = vld [vmem:[#allocation10_spill] sm:$0xff] }
 0x21b   :  { %5416 = vmatprep.subr.msk.mxu1 %vm26_vm0, %v7120_v10  ;;  %v905_v10 = vpop.f32.mrf.mxu0 }
 0x21d   :  { %5381 = vmatpush3.xpose.msk.msra.mxu0 %vm26_vm0, %v8008_v61  ;;  %v3784_v61 = vld [vmem:[#allocation2 + $0x351] sm:$0xff] }
 0x21e   :  { %5417 = vmatpush3.xpose.msk.msra.mxu1 %vm26_vm0, %v7136_v45  ;;  %5382 = vmatprep.subr.msk.mxu0 %vm26_vm0, %v8009_v63  ;;  %v1333_v45 = vpop.f32.mrf.mxu0 }
 0x21f   :  { %5418 = vmatprep.subr.msk.mxu1 %vm26_vm0, %v7140_v0  ;;  %v1123_v0 = vpop.f32.mrf.mxu1 }
 0x220   :  { %v1335_v47 = vpop.f32.mrf.mxu0 }
 0x221   :  { %5383 = vmatpush3.xpose.msk.msra.mxu0 %vm26_vm0, %v8010_v9  ;;  %v8024_v9 = vld [vmem:[#allocation26_spill] sm:$0xff] }
 0x222   :  { %5419 = vmatpush3.xpose.msk.msra.mxu1 %vm26_vm0, %v7152_v4  ;;  %5384 = vmatprep.subr.msk.mxu0 %vm26_vm0, %v8011_v14  ;;  %v1551_v4 = vpop.f32.mrf.mxu1  ;;  %v1339_v62 = vpop.f32.mrf.mxu0 }
 0x223   :  { %5420 = vmatprep.subr.msk.mxu1 %vm26_vm0, %v7156_v20  ;;  %v8015_v20 = vld [vmem:[#allocation15_spill] sm:$0xff] }
 0x224   :  { %v1341_v24 = vpop.f32.mrf.mxu0 }
 0x225   :  { %5385 = vmatpush3.xpose.msk.msra.mxu0 %vm26_vm0, %v8012_v17 }
 0x226   :  { %5421 = vmatpush3.xpose.msk.msra.mxu1 %vm26_vm0, %v7168_v18  ;;  %5386 = vmatprep.subr.msk.mxu0 %vm26_vm0, %v8013_v13  ;;  %v1553_v18 = vpop.f32.mrf.mxu1  ;;  %v1770_v57 = vpop.f32.mrf.mxu0  ;;  %v3783_v13 = vld [vmem:[#allocation2 + $0x349] sm:$0xff] }
 0x227   :  { %5422 = vmatprep.subr.msk.mxu1 %vm26_vm0, %v7172_v27  ;;  %v8017_v27 = vld [vmem:[#allocation17_spill] sm:$0xff] }
 0x228   :  { %v1557_v52 = vpop.f32.mrf.mxu1  ;;  %v1772_v32 = vpop.f32.mrf.mxu0 }
 0x229   :  { %5387 = vmatpush3.xpose.msk.msra.mxu0 %vm26_vm0, %v8014_v26 }
 0x22a   :  { %5423 = vmatpush3.xpose.msk.msra.mxu1 %vm26_vm0, %v7184_v6  ;;  %5388 = vmatprep.subr.msk.mxu0 %vm26_vm0, %v8015_v20  ;;  %v686_v6 = vadd.f32 %v685_v35, %v506_v25  ;;  %v1126_v25 = vadd.f32 %v1115_v48, %v908_v8  ;;  %v1559_v60 = vpop.f32.mrf.mxu1  ;;  %v8020_v35 = vld [vmem:[#allocation20_spill] sm:$0xff]  ;;  %v1776_v7 = vpop.f32.mrf.mxu0 }
 0x22b   :  { %5424 = vmatprep.subr.msk.mxu1 %vm26_vm0, %v7188_v34  ;;  %v690_v34 = vadd.f32 %v689_v28, %v510_v31  ;;  %v8021_v28 = vld [vmem:[#allocation21_spill] sm:$0xff]  ;;  %v8023_v48 = vld [vmem:[#allocation24_spill] sm:$0xff] }
 0x22c   :  { %v909_v58 = vadd.f32 %v899_v11, %v686_v6  ;;  %v1344_v33 = vadd.f32 %v1333_v45, %v1126_v25 }
 0x22d   :  { %5389 = vmatpush3.xpose.msk.msra.mxu0 %vm26_vm0, %v8016_v16  ;;  %v910_v29 = vadd.f32 %v903_v30, %v690_v34 }
 0x22e   :  { %5425 = vmatpush3.xpose.msk.msra.mxu1 %vm26_vm0, %v7200_v46  ;;  %5390 = vmatprep.subr.msk.mxu0 %vm26_vm0, %v8017_v27  ;;  %v8019_v46 = vld [vmem:[#allocation19_spill] sm:$0xff]  ;;  %v1127_v19 = vadd.f32 %v1117_v1, %v909_v58  ;;  %v1562_v38 = vadd.f32 %v1551_v4, %v1344_v33  ;;  %v4001_v1 = vld [vmem:[#allocation2 + $0x352] sm:$0xff]  ;;  %v3980_v33 = vld [vmem:[#allocation2 + $0x25a] sm:$0xff] }
 0x22f   :  { %5426 = vmatprep.subr.msk.mxu1 %vm26_vm0, %v7204_v59  ;;  %v692_v59 = vadd.f32 %v691_v42, %v512_v39  ;;  %v8022_v42 = vld [vmem:[#allocation22_spill] sm:$0xff] }
 0x230   :  { %v1345_v39 = vadd.f32 %v1335_v47, %v1127_v19  ;;  %v1781_v44 = vadd.f32 %v1770_v57, %v1562_v38  ;;  %v4751_v47 = vld [vmem:[%s7803_s1 + $0x68] sm:$0xff]  ;;  %v3779_v19 = vld [vmem:[#allocation2 + $0x319] sm:$0xff]  ;;  %v3776_v38 = vld [vmem:[#allocation2 + $0x2f1] sm:$0xff] }
 0x231   :  { %5391 = vmatpush3.xpose.msk.msra.mxu0 %vm26_vm0, %v8018_v23  ;;  %v911_v31 = vadd.f32 %v905_v10, %v692_v59  ;;  %v1778_v10 = vpop.f32.mrf.mxu0 }
 0x232   :  { %5427 = vmatpush3.xpose.msk.msra.mxu1 %vm26_vm0, %v7216_v36  ;;  %5392 = vmatprep.subr.msk.mxu0 %vm26_vm0, %v8019_v46  ;;  %v1988_v36 = vpop.f32.mrf.mxu1  ;;  %v3766_v46 = vld [vmem:[#allocation2 + $0x279] sm:$0xff] }
 0x233   :  { %5428 = vmatprep.subr.msk.mxu1 %vm26_vm0, %v7220_v37  ;;  %v1128_v37 = vadd.f32 %v1121_v5, %v910_v29  ;;  %v1129_v40 = vadd.f32 %v1123_v0, %v911_v31  ;;  %v1999_v45 = vadd.f32 %v1988_v36, %v1781_v44  ;;  %v4715_v0 = vld [vmem:[%s7803_s1 + $0x58] sm:$0xff]  ;;  %v3780_v29 = vld [vmem:[#allocation2 + $0x321] sm:$0xff]  ;;  %v3762_v36 = vld [vmem:[#allocation2 + $0x249] sm:$0xff] }
 0x234   :  { %v3763_v31 = vld [vmem:[#allocation2 + $0x259] sm:$0xff] }
 0x235   :  { %5393 = vmatpush3.xpose.msk.msra.mxu0 %vm26_vm0, %v8020_v35  ;;  %v1346_v3 = vadd.f32 %v1339_v62, %v1128_v37  ;;  %v1347_v11 = vadd.f32 %v1341_v24, %v1129_v40  ;;  %v7675_v24 = vld [vmem:[%s7803_s1 + $0x70] sm:$0xff]  ;;  %v3994_v37 = vld [vmem:[#allocation2 + $0x302] sm:$0xff]  ;;  %v3774_v44 = vld [vmem:[#allocation2 + $0x2d9] sm:$0xff] }
 0x236   :  { %5429 = vmatpush3.xpose.msk.msra.mxu1 %vm26_vm0, %v7232_v41  ;;  %5394 = vmatprep.subr.msk.mxu0 %vm26_vm0, %v8021_v28  ;;  %v1990_v41 = vpop.f32.mrf.mxu1  ;;  %v3778_v35 = vld [vmem:[#allocation2 + $0x309] sm:$0xff] }
 0x237   :  { %5430 = vmatprep.subr.msk.mxu1 %vm26_vm0, %v7236_v54  ;;  %v1563_v54 = vadd.f32 %v1553_v18, %v1345_v39  ;;  %v1564_v30 = vadd.f32 %v1557_v52, %v1346_v3  ;;  %v1565_v14 = vadd.f32 %v1559_v60, %v1347_v11  ;;  %v7680_v52 = vld [vmem:[%s7803_s1 + $0x80] sm:$0xff]  ;;  %v3993_v3 = vld [vmem:[#allocation2 + $0x2f2] sm:$0xff]  ;;  %v3976_v11 = vld [vmem:[#allocation2 + $0x22a] sm:$0xff] }
 0x238   :  { %v1994_v5 = vpop.f32.mrf.mxu1  ;;  %v3997_v60 = vld [vmem:[#allocation2 + $0x322] sm:$0xff] }
 0x239   :  { %5395 = vmatpush3.xpose.msk.msra.mxu0 %vm26_vm0, %v8022_v42  ;;  %v1782_v63 = vadd.f32 %v1772_v32, %v1563_v54  ;;  %v1783_v17 = vadd.f32 %v1776_v7, %v1564_v30  ;;  %v1784_v20 = vadd.f32 %v1778_v10, %v1565_v14  ;;  %v3979_v32 = vld [vmem:[#allocation2 + $0x24a] sm:$0xff]  ;;  %v3761_v39 = vld [vmem:[#allocation2 + $0x241] sm:$0xff] }
 0x23a   :  { %5431 = vmatpush3.xpose.msk.msra.mxu1 %vm26_vm0, %v7248_v2  ;;  %5396 = vmatprep.subr.msk.mxu0 %vm26_vm0, %v8023_v48  ;;  %v7646_v2 = vpop.permute.xlu0 %2223  ;;  %v1996_v62 = vpop.f32.mrf.mxu1  ;;  %v3978_v40 = vld [vmem:[#allocation2 + $0x242] sm:$0xff]  ;;  %v3760_v42 = vld [vmem:[#allocation2 + $0x231] sm:$0xff]  ;;  %v3975_v30 = vld [vmem:[#allocation2 + $0x21a] sm:$0xff] }
 0x23b   :  { %5432 = vmatprep.subr.msk.mxu1 %vm26_vm0, %v7252_v15  ;;  %v3768_v15 = vld [vmem:[#allocation2 + $0x291] sm:$0xff]  ;;  %v2000_v26 = vadd.f32 %v1990_v41, %v1782_v63  ;;  %v2002_v34 = vadd.f32 %v1996_v62, %v1784_v20  ;;  %v3775_v7 = vld [vmem:[#allocation2 + $0x2e9] sm:$0xff]  ;;  %v3769_v62 = vld [vmem:[#allocation2 + $0x2a1] sm:$0xff] }
 0x23c   :  { %v3977_v41 = vld [vmem:[#allocation2 + $0x232] sm:$0xff]  ;;  %v3759_v54 = vld [vmem:[#allocation2 + $0x229] sm:$0xff] }
 0x23d   :  { %5397 = vmatpush3.xpose.msk.msra.mxu0 %vm26_vm0, %v8024_v9  ;;  %v3773_v63 = vld [vmem:[#allocation2 + $0x2d1] sm:$0xff]  ;;  %v3989_v14 = vld [vmem:[#allocation2 + $0x2c2] sm:$0xff] }
 0x23e   :  { %5433 = vmatpush3.xpose.msk.msra.mxu1 %vm26_vm0, %v7264_v49  ;;  %5438 = vmatprep.subr.msk.mxu0 %vm26_vm0, %v3784_v61  ;;  %v4000_v49 = vld [vmem:[#allocation2 + $0x34a] sm:$0xff]  ;;  %v7669_v8 = vpop.permute.xlu0 %2228  ;;  %v3991_v61 = vld [vmem:[#allocation2 + $0x2da] sm:$0xff]  ;;  %v3990_v9 = vld [vmem:[#allocation2 + $0x2d2] sm:$0xff] }
 0x23f   :  { %5474 = vmatprep.subr.msk.mxu1 %vm26_vm0, %v4001_v1  ;;  %v3758_v1 = vld [vmem:[#allocation2 + $0x219] sm:$0xff]  ;;  %v3757_v10 = vld [vmem:[#allocation2 + $0x211] sm:$0xff]  ;;  %v3754_v20 = vld [vmem:[#allocation2 + $0x1e9] sm:$0xff] }
 0x240   :  { %v2206_v4 = vpop.f32.mrf.mxu0  ;;  %5399 = vmatmul.mubr.msk.f32.vlgmr.msra.gmra.mxu0 %vm26_vm0, %v7519_v21  ;;  %v3767_v21 = vld [vmem:[#allocation2 + $0x289] sm:$0xff] }
 0x241   :  { %5435 = vmatmul.mubr.msk.f32.vlgmr.msra.gmra.mxu1 %vm26_vm0, %v7524_v51  ;;  %v2217_v18 = vadd.f32 %v2206_v4, %v1999_v45  ;;  %5439 = vmatpush3.xpose.msk.msra.mxu0 %vm26_vm0, %v3768_v15  ;;  %v2001_v51 = vadd.f32 %v1994_v5, %v1783_v17  ;;  %v3974_v5 = vld [vmem:[#allocation2 + $0x212] sm:$0xff]  ;;  %v3772_v15 = vld [vmem:[#allocation2 + $0x2c1] sm:$0xff] }
 0x242   :  { %5475 = vmatpush3.xpose.msk.msra.mxu1 %vm26_vm0, %v8021_v28  ;;  %v2208_v22 = vpop.f32.mrf.mxu0  ;;  %5400 = vmatprep.mubr.msk.f32.mxu0 %vm26_vm0, %v4715_v0  ;;  %v3777_v28 = vld [vmem:[#allocation2 + $0x301] sm:$0xff]  ;;  %v3755_v4 = vld [vmem:[#allocation2 + $0x1f9] sm:$0xff] }
 0x243   :  { %5440 = vmatprep.subr.msk.mxu0 %vm26_vm0, %v3783_v13  ;;  %v2231_v16 = vadd.f32 %v7646_v2, %v2217_v18  ;;  %v2218_v27 = vadd.f32 %v2208_v22, %v2000_v26  ;;  %5476 = vmatprep.subr.msk.mxu1 %vm26_vm0, %v4000_v49  ;;  %v3756_v45 = vld [vmem:[#allocation2 + $0x201] sm:$0xff]  ;;  %v3987_v26 = vld [vmem:[#allocation2 + $0x2aa] sm:$0xff] }
 0x244   :  { %5436 = vmatprep.mubr.msk.f32.mxu1 %vm26_vm0, %v4751_v47  ;;  %v2212_v6 = vpop.f32.mrf.mxu0  ;;  %5401 = vmatmul.mubr.msk.f32.gmra.mxu0 %vm26_vm0, %v4715_v0  ;;  %v3973_v17 = vld [vmem:[#allocation2 + $0x202] sm:$0xff]  ;;  %v3771_v0 = vld [vmem:[#allocation2 + $0x2b9] sm:$0xff]  ;;  %v3971_v18 = vld [vmem:[#allocation2 + $0x1ea] sm:$0xff] }
 0x245   :  { %5437 = vmatmul.mubr.msk.f32.gmra.mxu1 %vm26_vm0, %v4751_v47  ;;  %2235 = vst [vmem:[%s7806_s4] sm:$0xff] %v2231_v16  ;;  %v2232_v58 = vadd.f32 %v7646_v2, %v2218_v27  ;;  %v2219_v23 = vadd.f32 %v2212_v6, %v2001_v51  ;;  %5441 = vmatpush3.xpose.msk.msra.mxu0 %vm26_vm0, %v3767_v21  ;;  %v3988_v13 = vld [vmem:[#allocation2 + $0x2ba] sm:$0xff]  ;;  %v3770_v47 = vld [vmem:[#allocation2 + $0x2a9] sm:$0xff] }
 0x246   :  { %5477 = vmatpush3.xpose.msk.msra.mxu1 %vm26_vm0, %v8023_v48  ;;  %v2214_v57 = vpop.f32.mrf.mxu0  ;;  %5442 = vmatprep.subr.msk.mxu0 %vm26_vm0, %v7324_v43  ;;  %v3992_v48 = vld [vmem:[#allocation2 + $0x2ea] sm:$0xff]  ;;  %v3972_v49 = vld [vmem:[#allocation2 + $0x1fa] sm:$0xff]  ;;  %v3986_v22 = vld [vmem:[#allocation2 + $0x2a2] sm:$0xff] }
 0x247   :  { %5478 = vmatprep.subr.msk.mxu1 %vm26_vm0, %v7484_v50  ;;  %2236 = vst [vmem:[%s7806_s4 + $0x8] sm:$0xff] %v2232_v58  ;;  %v2233_v59 = vadd.f32 %v7669_v8, %v2219_v23  ;;  %v2220_v25 = vadd.f32 %v2214_v57, %v2002_v34  ;;  %5470 = vmatprep.mubr.msk.f32.mxu0 %vm26_vm0, %v7675_v24  ;;  %v3765_v50 = vld [vmem:[#allocation2 + $0x271] sm:$0xff]  ;;  %v3753_v21 = vld [vmem:[#allocation2 + $0x1e1] sm:$0xff]  ;;  %v20_v6 = vld [vmem:[%s7805_s3] sm:$0x1] }
 0x248   :  { %5506 = vmatprep.mubr.msk.f32.mxu1 %vm26_vm0, %v7680_v52  ;;  %v3970_v51 = vld [vmem:[#allocation2 + $0x1e2] sm:$0xff]  ;;  %v4787_v16 = vld [vmem:[%s7803_s1 + $0x78] sm:$0xff]  ;;  %v21_v34 = vsub.f32 4.2, %v20_v6 }
 0x249   :  { %2237 = vst [vmem:[%s7806_s4 + $0x10] sm:$0xff] %v2233_v59  ;;  %v2234_v43 = vadd.f32 %v7669_v8, %v2220_v25  ;;  %5443 = vmatpush3.xpose.msk.msra.mxu0 %vm26_vm0, %v3766_v46  ;;  %v4823_v27 = vld [vmem:[%s7803_s1 + $0x88] sm:$0xff]  ;;  %s5538_s1 = smov [#allocation3]  }
 0x24a   :  { %5479 = vmatpush3.xpose.msk.msra.mxu1 %vm26_vm0, %v7996_v12  ;;  %5444 = vmatprep.subr.msk.mxu0 %vm26_vm0, %v7341_v55  ;;  %v3764_v55 = vld [vmem:[#allocation2 + $0x261] sm:$0xff]  ;;  %v22_v58 = vmax.f32 %v21_v34, 2.0  ;;  %s4204_s27 = sshll.u32 %s5538_s1, 4  ;;  %s4205_s27 = int_to_ptr.vmem [resolvable:$true] %s4204_s27 }
 0x24b   :  { %5480 = vmatprep.subr.msk.mxu1 %vm26_vm0, %v7496_v56  ;;  %2238 = vst [vmem:[%s7806_s4 + $0x18] sm:$0xff] %v2234_v43  ;;  %v3981_v12 = vld [vmem:[#allocation2 + $0x262] sm:$0xff]  ;;  %v3996_v56 = vld [vmem:[#allocation2 + $0x31a] sm:$0xff]  ;;  %s5514_s28 = scalar_lea.vmem %s4205_s27, 16  ;;  %s5518_s29 = scalar_lea.vmem %s4205_s27, 32 }
 0x24c   :  { %v23_v23 = vmin.f32 %v22_v58, 7.2  ;;  %p5515_p0 = scmp.ne.s32.totalorder %s4205_s27, %s5514_s28  ;;  %p5519_p1 = scmp.lt.s32.totalorder %s4205_s27, %s4205_s27 }
 0x24d   :  { %5445 = vmatpush3.xpose.msk.msra.mxu0 %vm26_vm0, %v3765_v50  ;;  %p5520_p2 = scmp.lt.s32.totalorder %s5518_s29, %s5514_s28 }
 0x24e   :  { %5481 = vmatpush3.xpose.msk.msra.mxu1 %vm26_vm0, %v7314_v53  ;;  %5446 = vmatprep.subr.msk.mxu0 %vm26_vm0, %v3780_v29  ;;  %v3995_v53 = vld [vmem:[#allocation2 + $0x30a] sm:$0xff]  ;;  %25 = vst.msk [vmem:[#allocation3] sm:$0x1] %vm24_vm2, %v23_v23 }
 0x24f   :  { %5482 = vmatprep.subr.msk.mxu1 %vm26_vm0, %v3997_v60  ;;  %p5521_p3 = por %p5520_p2, %p5519_p1 }
 0x251   :  { %5447 = vmatpush3.xpose.msk.msra.mxu0 %vm26_vm0, %v3764_v55  ;;  %p5522_p4 = pnand %p5521_p3, %p5515_p0 }
 0x252   :  { %5483 = vmatpush3.xpose.msk.msra.mxu1 %vm26_vm0, %v3981_v12  ;;  %5448 = vmatprep.subr.msk.mxu0 %vm26_vm0, %v3779_v19 }
 0x253   :  { %5484 = vmatprep.subr.msk.mxu1 %vm26_vm0, %v3996_v56 }
 0x255   :  { %5449 = vmatpush3.xpose.msk.msra.mxu0 %vm26_vm0, %v3763_v31 }
 0x256   :  { %5485 = vmatpush3.xpose.msk.msra.mxu1 %vm26_vm0, %v3980_v33  ;;  %5450 = vmatprep.subr.msk.mxu0 %vm26_vm0, %v3778_v35 }
 0x257   :  { %5486 = vmatprep.subr.msk.mxu1 %vm26_vm0, %v3995_v53 }
 0x259   :  { %5451 = vmatpush3.xpose.msk.msra.mxu0 %vm26_vm0, %v3762_v36 }
 0x25a   :  { %5487 = vmatpush3.xpose.msk.msra.mxu1 %vm26_vm0, %v3979_v32  ;;  %5452 = vmatprep.subr.msk.mxu0 %vm26_vm0, %v3777_v28 }
 0x25b   :  { %5488 = vmatprep.subr.msk.mxu1 %vm26_vm0, %v3994_v37 }
 0x25d   :  { %5453 = vmatpush3.xpose.msk.msra.mxu0 %vm26_vm0, %v3761_v39 }
 0x25e   :  { %5489 = vmatpush3.xpose.msk.msra.mxu1 %vm26_vm0, %v3978_v40  ;;  %5454 = vmatprep.subr.msk.mxu0 %vm26_vm0, %v3776_v38 }
 0x25f   :  { %5490 = vmatprep.subr.msk.mxu1 %vm26_vm0, %v3993_v3 }
 0x261   :  { %5455 = vmatpush3.xpose.msk.msra.mxu0 %vm26_vm0, %v3760_v42 }
 0x262   :  { %5491 = vmatpush3.xpose.msk.msra.mxu1 %vm26_vm0, %v3977_v41  ;;  %5456 = vmatprep.subr.msk.mxu0 %vm26_vm0, %v3775_v7 }
 0x263   :  { %5492 = vmatprep.subr.msk.mxu1 %vm26_vm0, %v3992_v48 }
 0x265   :  { %5457 = vmatpush3.xpose.msk.msra.mxu0 %vm26_vm0, %v3759_v54 }
 0x266   :  { %5493 = vmatpush3.xpose.msk.msra.mxu1 %vm26_vm0, %v3976_v11  ;;  %5458 = vmatprep.subr.msk.mxu0 %vm26_vm0, %v3774_v44 }
 0x267   :  { %5494 = vmatprep.subr.msk.mxu1 %vm26_vm0, %v3991_v61 }
 0x269   :  { %5459 = vmatpush3.xpose.msk.msra.mxu0 %vm26_vm0, %v3758_v1 }
 0x26a   :  { %5495 = vmatpush3.xpose.msk.msra.mxu1 %vm26_vm0, %v3975_v30  ;;  %5460 = vmatprep.subr.msk.mxu0 %vm26_vm0, %v3773_v63 }
 0x26b   :  { %5496 = vmatprep.subr.msk.mxu1 %vm26_vm0, %v3990_v9 }
 0x26d   :  { %5461 = vmatpush3.xpose.msk.msra.mxu0 %vm26_vm0, %v3757_v10 }
 0x26e   :  { %5497 = vmatpush3.xpose.msk.msra.mxu1 %vm26_vm0, %v3974_v5  ;;  %5462 = vmatprep.subr.msk.mxu0 %vm26_vm0, %v3772_v15 }
 0x26f   :  { %5498 = vmatprep.subr.msk.mxu1 %vm26_vm0, %v3989_v14 }
 0x271   :  { %5463 = vmatpush3.xpose.msk.msra.mxu0 %vm26_vm0, %v3756_v45 }
 0x272   :  { %5499 = vmatpush3.xpose.msk.msra.mxu1 %vm26_vm0, %v3973_v17  ;;  %5464 = vmatprep.subr.msk.mxu0 %vm26_vm0, %v3771_v0 }
 0x273   :  { %5500 = vmatprep.subr.msk.mxu1 %vm26_vm0, %v3988_v13 }
 0x275   :  { %5465 = vmatpush3.xpose.msk.msra.mxu0 %vm26_vm0, %v3755_v4 }
 0x276   :  { %5501 = vmatpush3.xpose.msk.msra.mxu1 %vm26_vm0, %v3972_v49  ;;  %5466 = vmatprep.subr.msk.mxu0 %vm26_vm0, %v3770_v47 }
 0x277   :  { %5502 = vmatprep.subr.msk.mxu1 %vm26_vm0, %v3987_v26 }
 0x279   :  { %5467 = vmatpush3.xpose.msk.msra.mxu0 %vm26_vm0, %v3754_v20 }
 0x27a   :  { %5503 = vmatpush3.xpose.msk.msra.mxu1 %vm26_vm0, %v3971_v18  ;;  %5468 = vmatprep.subr.msk.mxu0 %vm26_vm0, %v3769_v62 }
 0x27b   :  { %5504 = vmatprep.subr.msk.mxu1 %vm26_vm0, %v3986_v22 }
 0x27d   :  { %5469 = vmatpush3.xpose.msk.msra.mxu0 %vm26_vm0, %v3753_v21 }
 0x27e   :  { %5505 = vmatpush3.xpose.msk.msra.mxu1 %vm26_vm0, %v3970_v51 }
 0x280   :  { %5471 = vmatmul.mubr.msk.f32.vlgmr.msra.gmra.mxu0 %vm26_vm0, %v7675_v24 }
 0x281   :  { %5507 = vmatmul.mubr.msk.f32.vlgmr.msra.gmra.mxu1 %vm26_vm0, %v7680_v52  ;;  %5472 = vmatprep.mubr.msk.f32.mxu0 %vm26_vm0, %v4787_v16 }
 0x282   :  { %5508 = vmatprep.mubr.msk.f32.mxu1 %vm26_vm0, %v4823_v27 }
 0x284   :  { %5473 = vmatmul.mubr.msk.f32.gmra.mxu0 %vm26_vm0, %v4787_v16 }
 0x285   :  { %5509 = vmatmul.mubr.msk.f32.gmra.mxu1 %vm26_vm0, %v4823_v27 }
 0x286   :  { %5525 = shalt.err (!%p5522_p4)
}
 0x287   :  { %4207 = dma.vmem_to_hbm [thread:$0]  %s4205_s27, 16, %s7807_s5, [#allocation4]   ;;  %v2476_v24 = vpop.f32.mrf.mxu1  ;;  %v2655_v59 = vpop.f32.mrf.mxu0 }
 0x288   :  { %v2656_v36 = vadd.f32 %v2655_v59, %v2476_v24 }
 0x289   :  { %v2478_v52 = vpop.f32.mrf.mxu1  ;;  %v2657_v43 = vpop.f32.mrf.mxu0 }
 0x28a   :  { %v2658_v37 = vadd.f32 %v2657_v43, %v2478_v52 }
 0x28b   :  { %v2482_v57 = vpop.f32.mrf.mxu1  ;;  %v2661_v29 = vpop.f32.mrf.mxu0 }
 0x28c   :  { %v2662_v3 = vadd.f32 %v2661_v29, %v2482_v57 }
 0x28d   :  { %v2484_v46 = vpop.f32.mrf.mxu1  ;;  %v2663_v55 = vpop.f32.mrf.mxu0 }
 0x28e   :  { %v2664_v41 = vadd.f32 %v2663_v55, %v2484_v46 }
 0x28f   :  { %v2868_v25 = vpop.f32.mrf.mxu1 }
 0x290   :  { %v2879_v38 = vadd.f32 %v2868_v25, %v2656_v36 }
 0x291   :  { %v2870_v50 = vpop.f32.mrf.mxu1 }
 0x292   :  { %v2880_v42 = vadd.f32 %v2870_v50, %v2658_v37 }
 0x293   :  { %v2874_v60 = vpop.f32.mrf.mxu1 }
 0x294   :  { %v2881_v11 = vadd.f32 %v2874_v60, %v2662_v3 }
 0x295   :  { %v2876_v12 = vpop.f32.mrf.mxu1 }
 0x296   :  { %v2882_v61 = vadd.f32 %v2876_v12, %v2664_v41 }
 0x2c0   :  { %v3086_v19 = vpop.f32.mrf.mxu0 }
 0x2c1   :  { %v3303_v56 = vpop.f32.mrf.mxu1  ;;  %v3097_v7 = vadd.f32 %v3086_v19, %v2879_v38 }
 0x2c2   :  { %v3088_v31 = vpop.f32.mrf.mxu0 }
 0x2c3   :  { %v3305_v33 = vpop.f32.mrf.mxu1  ;;  %v3098_v44 = vadd.f32 %v3088_v31, %v2880_v42  ;;  %v3314_v1 = vadd.f32 %v3303_v56, %v3097_v7 }
 0x2c4   :  { %v3092_v35 = vpop.f32.mrf.mxu0 }
 0x2c5   :  { %v3309_v53 = vpop.f32.mrf.mxu1  ;;  %v3099_v30 = vadd.f32 %v3092_v35, %v2881_v11  ;;  %v3315_v10 = vadd.f32 %v3305_v33, %v3098_v44 }
 0x2c6   :  { %v3094_v32 = vpop.f32.mrf.mxu0 }
 0x2c7   :  { %v3311_v28 = vpop.f32.mrf.mxu1  ;;  %v3100_v5 = vadd.f32 %v3094_v32, %v2882_v61  ;;  %v3316_v14 = vadd.f32 %v3309_v53, %v3099_v30 }
 0x2c9   :  { %v3317_v13 = vadd.f32 %v3311_v28, %v3100_v5 }
 0x300   :  { %v3520_v39 = vpop.f32.mrf.mxu0 }
 0x301   :  { %v3738_v40 = vpop.f32.mrf.mxu1  ;;  %v3531_v15 = vadd.f32 %v3520_v39, %v3314_v1 }
 0x302   :  { %v3522_v48 = vpop.f32.mrf.mxu0 }
 0x303   :  { %v3740_v54 = vpop.f32.mrf.mxu1  ;;  %v3532_v45 = vadd.f32 %v3522_v48, %v3315_v10  ;;  %v3749_v4 = vadd.f32 %v3738_v40, %v3531_v15 }
 0x304   :  { %v3526_v63 = vpop.f32.mrf.mxu0 }
 0x305   :  { %v3744_v9 = vpop.f32.mrf.mxu1  ;;  %v3533_v49 = vadd.f32 %v3526_v63, %v3316_v14  ;;  %v3750_v20 = vadd.f32 %v3740_v54, %v3532_v45 }
 0x306   :  { %v3528_v17 = vpop.f32.mrf.mxu0 }
 0x307   :  { %v3746_v0 = vpop.f32.mrf.mxu1  ;;  %v3534_v18 = vadd.f32 %v3528_v17, %v3317_v13  ;;  %v3751_v51 = vadd.f32 %v3744_v9, %v3533_v49 }
 0x309   :  { %v3752_v58 = vadd.f32 %v3746_v0, %v3534_v18 }
 0x340   :  { %v3955_v47 = vpop.f32.mrf.mxu0 }
 0x341   :  { %v4172_v26 = vpop.f32.mrf.mxu1  ;;  %v3966_v62 = vadd.f32 %v3955_v47, %v3749_v4 }
 0x342   :  { %v3957_v22 = vpop.f32.mrf.mxu0 }
 0x343   :  { %v4174_v21 = vpop.f32.mrf.mxu1  ;;  %v4183_v16 = vadd.f32 %v4172_v26, %v3966_v62  ;;  %v3967_v27 = vadd.f32 %v3957_v22, %v3750_v20 }
 0x344   :  { %v3961_v6 = vpop.f32.mrf.mxu0 }
 0x345   :  { %v4178_v34 = vpop.f32.mrf.mxu1  ;;  %v4187_v23 = vadd.f32 %v4183_v16, %v7646_v2  ;;  %v4184_v24 = vadd.f32 %v4174_v21, %v3967_v27  ;;  %v3968_v52 = vadd.f32 %v3961_v6, %v3751_v51 }
 0x346   :  { %v3963_v57 = vpop.f32.mrf.mxu0 }
 0x347   :  { %4858 = vst [vmem:[%s7806_s4 + $0x20] sm:$0xff] %v4187_v23  ;;  %v4188_v46 = vadd.f32 %v4184_v24, %v7646_v2  ;;  %v4185_v59 = vadd.f32 %v4178_v34, %v3968_v52  ;;  %v3969_v25 = vadd.f32 %v3963_v57, %v3752_v58  ;;  %v4180_v43 = vpop.f32.mrf.mxu1 }
 0x349   :  { %4859 = vst [vmem:[%s7806_s4 + $0x28] sm:$0xff] %v4188_v46  ;;  %v4189_v50 = vadd.f32 %v4185_v59, %v7669_v8  ;;  %v4186_v29 = vadd.f32 %v4180_v43, %v3969_v25 }
 0x34b   :  { %4860 = vst [vmem:[%s7806_s4 + $0x30] sm:$0xff] %v4189_v50  ;;  %v4190_v60 = vadd.f32 %v4186_v29, %v7669_v8 }
 0x34d   :  { %4861 = vst [vmem:[%s7806_s4 + $0x38] sm:$0xff] %v4190_v60 }
 0x34e   :  { %5534 = dma.done.wait [#allocation4], 16  }
 0x34f   :  { %5535 = vsyncadd [#allocation4], 4294967280 }
 0x350   :  { %4213 = vsyncpa [#allocation4], 1 }

</bundles_post_ra>
